<compile_context>
chip_gen: v7x
topology: tpu7x:2x2x1
jax: 0.10.0
libtpu: 0.0.40
codegen_flags: <defaults>
</compile_context>

<pallas_src>
import functools
import math
from itertools import groupby

import numpy as np
import jax
import jax.numpy as jnp
from jax import lax
from jax.experimental import pallas as pl
from jax.experimental.pallas import tpu as pltpu

_EPS = 1e-12
_NEG = -1e30


def _cparams(*sems):
    return pltpu.CompilerParams(dimension_semantics=tuple(sems),
                                vmem_limit_bytes=32 * 1024 * 1024)


# ----------------------------------------------------------------------------
# In-kernel helpers
# ----------------------------------------------------------------------------
def _ln(x, gb):
    """LayerNorm over last dim; gb is (2, D): row0=gamma, row1=beta (ref or array)."""
    g = gb[0:1, :]
    b = gb[1:2, :]
    mean = jnp.mean(x, axis=-1, keepdims=True)
    var = jnp.mean(jnp.square(x - mean), axis=-1, keepdims=True)
    return (x - mean) * lax.rsqrt(var + _EPS) * g + b


def _bdot(a, b):
    """bf16 MXU operands, f32 accumulation."""
    return jnp.dot(a.astype(jnp.bfloat16), b.astype(jnp.bfloat16),
                   preferred_element_type=jnp.float32)


def _mha_core(q, k, v, kmask, n_heads, dk, scale):
    """Multi-head attention with lane-masked heads (no dk-wide operands).

    K^T is computed once (hoisted out of the head loop).  Heads are isolated with
    per-head lane masks so every matmul stays lane-dense over the full model dim:
        s_h   = (q * m_h) @ K^T            (== q_h @ k_h^T)
        ctx  += softmax(s_h) @ (v * m_h)   (head h lands in its own lanes)
    Masked key columns get exp(-1e30)=0, so no post-softmax zeroing is needed.
    """
    D = q.shape[-1]
    lane = lax.broadcasted_iota(jnp.int32, (1, D), 1)
    kt = k.astype(jnp.bfloat16).T          # single XLU transpose per attention block
    ctx = None
    for h in range(n_heads):
        hm = (lane >= h * dk) & (lane < (h + 1) * dk)
        qh = jnp.where(hm, q, 0.0).astype(jnp.bfloat16)
        s = jnp.dot(qh, kt, preferred_element_type=jnp.float32) * scale
        s = jnp.where(kmask, s, _NEG)
        m = jnp.max(s, axis=-1, keepdims=True)
        p = jnp.exp(s - m)
        denom = jnp.sum(p, axis=-1, keepdims=True)
        attn = (p * pl.reciprocal(denom, approx=True)).astype(jnp.bfloat16)
        vh = jnp.where(hm, v, 0.0).astype(jnp.bfloat16)
        part = jnp.dot(attn, vh, preferred_element_type=jnp.float32)
        ctx = part if ctx is None else ctx + part
    return ctx  # (Tq, D): concatenated per-head contexts


# ----------------------------------------------------------------------------
# Pallas kernels
# ----------------------------------------------------------------------------
def _enc_input_kernel(x_ref, w_ref, b_ref, ln_ref, pe_ref, o_ref, *, xscale):
    # 'linear' input layer: Linear -> LayerNorm -> ReLU -> PosEnc.
    x = x_ref[0].astype(jnp.float32)
    y = _bdot(x, w_ref[...]) + b_ref[...]
    y = _ln(y, ln_ref)
    y = jnp.maximum(y, 0.0)
    y = y * xscale + pe_ref[...]
    o_ref[0] = y.astype(o_ref.dtype)


def _enc_stack_kernel(len_ref, x_ref,
                      ln1_ref, wqkv_ref, bqkv_ref, wo_ref, bo_ref,
                      ln2_ref, w1_ref, b1_ref, w2_ref, b2_ref,
                      lnf_ref, o_ref, acc_ref, *, n_heads):
    """Whole encoder stack: grid=(B, n_layers); activation carried in VMEM scratch."""
    l = pl.program_id(1)
    nl = pl.num_programs(1)
    T, D = x_ref.shape[1], x_ref.shape[2]
    dk = D // n_heads
    L = len_ref[pl.program_id(0)]
    kmask = lax.broadcasted_iota(jnp.int32, (1, T), 1) < L
    scale = 1.0 / math.sqrt(dk)

    @pl.when(l == 0)
    def _():
        acc_ref[...] = x_ref[0].astype(jnp.float32)

    x = acc_ref[...]

    # --- self-attention sublayer (pre-LN, fused QKV projection) ---
    xn = _ln(x, ln1_ref[0])
    qkv = _bdot(xn, wqkv_ref[0]) + bqkv_ref[0]
    q, k, v = qkv[:, :D], qkv[:, D:2 * D], qkv[:, 2 * D:]
    ctx = _mha_core(q, k, v, kmask, n_heads, dk, scale)
    x = x + _bdot(ctx, wo_ref[0]) + bo_ref[0]

    # --- feed-forward sublayer ---
    xn = _ln(x, ln2_ref[0])
    h = jnp.maximum(_bdot(xn, w1_ref[0]) + b1_ref[0], 0.0)
    x = x + _bdot(h, w2_ref[0]) + b2_ref[0]

    acc_ref[...] = x
    o_ref[0] = x.astype(o_ref.dtype)

    @pl.when(l == nl - 1)
    def _():
        # encoder after-norm folded onto the last layer's output
        o_ref[0] = _ln(x, lnf_ref).astype(o_ref.dtype)


def _src_kv_kernel(mem_ref, wkv_ref, bkv_ref, o_ref):
    # Step-invariant source-attention K/V projection (once per (batch, layer)).
    mem = mem_ref[0].astype(jnp.float32)
    o_ref[0, 0] = (_bdot(mem, wkv_ref[0, 0]) + bkv_ref[0, 0]).astype(o_ref.dtype)
    o_ref[0, 1] = (_bdot(mem, wkv_ref[0, 1]) + bkv_ref[0, 1]).astype(o_ref.dtype)


def _dec_stack_kernel(len_ref, x_ref, kv_ref,
                      ln1_ref, wqkv_ref, bqkv_ref, wos_ref, bos_ref,
                      ln2_ref, wq_ref, bq_ref, woc_ref, boc_ref,
                      ln3_ref, w1_ref, b1_ref, w2_ref, b2_ref,
                      o_ref, acc_ref, *, n_heads):
    """Whole decoder stack: grid=(B, n_layers); activation carried in VMEM scratch."""
    l = pl.program_id(1)
    T, D = x_ref.shape[1], x_ref.shape[2]
    Tm = kv_ref.shape[2]
    dk = D // n_heads
    L = len_ref[pl.program_id(0)]
    kmask_self = lax.broadcasted_iota(jnp.int32, (1, T), 1) < L
    kmask_src = lax.broadcasted_iota(jnp.int32, (1, Tm), 1) < L
    scale = 1.0 / math.sqrt(dk)

    @pl.when(l == 0)
    def _():
        acc_ref[...] = x_ref[0].astype(jnp.float32)

    x = acc_ref[...]

    # --- self-attention (non-causal, key-padding mask = hs_mask, as in ref) ---
    xn = _ln(x, ln1_ref[0])
    qkv = _bdot(xn, wqkv_ref[0]) + bqkv_ref[0]
    q, k, v = qkv[:, :D], qkv[:, D:2 * D], qkv[:, 2 * D:]
    ctx = _mha_core(q, k, v, kmask_self, n_heads, dk, scale)
    x = x + _bdot(ctx, wos_ref[0]) + bos_ref[0]

    # --- source attention: K/V precomputed once outside the realigner loop ---
    xn = _ln(x, ln2_ref[0])
    q = _bdot(xn, wq_ref[0]) + bq_ref[0]
    k = kv_ref[0, 0]
    v = kv_ref[0, 1]
    ctx = _mha_core(q, k, v, kmask_src, n_heads, dk, scale)
    x = x + _bdot(ctx, woc_ref[0]) + boc_ref[0]

    # --- feed-forward ---
    xn = _ln(x, ln3_ref[0])
    h = jnp.maximum(_bdot(xn, w1_ref[0]) + b1_ref[0], 0.0)
    x = x + _bdot(h, w2_ref[0]) + b2_ref[0]

    acc_ref[...] = x
    o_ref[0] = x.astype(o_ref.dtype)


def _dec_embed_kernel(oh_ref, w_ref, b_ref, pe_ref, o_ref):
    # 'embed_linear' input layer + ScaledPositionalEncoding (pe already * alpha).
    # TODO(synk): replace one-hot matmul with a token-id gather for large vocab.
    y = _bdot(oh_ref[0].astype(jnp.float32), w_ref[...]) + b_ref[...] + pe_ref[...]
    o_ref[0] = y.astype(o_ref.dtype)


def _head_kernel(x_ref, ln_ref, w_ref, b_ref, o_ref, *, apply_ln):
    # (optional LayerNorm) + Linear + log_softmax over a 128-lane-padded vocab
    # (padded columns carry -1e9 bias so they vanish from softmax and argmax).
    x = x_ref[0].astype(jnp.float32)
    if apply_ln:
        x = _ln(x, ln_ref)
    logits = _bdot(x, w_ref[...]) + b_ref[...]
    m = jnp.max(logits, axis=-1, keepdims=True)
    z = logits - m
    lse = jnp.log(jnp.sum(jnp.exp(z), axis=-1, keepdims=True))
    o_ref[0] = (z - lse).astype(o_ref.dtype)


# ----------------------------------------------------------------------------
# BlockSpec helpers for the fused stacks (index maps receive (b, l, lens_ref))
# ----------------------------------------------------------------------------
def _stacked_spec(arr):
    nb = arr.ndim - 1
    return pl.BlockSpec((1,) + arr.shape[1:],
                        lambda b, l, lens_ref, _nb=nb: (l,) + (0,) * _nb)


def _invariant_spec(arr):
    nd = arr.ndim
    return pl.BlockSpec(arr.shape, lambda b, l, lens_ref, _nd=nd: (0,) * _nd)


# ----------------------------------------------------------------------------
# pallas_call wrappers
# ----------------------------------------------------------------------------
def encoder_input(x, w, b, lnp, pe, xscale):
    B, T, idim = x.shape
    D = w.shape[1]
    return pl.pallas_call(
        functools.partial(_enc_input_kernel, xscale=xscale),
        out_shape=jax.ShapeDtypeStruct((B, T, D), jnp.bfloat16),
        grid=(B,),
        in_specs=[
            pl.BlockSpec((1, T, idim), lambda i: (i, 0, 0)),
            pl.BlockSpec(w.shape, lambda i: (0, 0)),
            pl.BlockSpec(b.shape, lambda i: (0, 0)),
            pl.BlockSpec(lnp.shape, lambda i: (0, 0)),
            pl.BlockSpec(pe.shape, lambda i: (0, 0)),
        ],
        out_specs=pl.BlockSpec((1, T, D), lambda i: (i, 0, 0)),
        compiler_params=_cparams("parallel"),
    )(x, w, b, lnp, pe)


def encoder_stack(x, lens, stk, ln_after, n_heads):
    B, T, D = x.shape
    nl = stk['wqkv'].shape[0]
    blk = pl.BlockSpec((1, T, D), lambda b, l, lens_ref: (b, 0, 0))
    ws = [stk['ln1'], stk['wqkv'], stk['bqkv'], stk['wo'], stk['bo'],
          stk['ln2'], stk['w1'], stk['b1'], stk['w2'], stk['b2']]
    return pl.pallas_call(
        functools.partial(_enc_stack_kernel, n_heads=n_heads),
        out_shape=jax.ShapeDtypeStruct((B, T, D), jnp.bfloat16),
        grid_spec=pltpu.PrefetchScalarGridSpec(
            num_scalar_prefetch=1,
            grid=(B, nl),
            in_specs=[blk] + [_stacked_spec(w) for w in ws]
                     + [_invariant_spec(ln_after)],
            out_specs=blk,
            scratch_shapes=[pltpu.VMEM((T, D), jnp.float32)],
        ),
        compiler_params=_cparams("parallel", "arbitrary"),
    )(lens, x, *ws, ln_after)


def src_kv_project(memory, wkv, bkv):
    """Precompute decoder source-attention K/V: (B, 2*dlayers, Tm, D) bf16."""
    B, Tm, D = memory.shape
    nl = wkv.shape[0]
    return pl.pallas_call(
        _src_kv_kernel,
        out_shape=jax.ShapeDtypeStruct((B, 2 * nl, Tm, D), jnp.bfloat16),
        grid=(B, nl),
        in_specs=[
            pl.BlockSpec((1, Tm, D), lambda b, l: (b, 0, 0)),
            pl.BlockSpec((1, 2, D, D), lambda b, l: (l, 0, 0, 0)),
            pl.BlockSpec((1, 2, 1, D), lambda b, l: (l, 0, 0, 0)),
        ],
        out_specs=pl.BlockSpec((1, 2, Tm, D), lambda b, l: (b, l, 0, 0)),
        compiler_params=_cparams("parallel", "parallel"),
    )(memory, wkv, bkv)


def decoder_stack(x, src_kv, lens, stk, n_heads):
    B, T, D = x.shape
    nl = stk['wqkv'].shape[0]
    Tm = src_kv.shape[2]
    blk_x = pl.BlockSpec((1, T, D), lambda b, l, lens_ref: (b, 0, 0))
    blk_kv = pl.BlockSpec((1, 2, Tm, D), lambda b, l, lens_ref: (b, l, 0, 0))
    ws = [stk['ln1'], stk['wqkv'], stk['bqkv'], stk['wos'], stk['bos'],
          stk['ln2'], stk['wq'], stk['bq'], stk['woc'], stk['boc'],
          stk['ln3'], stk['w1'], stk['b1'], stk['w2'], stk['b2']]
    return pl.pallas_call(
        functools.partial(_dec_stack_kernel, n_heads=n_heads),
        out_shape=jax.ShapeDtypeStruct((B, T, D), jnp.bfloat16),
        grid_spec=pltpu.PrefetchScalarGridSpec(
            num_scalar_prefetch=1,
            grid=(B, nl),
            in_specs=[blk_x, blk_kv] + [_stacked_spec(w) for w in ws],
            out_specs=blk_x,
            scratch_shapes=[pltpu.VMEM((T, D), jnp.float32)],
        ),
        compiler_params=_cparams("parallel", "arbitrary"),
    )(lens, x, src_kv, *ws)


def decoder_embed(onehot, w, b, pe_scaled):
    B, T, V = onehot.shape
    D = w.shape[1]
    return pl.pallas_call(
        _dec_embed_kernel,
        out_shape=jax.ShapeDtypeStruct((B, T, D), jnp.bfloat16),
        grid=(B,),
        in_specs=[
            pl.BlockSpec((1, T, V), lambda i: (i, 0, 0)),
            pl.BlockSpec(w.shape, lambda i: (0, 0)),
            pl.BlockSpec(b.shape, lambda i: (0, 0)),
            pl.BlockSpec(pe_scaled.shape, lambda i: (0, 0)),
        ],
        out_specs=pl.BlockSpec((1, T, D), lambda i: (i, 0, 0)),
        compiler_params=_cparams("parallel"),
    )(onehot, w, b, pe_scaled)


def head_forward(x, lnp, w, b, apply_ln):
    B, T, D = x.shape
    Vp = w.shape[1]
    return pl.pallas_call(
        functools.partial(_head_kernel, apply_ln=apply_ln),
        out_shape=jax.ShapeDtypeStruct((B, T, Vp), jnp.float32),
        grid=(B,),
        in_specs=[
            pl.BlockSpec((1, T, D), lambda i: (i, 0, 0)),
            pl.BlockSpec(lnp.shape, lambda i: (0, 0)),
            pl.BlockSpec(w.shape, lambda i: (0, 0)),
            pl.BlockSpec(b.shape, lambda i: (0, 0)),
        ],
        out_specs=pl.BlockSpec((1, T, Vp), lambda i: (i, 0, 0)),
        compiler_params=_cparams("parallel"),
    )(x, lnp, w, b)


# ----------------------------------------------------------------------------
# Parameter initialization (deterministic, synthetic, layer-stacked)
# ----------------------------------------------------------------------------
def sinusoid_pe(max_len, d_model):
    position = np.arange(max_len)[:, None].astype(np.float32)
    div = np.exp(np.arange(0, d_model, 2).astype(np.float32)
                 * -(math.log(10000.0) / d_model))
    pe = np.zeros((max_len, d_model), np.float32)
    pe[:, 0::2] = np.sin(position * div)
    pe[:, 1::2] = np.cos(position * div)
    return jnp.asarray(pe)


def init_params(key, idim, odim, adim, eunits, dunits, elayers, dlayers,
                aheads, max_len=64):
    keys = iter(jax.random.split(key, 1024))

    def unif(shape, bound):
        return jax.random.uniform(next(keys), shape, jnp.float32, -bound, bound)

    def lin_w(fan_in, fan_out):
        bound = 1.0 / math.sqrt(fan_in)
        return (unif((fan_in, fan_out), bound).astype(jnp.bfloat16),
                unif((1, fan_out), bound))

    def ln():
        return jnp.concatenate([jnp.ones((1, adim), jnp.float32),
                                jnp.zeros((1, adim), jnp.float32)], axis=0)

    def enc_layer():
        wqkv, bqkv = lin_w(adim, 3 * adim)
        wo, bo = lin_w(adim, adim)
        w1, b1 = lin_w(adim, eunits)
        w2, b2 = lin_w(eunits, adim)
        return dict(ln1=ln(), wqkv=wqkv, bqkv=bqkv, wo=wo, bo=bo,
                    ln2=ln(), w1=w1, b1=b1, w2=w2, b2=b2)

    def dec_layer():
        wqkv, bqkv = lin_w(adim, 3 * adim)
        wos, bos = lin_w(adim, adim)
        wq, bq = lin_w(adim, adim)
        wkv_f, bkv_f = lin_w(adim, 2 * adim)
        # split K/V projection so the precompute kernel never lane-slices
        wkv = jnp.stack([wkv_f[:, :adim], wkv_f[:, adim:]], axis=0)   # (2, D, D)
        bkv = jnp.stack([bkv_f[:, :adim], bkv_f[:, adim:]], axis=0)   # (2, 1, D)
        woc, boc = lin_w(adim, adim)
        w1, b1 = lin_w(adim, dunits)
        w2, b2 = lin_w(dunits, adim)
        return dict(ln1=ln(), wqkv=wqkv, bqkv=bqkv, wos=wos, bos=bos,
                    ln2=ln(), wq=wq, bq=bq, wkv=wkv, bkv=bkv, woc=woc, boc=boc,
                    ln3=ln(), w1=w1, b1=b1, w2=w2, b2=b2)

    def stack(layers):
        return {k: jnp.stack([ly[k] for ly in layers], axis=0) for k in layers[0]}

    # vocab heads are padded to a lane-dense width; padded logits get -1e9 bias.
    vpad = ((max(odim, 1) + 127) // 128) * 128

    def head(fan_in):
        bound = 1.0 / math.sqrt(fan_in)
        w = unif((fan_in, odim), bound)
        b = unif((1, odim), bound)
        wp = jnp.zeros((fan_in, vpad), jnp.float32).at[:, :odim].set(w)
        bp = jnp.full((1, vpad), -1e9, jnp.float32).at[:, :odim].set(b)
        return wp.astype(jnp.bfloat16), bp

    in_w, in_b = lin_w(idim, adim)
    emb_w, emb_b = lin_w(odim, adim)
    ctc_w, ctc_b = head(adim)
    out_w, out_b = head(adim)
    pe = sinusoid_pe(max_len, adim)

    encoder = dict(in_w=in_w, in_b=in_b, in_ln=ln(), pe=pe,
                   stack=stack([enc_layer() for _ in range(elayers)]),
                   ln_after=ln())
    decoder = dict(emb_w=emb_w, emb_b=emb_b, alpha=jnp.float32(1.0), pe=pe,
                   stack=stack([dec_layer() for _ in range(dlayers)]),
                   ln_after=ln(), out_w=out_w, out_b=out_b)
    return dict(encoder=encoder, decoder=decoder, ctc_w=ctc_w, ctc_b=ctc_b)


# ----------------------------------------------------------------------------
# CTC loss (log-space forward algorithm) — plain JAX glue inside the jit.
# Accepts lane-padded vocab: only label / blank columns are ever indexed.
# ----------------------------------------------------------------------------
def ctc_loss(log_probs, input_lengths, labels, label_lengths, blank=0):
    B, T, _ = log_probs.shape
    L = labels.shape[1]
    S = 2 * L + 1
    NEG = jnp.float32(-1e30)

    ext = jnp.full((B, S), blank, dtype=jnp.int32)
    ext = ext.at[:, 1::2].set(labels)
    s_idx = jnp.arange(S)[None, :]
    valid_s = s_idx < (2 * label_lengths[:, None] + 1)
    same_as_prev2 = jnp.concatenate(
        [jnp.zeros((B, 2), bool), ext[:, 2:] == ext[:, :-2]], axis=1)
    can_skip = (ext != blank) & (~same_as_prev2)

    lp0 = log_probs[:, 0, :]
    emit0 = jnp.take_along_axis(lp0, ext, axis=1)
    alpha0 = jnp.where(s_idx == 0, emit0, NEG)
    alpha0 = jnp.where((s_idx == 1) & (label_lengths[:, None] > 0), emit0, alpha0)
    alpha0 = jnp.where(valid_s, alpha0, NEG)

    def lse3(a, b, c):
        m = jnp.maximum(jnp.maximum(a, b), c)
        return m + jnp.log(jnp.exp(a - m) + jnp.exp(b - m) + jnp.exp(c - m))

    lp_rest = jnp.transpose(log_probs[:, 1:, :], (1, 0, 2))
    t_rest = jnp.arange(1, T)

    def step(alpha, inp):
        lp, t = inp
        emit = jnp.take_along_axis(lp, ext, axis=1)
        a1 = jnp.concatenate([jnp.full((B, 1), NEG), alpha[:, :-1]], axis=1)
        a2 = jnp.concatenate([jnp.full((B, 2), NEG), alpha[:, :-2]], axis=1)
        a2 = jnp.where(can_skip, a2, NEG)
        new = lse3(alpha, a1, a2) + emit
        new = jnp.where(valid_s, new, NEG)
        new = jnp.where(t < input_lengths[:, None], new, alpha)
        return new, None

    alpha, _ = lax.scan(step, alpha0, (lp_rest, t_rest))
    idx_last = 2 * label_lengths
    idx_prev = jnp.maximum(idx_last - 1, 0)
    a_last = jnp.take_along_axis(alpha, idx_last[:, None], axis=1)[:, 0]
    a_prev = jnp.take_along_axis(alpha, idx_prev[:, None], axis=1)[:, 0]
    a_prev = jnp.where(label_lengths > 0, a_prev, NEG)
    return -jnp.logaddexp(a_last, a_prev)


# ----------------------------------------------------------------------------
# Host-side token-error computation (mirrors calculate_ters / editdistance)
# ----------------------------------------------------------------------------
def _editdistance(a, b):
    la, lb = len(a), len(b)
    dp = list(range(lb + 1))
    for i in range(1, la + 1):
        prev, dp[0] = dp[0], i
        for j in range(1, lb + 1):
            cur = dp[j]
            dp[j] = min(dp[j] + 1, dp[j - 1] + 1, prev + (a[i - 1] != b[j - 1]))
            prev = cur
    return dp[lb]


def calculate_ters(ys_hat, hs_len, ys_pad, idx_blank=0, ignore_id=-1):
    errs, lens, ys_pred = [], [], []
    for i, y in enumerate(ys_hat):
        y_hat = [x[0] for x in groupby(y[: int(hs_len[i])])]
        seq_hat = [int(t) for t in y_hat if int(t) != ignore_id and int(t) != idx_blank]
        seq_true = [int(t) for t in ys_pad[i] if int(t) != ignore_id and int(t) != idx_blank]
        errs.append(_editdistance(seq_true, seq_hat))
        lens.append(len(seq_true))
        ys_pred.append(seq_hat)
    maxlen = max([len(s) for s in ys_pred] + [1])
    pred = np.full((len(ys_pred), maxlen), ignore_id, np.int64)
    for i, s in enumerate(ys_pred):
        pred[i, : len(s)] = s
    return errs, lens, jnp.asarray(pred)


# ----------------------------------------------------------------------------
# Device-side forward (single jit): encoder + CTC + realigner loop
# ----------------------------------------------------------------------------
def _device_forward(params, xs_pad, ilens, labels, ys_len, *, cfg):
    odim = cfg['odim']
    adim = cfg['adim']
    aheads = cfg['aheads']
    num_steps = cfg['num_steps']
    mtlalpha = cfg['mtlalpha']
    beta = cfg['beta']
    B, T, _ = xs_pad.shape

    hs_len = ilens.astype(jnp.int32)
    enc = params['encoder']

    # ---- encoder: input layer + one fused stack kernel (after-norm in last l) ----
    x = encoder_input(xs_pad, enc['in_w'], enc['in_b'], enc['in_ln'],
                      enc['pe'][:T], math.sqrt(adim))
    hs_pad = encoder_stack(x, hs_len, enc['stack'], enc['ln_after'], aheads)

    # ---- CTC head: linear + log_softmax, kept at the 128-padded lane width ----
    ctc_logprob = head_forward(hs_pad, enc['ln_after'], params['ctc_w'],
                               params['ctc_b'], apply_ln=False)

    if mtlalpha > 0:
        loss_ctc = jnp.sum(ctc_loss(ctc_logprob, hs_len, labels, ys_len)) / B
    else:
        loss_ctc = jnp.float32(0.0)

    ys_hat_ctc = jnp.argmax(ctc_logprob, axis=-1).astype(jnp.int32)

    # ---- decoder: step-invariant source-attention K/V computed once ----
    dec = params['decoder']
    src_kv = src_kv_project(hs_pad, dec['stack']['wkv'], dec['stack']['bkv'])
    pe_scaled = dec['alpha'] * dec['pe'][:T]

    # ---- realigner loop (eval branch: hard one-hot of current argmax) ----
    ys_hat = ys_hat_ctc
    loss_realigner = jnp.float32(0.0)
    for _ in range(num_steps):
        onehot = jax.nn.one_hot(ys_hat, odim, dtype=jnp.float32)
        z = decoder_embed(onehot, dec['emb_w'], dec['emb_b'], pe_scaled)
        z = decoder_stack(z, src_kv, hs_len, dec['stack'], aheads)
        logprob = head_forward(z, dec['ln_after'], dec['out_w'], dec['out_b'],
                               apply_ln=True)
        tmp_loss = jnp.sum(ctc_loss(logprob, hs_len, labels, ys_len))
        ys_hat = jnp.argmax(logprob, axis=-1).astype(jnp.int32)
        loss_realigner = loss_realigner + (1.0 / num_steps) * tmp_loss

    loss_masked = jnp.float32(0.0)   # mask_on_forcedalign is False in the reference
    loss = mtlalpha * loss_ctc + (1.0 - mtlalpha) * loss_realigner + beta * loss_masked
    return loss, loss_ctc, loss_realigner, loss_masked, ys_hat_ctc, ys_hat, hs_len


# ----------------------------------------------------------------------------
# E2E forward (eval-mode semantics: no dropout / gumbel / time_mask)
# ----------------------------------------------------------------------------
def e2e_forward(params, xs_pad, ilens, ys_pad, cfg):
    ignore_id = cfg['ignore_id']
    ilens_np = np.asarray(ilens)
    Tmax = int(ilens_np.max())
    xs_pad = jnp.asarray(xs_pad)[:, :Tmax]
    B = xs_pad.shape[0]

    # reference labels (strip ignore_id) — host-side prep, done once
    ys_np = np.asarray(ys_pad)
    ys_list = [y[y != ignore_id] for y in ys_np]
    ys_len_np = np.asarray([len(y) for y in ys_list], np.int32)
    Lmax = max([len(y) for y in ys_list] + [1])
    labels_np = np.zeros((B, Lmax), np.int32)
    for i, y in enumerate(ys_list):
        labels_np[i, : len(y)] = y

    fwd = jax.jit(functools.partial(_device_forward, cfg=cfg))
    (loss, loss_ctc, loss_realigner, loss_masked,
     ys_hat_ctc, ys_hat_final, hs_len) = fwd(
        params, xs_pad, jnp.asarray(ilens_np, dtype=jnp.int32),
        jnp.asarray(labels_np), jnp.asarray(ys_len_np))

    # Single host sync *after* the realigner loop (the reference computes TERs
    # inside the loop but only the last value is returned).
    ys_hat_ctc_np, ys_hat_final_np, hs_len_np = jax.device_get(
        (ys_hat_ctc, ys_hat_final, hs_len))
    err_ctc, _, _ = calculate_ters(ys_hat_ctc_np, hs_len_np, ys_np, 0, ignore_id)
    err_realigner, _, _ = calculate_ters(ys_hat_final_np, hs_len_np, ys_np, 0, ignore_id)

    return (loss, float(loss), float(loss_ctc), float(loss_realigner),
            float(loss_masked), jnp.asarray(err_ctc, jnp.float32),
            jnp.asarray(err_realigner, jnp.float32))


# ----------------------------------------------------------------------------
if __name__ == "__main__":
    key = jax.random.PRNGKey(0)
    k_param, k_x = jax.random.split(key)

    idim, odim = 20, 8
    adim, aheads = 32, 4
    eunits, dunits = 64, 64
    elayers, dlayers = 2, 1

    cfg = dict(num_steps=2, mtlalpha=0.3, beta=0.0, ignore_id=-1,
               odim=odim, adim=adim, aheads=aheads)

    params = init_params(k_param, idim, odim, adim, eunits, dunits,
                         elayers, dlayers, aheads, max_len=64)

    B, Tmax = 2, 16
    xs_pad = jax.random.normal(k_x, (B, Tmax, idim), jnp.float32)
    ilens = np.array([16, 12], np.int32)
    ys_pad = np.array([[1, 3, 2, 4, -1],
                       [2, 5, 1, -1, -1]], np.int64)

    out = e2e_forward(params, xs_pad, ilens, ys_pad, cfg)
    jax.block_until_ready(out[0])
    assert np.isfinite(float(out[0]))
    print("KERNEL_OK")
</pallas_src>

<mosaic_0001>
module attributes {stable_mosaic.version = 11 : i64} {
  func.func @_enc_input_kernel(%arg0: i32, %arg1: memref<1x16x20xf32, #tpu.memory_space<vmem>>, %arg2: memref<20x32xbf16, #tpu.memory_space<vmem>>, %arg3: memref<1x32xf32, #tpu.memory_space<vmem>>, %arg4: memref<2x32xf32, #tpu.memory_space<vmem>>, %arg5: memref<16x32xf32, #tpu.memory_space<vmem>>, %arg6: memref<1x16x32xbf16, #tpu.memory_space<vmem>>) attributes {dimension_semantics = [#tpu.dimension_semantics<parallel>], iteration_bounds = array<i64: 2>, scalar_prefetch = 0 : i64, scratch_operands = 0 : i64, tpu.core_type = #tpu.core_type<tc>, window_params = [{transform_indices = @transform_0, window_bounds = array<i64: 1, 16, 20>}, {pipeline_mode = #tpu.pipeline_mode<synchronous>, transform_indices = @transform_1, window_bounds = array<i64: 20, 32>}, {pipeline_mode = #tpu.pipeline_mode<synchronous>, transform_indices = @transform_2, window_bounds = array<i64: 1, 32>}, {pipeline_mode = #tpu.pipeline_mode<synchronous>, transform_indices = @transform_3, window_bounds = array<i64: 2, 32>}, {pipeline_mode = #tpu.pipeline_mode<synchronous>, transform_indices = @transform_4, window_bounds = array<i64: 16, 32>}, {transform_indices = @transform_5, window_bounds = array<i64: 1, 16, 32>}]} {
    %c0 = arith.constant 0 : index
    %c0_0 = arith.constant 0 : index
    %c0_1 = arith.constant 0 : index
    %0 = vector.load %arg1[%c0, %c0_0, %c0_1] : memref<1x16x20xf32, #tpu.memory_space<vmem>>, vector<1x16x20xf32>
    %1 = vector.shape_cast %0 : vector<1x16x20xf32> to vector<16x20xf32>
    %c0_2 = arith.constant 0 : index
    %c0_3 = arith.constant 0 : index
    %2 = vector.load %arg2[%c0_2, %c0_3] : memref<20x32xbf16, #tpu.memory_space<vmem>>, vector<20x32xbf16>
    %3 = arith.truncf %1 : vector<16x20xf32> to vector<16x20xbf16>
    %cst = arith.constant dense<0.000000e+00> : vector<16x32xf32>
    %4 = tpu.matmul %3, %2, %cst {dimension_numbers = #tpu.dot_dimension_numbers<[1], [0], [0], [1], [0, 0, 1, 1], [], []>} : vector<16x20xbf16>, vector<20x32xbf16>, vector<16x32xf32> -> vector<16x32xf32>
    %c0_4 = arith.constant 0 : index
    %c0_5 = arith.constant 0 : index
    %5 = vector.load %arg3[%c0_4, %c0_5] : memref<1x32xf32, #tpu.memory_space<vmem>>, vector<1x32xf32>
    %6 = vector.broadcast %5 : vector<1x32xf32> to vector<16x32xf32>
    %7 = arith.addf %4, %6 : vector<16x32xf32>
    %c0_6 = arith.constant 0 : index
    %c0_7 = arith.constant 0 : index
    %8 = vector.load %arg4[%c0_6, %c0_7] : memref<2x32xf32, #tpu.memory_space<vmem>>, vector<1x32xf32>
    %c1 = arith.constant 1 : index
    %c0_8 = arith.constant 0 : index
    %9 = vector.load %arg4[%c1, %c0_8] : memref<2x32xf32, #tpu.memory_space<vmem>>, vector<1x32xf32>
    %cst_9 = arith.constant dense<0.000000e+00> : vector<16xf32>
    %10 = vector.multi_reduction <add>, %7, %cst_9 [1] : vector<16x32xf32> to vector<16xf32>
    %11 = vector.shape_cast %10 : vector<16xf32> to vector<16x1xf32>
    %cst_10 = arith.constant 3.200000e+01 : f32
    %12 = vector.broadcast %cst_10 : f32 to vector<16x1xf32>
    %13 = arith.divf %11, %12 : vector<16x1xf32>
    %14 = vector.broadcast %13 : vector<16x1xf32> to vector<16x32xf32>
    %15 = arith.subf %7, %14 : vector<16x32xf32>
    %16 = arith.mulf %15, %15 : vector<16x32xf32>
    %cst_11 = arith.constant dense<0.000000e+00> : vector<16xf32>
    %17 = vector.multi_reduction <add>, %16, %cst_11 [1] : vector<16x32xf32> to vector<16xf32>
    %18 = vector.shape_cast %17 : vector<16xf32> to vector<16x1xf32>
    %cst_12 = arith.constant 3.200000e+01 : f32
    %19 = vector.broadcast %cst_12 : f32 to vector<16x1xf32>
    %20 = arith.divf %18, %19 : vector<16x1xf32>
    %21 = vector.broadcast %13 : vector<16x1xf32> to vector<16x32xf32>
    %22 = arith.subf %7, %21 : vector<16x32xf32>
    %cst_13 = arith.constant 9.99999996E-13 : f32
    %23 = vector.broadcast %cst_13 : f32 to vector<16x1xf32>
    %24 = arith.addf %20, %23 : vector<16x1xf32>
    %25 = math.rsqrt %24 : vector<16x1xf32>
    %26 = vector.broadcast %25 : vector<16x1xf32> to vector<16x32xf32>
    %27 = arith.mulf %22, %26 : vector<16x32xf32>
    %28 = vector.broadcast %8 : vector<1x32xf32> to vector<16x32xf32>
    %29 = arith.mulf %27, %28 : vector<16x32xf32>
    %30 = vector.broadcast %9 : vector<1x32xf32> to vector<16x32xf32>
    %31 = arith.addf %29, %30 : vector<16x32xf32>
    %cst_14 = arith.constant 0.000000e+00 : f32
    %32 = vector.broadcast %cst_14 : f32 to vector<16x32xf32>
    %33 = arith.maximumf %31, %32 : vector<16x32xf32>
    %cst_15 = arith.constant 5.65685415 : f32
    %34 = vector.broadcast %cst_15 : f32 to vector<16x32xf32>
    %35 = arith.mulf %33, %34 : vector<16x32xf32>
    %c0_16 = arith.constant 0 : index
    %c0_17 = arith.constant 0 : index
    %36 = vector.load %arg5[%c0_16, %c0_17] : memref<16x32xf32, #tpu.memory_space<vmem>>, vector<16x32xf32>
    %37 = arith.addf %35, %36 : vector<16x32xf32>
    %38 = arith.truncf %37 : vector<16x32xf32> to vector<16x32xbf16>
    %c0_18 = arith.constant 0 : index
    %c0_19 = arith.constant 0 : index
    %c0_20 = arith.constant 0 : index
    %39 = vector.load %arg6[%c0_18, %c0_19, %c0_20] : memref<1x16x32xbf16, #tpu.memory_space<vmem>>, vector<1x16x32xbf16>
    %40 = vector.shape_cast %39 : vector<1x16x32xbf16> to vector<16x32xbf16>
    %41 = vector.shape_cast %38 : vector<16x32xbf16> to vector<1x16x32xbf16>
    tpu.vector_store %arg6[%c0_18, %c0_19, %c0_20], %41 {strides = array<i32>} : memref<1x16x32xbf16, #tpu.memory_space<vmem>>, vector<1x16x32xbf16>,
    return
  }
  func.func @transform_0(%arg0: i32) -> (i32, i32, i32) {
    %c0_i32 = arith.constant 0 : i32
    %c0_i32_0 = arith.constant 0 : i32
    %c0_i32_1 = arith.constant 0 : i32
    return %arg0, %c0_i32, %c0_i32_0 : i32, i32, i32
  }
  func.func @transform_1(%arg0: i32) -> (i32, i32) {
    %c0_i32 = arith.constant 0 : i32
    %c0_i32_0 = arith.constant 0 : i32
    %c0_i32_1 = arith.constant 0 : i32
    return %c0_i32, %c0_i32_0 : i32, i32
  }
  func.func @transform_2(%arg0: i32) -> (i32, i32) {
    %c0_i32 = arith.constant 0 : i32
    %c0_i32_0 = arith.constant 0 : i32
    %c0_i32_1 = arith.constant 0 : i32
    return %c0_i32, %c0_i32_0 : i32, i32
  }
  func.func @transform_3(%arg0: i32) -> (i32, i32) {
    %c0_i32 = arith.constant 0 : i32
    %c0_i32_0 = arith.constant 0 : i32
    %c0_i32_1 = arith.constant 0 : i32
    return %c0_i32, %c0_i32_0 : i32, i32
  }
  func.func @transform_4(%arg0: i32) -> (i32, i32) {
    %c0_i32 = arith.constant 0 : i32
    %c0_i32_0 = arith.constant 0 : i32
    %c0_i32_1 = arith.constant 0 : i32
    return %c0_i32, %c0_i32_0 : i32, i32
  }
  func.func @transform_5(%arg0: i32) -> (i32, i32, i32) {
    %c0_i32 = arith.constant 0 : i32
    %c0_i32_0 = arith.constant 0 : i32
    %c0_i32_1 = arith.constant 0 : i32
    return %arg0, %c0_i32, %c0_i32_0 : i32, i32, i32
  }
}

module attributes {stable_mosaic.version = 11 : i64} {
  func.func @_head_kernel(%arg0: i32, %arg1: memref<1x16x32xbf16, #tpu.memory_space<vmem>>, %arg2: memref<2x32xf32, #tpu.memory_space<vmem>>, %arg3: memref<32x128xbf16, #tpu.memory_space<vmem>>, %arg4: memref<1x128xf32, #tpu.memory_space<vmem>>, %arg5: memref<1x16x128xf32, #tpu.memory_space<vmem>>) attributes {dimension_semantics = [#tpu.dimension_semantics<parallel>], iteration_bounds = array<i64: 2>, scalar_prefetch = 0 : i64, scratch_operands = 0 : i64, tpu.core_type = #tpu.core_type<tc>, window_params = [{transform_indices = @transform_0, window_bounds = array<i64: 1, 16, 32>}, {pipeline_mode = #tpu.pipeline_mode<synchronous>, transform_indices = @transform_1, window_bounds = array<i64: 2, 32>}, {pipeline_mode = #tpu.pipeline_mode<synchronous>, transform_indices = @transform_2, window_bounds = array<i64: 32, 128>}, {pipeline_mode = #tpu.pipeline_mode<synchronous>, transform_indices = @transform_3, window_bounds = array<i64: 1, 128>}, {transform_indices = @transform_4, window_bounds = array<i64: 1, 16, 128>}]} {
    %c0 = arith.constant 0 : index
    %c0_0 = arith.constant 0 : index
    %c0_1 = arith.constant 0 : index
    %0 = vector.load %arg1[%c0, %c0_0, %c0_1] : memref<1x16x32xbf16, #tpu.memory_space<vmem>>, vector<1x16x32xbf16>
    %1 = vector.shape_cast %0 : vector<1x16x32xbf16> to vector<16x32xbf16>
    %2 = arith.extf %1 : vector<16x32xbf16> to vector<16x32xf32>
    %c0_2 = arith.constant 0 : index
    %c0_3 = arith.constant 0 : index
    %3 = vector.load %arg3[%c0_2, %c0_3] : memref<32x128xbf16, #tpu.memory_space<vmem>>, vector<32x128xbf16>
    %4 = arith.truncf %2 : vector<16x32xf32> to vector<16x32xbf16>
    %cst = arith.constant dense<0.000000e+00> : vector<16x128xf32>
    %5 = tpu.matmul %4, %3, %cst {dimension_numbers = #tpu.dot_dimension_numbers<[1], [0], [0], [1], [0, 0, 1, 1], [], []>} : vector<16x32xbf16>, vector<32x128xbf16>, vector<16x128xf32> -> vector<16x128xf32>
    %c0_4 = arith.constant 0 : index
    %c0_5 = arith.constant 0 : index
    %6 = vector.load %arg4[%c0_4, %c0_5] : memref<1x128xf32, #tpu.memory_space<vmem>>, vector<1x128xf32>
    %7 = vector.broadcast %6 : vector<1x128xf32> to vector<16x128xf32>
    %8 = arith.addf %5, %7 : vector<16x128xf32>
    %cst_6 = arith.constant dense<0xFF800000> : vector<16xf32>
    %9 = vector.multi_reduction <maximumf>, %8, %cst_6 [1] : vector<16x128xf32> to vector<16xf32>
    %10 = vector.shape_cast %9 : vector<16xf32> to vector<16x1xf32>
    %11 = vector.broadcast %10 : vector<16x1xf32> to vector<16x128xf32>
    %12 = arith.subf %8, %11 : vector<16x128xf32>
    %13 = math.exp %12 : vector<16x128xf32>
    %cst_7 = arith.constant dense<0.000000e+00> : vector<16xf32>
    %14 = vector.multi_reduction <add>, %13, %cst_7 [1] : vector<16x128xf32> to vector<16xf32>
    %15 = vector.shape_cast %14 : vector<16xf32> to vector<16x1xf32>
    %16 = math.log %15 : vector<16x1xf32>
    %17 = vector.broadcast %16 : vector<16x1xf32> to vector<16x128xf32>
    %18 = arith.subf %12, %17 : vector<16x128xf32>
    %c0_8 = arith.constant 0 : index
    %c0_9 = arith.constant 0 : index
    %c0_10 = arith.constant 0 : index
    %19 = vector.load %arg5[%c0_8, %c0_9, %c0_10] : memref<1x16x128xf32, #tpu.memory_space<vmem>>, vector<1x16x128xf32>
    %20 = vector.shape_cast %19 : vector<1x16x128xf32> to vector<16x128xf32>
    %21 = vector.shape_cast %18 : vector<16x128xf32> to vector<1x16x128xf32>
    tpu.vector_store %arg5[%c0_8, %c0_9, %c0_10], %21 {strides = array<i32>} : memref<1x16x128xf32, #tpu.memory_space<vmem>>, vector<1x16x128xf32>,
    return
  }
  func.func @transform_0(%arg0: i32) -> (i32, i32, i32) {
    %c0_i32 = arith.constant 0 : i32
    %c0_i32_0 = arith.constant 0 : i32
    %c0_i32_1 = arith.constant 0 : i32
    return %arg0, %c0_i32, %c0_i32_0 : i32, i32, i32
  }
  func.func @transform_1(%arg0: i32) -> (i32, i32) {
    %c0_i32 = arith.constant 0 : i32
    %c0_i32_0 = arith.constant 0 : i32
    %c0_i32_1 = arith.constant 0 : i32
    return %c0_i32, %c0_i32_0 : i32, i32
  }
  func.func @transform_2(%arg0: i32) -> (i32, i32) {
    %c0_i32 = arith.constant 0 : i32
    %c0_i32_0 = arith.constant 0 : i32
    %c0_i32_1 = arith.constant 0 : i32
    return %c0_i32, %c0_i32_0 : i32, i32
  }
  func.func @transform_3(%arg0: i32) -> (i32, i32) {
    %c0_i32 = arith.constant 0 : i32
    %c0_i32_0 = arith.constant 0 : i32
    %c0_i32_1 = arith.constant 0 : i32
    return %c0_i32, %c0_i32_0 : i32, i32
  }
  func.func @transform_4(%arg0: i32) -> (i32, i32, i32) {
    %c0_i32 = arith.constant 0 : i32
    %c0_i32_0 = arith.constant 0 : i32
    %c0_i32_1 = arith.constant 0 : i32
    return %arg0, %c0_i32, %c0_i32_0 : i32, i32, i32
  }
}

module attributes {stable_mosaic.version = 11 : i64} {
  func.func @_enc_stack_kernel(%arg0: i32, %arg1: i32, %arg2: memref<2xi32, #tpu.memory_space<smem>>, %arg3: memref<1x16x32xbf16, #tpu.memory_space<vmem>>, %arg4: memref<1x2x32xf32, #tpu.memory_space<vmem>>, %arg5: memref<1x32x96xbf16, #tpu.memory_space<vmem>>, %arg6: memref<1x1x96xf32, #tpu.memory_space<vmem>>, %arg7: memref<1x32x32xbf16, #tpu.memory_space<vmem>>, %arg8: memref<1x1x32xf32, #tpu.memory_space<vmem>>, %arg9: memref<1x2x32xf32, #tpu.memory_space<vmem>>, %arg10: memref<1x32x64xbf16, #tpu.memory_space<vmem>>, %arg11: memref<1x1x64xf32, #tpu.memory_space<vmem>>, %arg12: memref<1x64x32xbf16, #tpu.memory_space<vmem>>, %arg13: memref<1x1x32xf32, #tpu.memory_space<vmem>>, %arg14: memref<2x32xf32, #tpu.memory_space<vmem>>, %arg15: memref<1x16x32xbf16, #tpu.memory_space<vmem>>, %arg16: memref<16x32xf32, #tpu.memory_space<vmem>>) attributes {dimension_semantics = [#tpu.dimension_semantics<parallel>, #tpu.dimension_semantics<arbitrary>], iteration_bounds = array<i64: 2, 2>, scalar_prefetch = 1 : i64, scratch_operands = 1 : i64, tpu.core_type = #tpu.core_type<tc>, window_params = [{transform_indices = @transform_0, window_bounds = array<i64: 1, 16, 32>}, {transform_indices = @transform_1, window_bounds = array<i64: 1, 2, 32>}, {transform_indices = @transform_2, window_bounds = array<i64: 1, 32, 96>}, {transform_indices = @transform_3, window_bounds = array<i64: 1, 1, 96>}, {transform_indices = @transform_4, window_bounds = array<i64: 1, 32, 32>}, {transform_indices = @transform_5, window_bounds = array<i64: 1, 1, 32>}, {transform_indices = @transform_6, window_bounds = array<i64: 1, 2, 32>}, {transform_indices = @transform_7, window_bounds = array<i64: 1, 32, 64>}, {transform_indices = @transform_8, window_bounds = array<i64: 1, 1, 64>}, {transform_indices = @transform_9, window_bounds = array<i64: 1, 64, 32>}, {transform_indices = @transform_10, window_bounds = array<i64: 1, 1, 32>}, {pipeline_mode = #tpu.pipeline_mode<synchronous>, transform_indices = @transform_11, window_bounds = array<i64: 2, 32>}, {transform_indices = @transform_12, window_bounds = array<i64: 1, 16, 32>}]} {
    %0 = arith.index_cast %arg0 : i32 to index
    %1 = memref.load %arg2[%0] : memref<2xi32, #tpu.memory_space<smem>>
    %2 = tpu.iota {dimensions = array<i32: 1>} : vector<1x16xi32>
    %3 = vector.broadcast %1 : i32 to vector<1x16xi32>
    %4 = arith.cmpi slt, %2, %3 : vector<1x16xi32>
    %c0_i32 = arith.constant 0 : i32
    %5 = arith.cmpi eq, %arg1, %c0_i32 : i32
    %6 = arith.extui %5 : i1 to i32
    %c0_i32_0 = arith.constant 0 : i32
    %7 = arith.cmpi ne, %6, %c0_i32_0 : i32
    scf.if %7 {
      %c0_88 = arith.constant 0 : index
      %c0_89 = arith.constant 0 : index
      %c0_90 = arith.constant 0 : index
      %250 = vector.load %arg3[%c0_88, %c0_89, %c0_90] : memref<1x16x32xbf16, #tpu.memory_space<vmem>>, vector<1x16x32xbf16>
      %251 = vector.shape_cast %250 : vector<1x16x32xbf16> to vector<16x32xbf16>
      %252 = arith.extf %251 : vector<16x32xbf16> to vector<16x32xf32>
      %c0_91 = arith.constant 0 : index
      %c0_92 = arith.constant 0 : index
      %253 = vector.load %arg16[%c0_91, %c0_92] : memref<16x32xf32, #tpu.memory_space<vmem>>, vector<16x32xf32>
      tpu.vector_store %arg16[%c0_91, %c0_92], %252 {strides = array<i32>} : memref<16x32xf32, #tpu.memory_space<vmem>>, vector<16x32xf32>,
    } else {
    }
    %c0 = arith.constant 0 : index
    %c0_1 = arith.constant 0 : index
    %8 = vector.load %arg16[%c0, %c0_1] : memref<16x32xf32, #tpu.memory_space<vmem>>, vector<16x32xf32>
    %c0_2 = arith.constant 0 : index
    %c0_3 = arith.constant 0 : index
    %c0_4 = arith.constant 0 : index
    %9 = vector.load %arg4[%c0_2, %c0_3, %c0_4] : memref<1x2x32xf32, #tpu.memory_space<vmem>>, vector<1x2x32xf32>
    %10 = vector.shape_cast %9 : vector<1x2x32xf32> to vector<2x32xf32>
    %11 = vector.extract_strided_slice %10 {offsets = [0, 0], sizes = [1, 32], strides = [1, 1]} : vector<2x32xf32> to vector<1x32xf32>
    %12 = vector.extract_strided_slice %10 {offsets = [1, 0], sizes = [1, 32], strides = [1, 1]} : vector<2x32xf32> to vector<1x32xf32>
    %cst = arith.constant dense<0.000000e+00> : vector<16xf32>
    %13 = vector.multi_reduction <add>, %8, %cst [1] : vector<16x32xf32> to vector<16xf32>
    %14 = vector.shape_cast %13 : vector<16xf32> to vector<16x1xf32>
    %cst_5 = arith.constant 3.200000e+01 : f32
    %15 = vector.broadcast %cst_5 : f32 to vector<16x1xf32>
    %16 = arith.divf %14, %15 : vector<16x1xf32>
    %17 = vector.broadcast %16 : vector<16x1xf32> to vector<16x32xf32>
    %18 = arith.subf %8, %17 : vector<16x32xf32>
    %19 = arith.mulf %18, %18 : vector<16x32xf32>
    %cst_6 = arith.constant dense<0.000000e+00> : vector<16xf32>
    %20 = vector.multi_reduction <add>, %19, %cst_6 [1] : vector<16x32xf32> to vector<16xf32>
    %21 = vector.shape_cast %20 : vector<16xf32> to vector<16x1xf32>
    %cst_7 = arith.constant 3.200000e+01 : f32
    %22 = vector.broadcast %cst_7 : f32 to vector<16x1xf32>
    %23 = arith.divf %21, %22 : vector<16x1xf32>
    %24 = vector.broadcast %16 : vector<16x1xf32> to vector<16x32xf32>
    %25 = arith.subf %8, %24 : vector<16x32xf32>
    %cst_8 = arith.constant 9.99999996E-13 : f32
    %26 = vector.broadcast %cst_8 : f32 to vector<16x1xf32>
    %27 = arith.addf %23, %26 : vector<16x1xf32>
    %28 = math.rsqrt %27 : vector<16x1xf32>
    %29 = vector.broadcast %28 : vector<16x1xf32> to vector<16x32xf32>
    %30 = arith.mulf %25, %29 : vector<16x32xf32>
    %31 = vector.broadcast %11 : vector<1x32xf32> to vector<16x32xf32>
    %32 = arith.mulf %30, %31 : vector<16x32xf32>
    %33 = vector.broadcast %12 : vector<1x32xf32> to vector<16x32xf32>
    %34 = arith.addf %32, %33 : vector<16x32xf32>
    %c0_9 = arith.constant 0 : index
    %c0_10 = arith.constant 0 : index
    %c0_11 = arith.constant 0 : index
    %35 = vector.load %arg5[%c0_9, %c0_10, %c0_11] : memref<1x32x96xbf16, #tpu.memory_space<vmem>>, vector<1x32x96xbf16>
    %36 = vector.shape_cast %35 : vector<1x32x96xbf16> to vector<32x96xbf16>
    %37 = arith.truncf %34 : vector<16x32xf32> to vector<16x32xbf16>
    %cst_12 = arith.constant dense<0.000000e+00> : vector<16x96xf32>
    %38 = tpu.matmul %37, %36, %cst_12 {dimension_numbers = #tpu.dot_dimension_numbers<[1], [0], [0], [1], [0, 0, 1, 1], [], []>} : vector<16x32xbf16>, vector<32x96xbf16>, vector<16x96xf32> -> vector<16x96xf32>
    %c0_13 = arith.constant 0 : index
    %c0_14 = arith.constant 0 : index
    %c0_15 = arith.constant 0 : index
    %39 = vector.load %arg6[%c0_13, %c0_14, %c0_15] : memref<1x1x96xf32, #tpu.memory_space<vmem>>, vector<1x1x96xf32>
    %40 = vector.shape_cast %39 : vector<1x1x96xf32> to vector<1x96xf32>
    %41 = vector.broadcast %40 : vector<1x96xf32> to vector<16x96xf32>
    %42 = arith.addf %38, %41 : vector<16x96xf32>
    %43 = vector.extract_strided_slice %42 {offsets = [0, 0], sizes = [16, 32], strides = [1, 1]} : vector<16x96xf32> to vector<16x32xf32>
    %44 = vector.extract_strided_slice %42 {offsets = [0, 32], sizes = [16, 32], strides = [1, 1]} : vector<16x96xf32> to vector<16x32xf32>
    %45 = vector.extract_strided_slice %42 {offsets = [0, 64], sizes = [16, 32], strides = [1, 1]} : vector<16x96xf32> to vector<16x32xf32>
    %46 = tpu.iota {dimensions = array<i32: 1>} : vector<1x32xi32>
    %47 = arith.truncf %44 : vector<16x32xf32> to vector<16x32xbf16>
    %48 = tpu.transpose %47, [1, 0] : vector<16x32xbf16> -> vector<32x16xbf16>
    %c0_i32_16 = arith.constant 0 : i32
    %49 = vector.broadcast %c0_i32_16 : i32 to vector<1x32xi32>
    %50 = arith.cmpi sge, %46, %49 : vector<1x32xi32>
    %c8_i32 = arith.constant 8 : i32
    %51 = vector.broadcast %c8_i32 : i32 to vector<1x32xi32>
    %52 = arith.cmpi slt, %46, %51 : vector<1x32xi32>
    %53 = arith.andi %50, %52 : vector<1x32xi1>
    %cst_17 = arith.constant 0.000000e+00 : f32
    %54 = vector.shape_cast %53 : vector<1x32xi1> to vector<1x32xi1>
    %55 = vector.broadcast %54 : vector<1x32xi1> to vector<16x32xi1>
    %56 = vector.broadcast %cst_17 : f32 to vector<16x32xf32>
    %57 = arith.select %55, %43, %56 : vector<16x32xi1>, vector<16x32xf32>
    %58 = arith.truncf %57 : vector<16x32xf32> to vector<16x32xbf16>
    %cst_18 = arith.constant dense<0.000000e+00> : vector<16x16xf32>
    %59 = tpu.matmul %58, %48, %cst_18 {dimension_numbers = #tpu.dot_dimension_numbers<[1], [0], [0], [1], [0, 0, 1, 1], [], []>} : vector<16x32xbf16>, vector<32x16xbf16>, vector<16x16xf32> -> vector<16x16xf32>
    %cst_19 = arith.constant 0.353553385 : f32
    %60 = vector.broadcast %cst_19 : f32 to vector<16x16xf32>
    %61 = arith.mulf %59, %60 : vector<16x16xf32>
    %cst_20 = arith.constant -1.000000e+30 : f32
    %62 = vector.shape_cast %4 : vector<1x16xi1> to vector<1x16xi1>
    %63 = vector.broadcast %62 : vector<1x16xi1> to vector<16x16xi1>
    %64 = vector.broadcast %cst_20 : f32 to vector<16x16xf32>
    %65 = arith.select %63, %61, %64 : vector<16x16xi1>, vector<16x16xf32>
    %cst_21 = arith.constant dense<0xFF800000> : vector<16xf32>
    %66 = vector.multi_reduction <maximumf>, %65, %cst_21 [1] : vector<16x16xf32> to vector<16xf32>
    %67 = vector.shape_cast %66 : vector<16xf32> to vector<16x1xf32>
    %68 = vector.broadcast %67 : vector<16x1xf32> to vector<16x16xf32>
    %69 = arith.subf %65, %68 : vector<16x16xf32>
    %70 = math.exp %69 : vector<16x16xf32>
    %cst_22 = arith.constant dense<0.000000e+00> : vector<16xf32>
    %71 = vector.multi_reduction <add>, %70, %cst_22 [1] : vector<16x16xf32> to vector<16xf32>
    %72 = vector.shape_cast %71 : vector<16xf32> to vector<16x1xf32>
    %73 = tpu.reciprocal %72 {approx = true} : vector<16x1xf32> -> vector<16x1xf32>
    %74 = vector.broadcast %73 : vector<16x1xf32> to vector<16x16xf32>
    %75 = arith.mulf %70, %74 : vector<16x16xf32>
    %76 = arith.truncf %75 : vector<16x16xf32> to vector<16x16xbf16>
    %cst_23 = arith.constant 0.000000e+00 : f32
    %77 = vector.shape_cast %53 : vector<1x32xi1> to vector<1x32xi1>
    %78 = vector.broadcast %77 : vector<1x32xi1> to vector<16x32xi1>
    %79 = vector.broadcast %cst_23 : f32 to vector<16x32xf32>
    %80 = arith.select %78, %45, %79 : vector<16x32xi1>, vector<16x32xf32>
    %81 = arith.truncf %80 : vector<16x32xf32> to vector<16x32xbf16>
    %cst_24 = arith.constant dense<0.000000e+00> : vector<16x32xf32>
    %82 = tpu.matmul %76, %81, %cst_24 {dimension_numbers = #tpu.dot_dimension_numbers<[1], [0], [0], [1], [0, 0, 1, 1], [], []>} : vector<16x16xbf16>, vector<16x32xbf16>, vector<16x32xf32> -> vector<16x32xf32>
    %c8_i32_25 = arith.constant 8 : i32
    %83 = vector.broadcast %c8_i32_25 : i32 to vector<1x32xi32>
    %84 = arith.cmpi sge, %46, %83 : vector<1x32xi32>
    %c16_i32 = arith.constant 16 : i32
    %85 = vector.broadcast %c16_i32 : i32 to vector<1x32xi32>
    %86 = arith.cmpi slt, %46, %85 : vector<1x32xi32>
    %87 = arith.andi %84, %86 : vector<1x32xi1>
    %cst_26 = arith.constant 0.000000e+00 : f32
    %88 = vector.shape_cast %87 : vector<1x32xi1> to vector<1x32xi1>
    %89 = vector.broadcast %88 : vector<1x32xi1> to vector<16x32xi1>
    %90 = vector.broadcast %cst_26 : f32 to vector<16x32xf32>
    %91 = arith.select %89, %43, %90 : vector<16x32xi1>, vector<16x32xf32>
    %92 = arith.truncf %91 : vector<16x32xf32> to vector<16x32xbf16>
    %cst_27 = arith.constant dense<0.000000e+00> : vector<16x16xf32>
    %93 = tpu.matmul %92, %48, %cst_27 {dimension_numbers = #tpu.dot_dimension_numbers<[1], [0], [0], [1], [0, 0, 1, 1], [], []>} : vector<16x32xbf16>, vector<32x16xbf16>, vector<16x16xf32> -> vector<16x16xf32>
    %cst_28 = arith.constant 0.353553385 : f32
    %94 = vector.broadcast %cst_28 : f32 to vector<16x16xf32>
    %95 = arith.mulf %93, %94 : vector<16x16xf32>
    %cst_29 = arith.constant -1.000000e+30 : f32
    %96 = vector.shape_cast %4 : vector<1x16xi1> to vector<1x16xi1>
    %97 = vector.broadcast %96 : vector<1x16xi1> to vector<16x16xi1>
    %98 = vector.broadcast %cst_29 : f32 to vector<16x16xf32>
    %99 = arith.select %97, %95, %98 : vector<16x16xi1>, vector<16x16xf32>
    %cst_30 = arith.constant dense<0xFF800000> : vector<16xf32>
    %100 = vector.multi_reduction <maximumf>, %99, %cst_30 [1] : vector<16x16xf32> to vector<16xf32>
    %101 = vector.shape_cast %100 : vector<16xf32> to vector<16x1xf32>
    %102 = vector.broadcast %101 : vector<16x1xf32> to vector<16x16xf32>
    %103 = arith.subf %99, %102 : vector<16x16xf32>
    %104 = math.exp %103 : vector<16x16xf32>
    %cst_31 = arith.constant dense<0.000000e+00> : vector<16xf32>
    %105 = vector.multi_reduction <add>, %104, %cst_31 [1] : vector<16x16xf32> to vector<16xf32>
    %106 = vector.shape_cast %105 : vector<16xf32> to vector<16x1xf32>
    %107 = tpu.reciprocal %106 {approx = true} : vector<16x1xf32> -> vector<16x1xf32>
    %108 = vector.broadcast %107 : vector<16x1xf32> to vector<16x16xf32>
    %109 = arith.mulf %104, %108 : vector<16x16xf32>
    %110 = arith.truncf %109 : vector<16x16xf32> to vector<16x16xbf16>
    %cst_32 = arith.constant 0.000000e+00 : f32
    %111 = vector.shape_cast %87 : vector<1x32xi1> to vector<1x32xi1>
    %112 = vector.broadcast %111 : vector<1x32xi1> to vector<16x32xi1>
    %113 = vector.broadcast %cst_32 : f32 to vector<16x32xf32>
    %114 = arith.select %112, %45, %113 : vector<16x32xi1>, vector<16x32xf32>
    %115 = arith.truncf %114 : vector<16x32xf32> to vector<16x32xbf16>
    %cst_33 = arith.constant dense<0.000000e+00> : vector<16x32xf32>
    %116 = tpu.matmul %110, %115, %cst_33 {dimension_numbers = #tpu.dot_dimension_numbers<[1], [0], [0], [1], [0, 0, 1, 1], [], []>} : vector<16x16xbf16>, vector<16x32xbf16>, vector<16x32xf32> -> vector<16x32xf32>
    %117 = arith.addf %82, %116 : vector<16x32xf32>
    %c16_i32_34 = arith.constant 16 : i32
    %118 = vector.broadcast %c16_i32_34 : i32 to vector<1x32xi32>
    %119 = arith.cmpi sge, %46, %118 : vector<1x32xi32>
    %c24_i32 = arith.constant 24 : i32
    %120 = vector.broadcast %c24_i32 : i32 to vector<1x32xi32>
    %121 = arith.cmpi slt, %46, %120 : vector<1x32xi32>
    %122 = arith.andi %119, %121 : vector<1x32xi1>
    %cst_35 = arith.constant 0.000000e+00 : f32
    %123 = vector.shape_cast %122 : vector<1x32xi1> to vector<1x32xi1>
    %124 = vector.broadcast %123 : vector<1x32xi1> to vector<16x32xi1>
    %125 = vector.broadcast %cst_35 : f32 to vector<16x32xf32>
    %126 = arith.select %124, %43, %125 : vector<16x32xi1>, vector<16x32xf32>
    %127 = arith.truncf %126 : vector<16x32xf32> to vector<16x32xbf16>
    %cst_36 = arith.constant dense<0.000000e+00> : vector<16x16xf32>
    %128 = tpu.matmul %127, %48, %cst_36 {dimension_numbers = #tpu.dot_dimension_numbers<[1], [0], [0], [1], [0, 0, 1, 1], [], []>} : vector<16x32xbf16>, vector<32x16xbf16>, vector<16x16xf32> -> vector<16x16xf32>
    %cst_37 = arith.constant 0.353553385 : f32
    %129 = vector.broadcast %cst_37 : f32 to vector<16x16xf32>
    %130 = arith.mulf %128, %129 : vector<16x16xf32>
    %cst_38 = arith.constant -1.000000e+30 : f32
    %131 = vector.shape_cast %4 : vector<1x16xi1> to vector<1x16xi1>
    %132 = vector.broadcast %131 : vector<1x16xi1> to vector<16x16xi1>
    %133 = vector.broadcast %cst_38 : f32 to vector<16x16xf32>
    %134 = arith.select %132, %130, %133 : vector<16x16xi1>, vector<16x16xf32>
    %cst_39 = arith.constant dense<0xFF800000> : vector<16xf32>
    %135 = vector.multi_reduction <maximumf>, %134, %cst_39 [1] : vector<16x16xf32> to vector<16xf32>
    %136 = vector.shape_cast %135 : vector<16xf32> to vector<16x1xf32>
    %137 = vector.broadcast %136 : vector<16x1xf32> to vector<16x16xf32>
    %138 = arith.subf %134, %137 : vector<16x16xf32>
    %139 = math.exp %138 : vector<16x16xf32>
    %cst_40 = arith.constant dense<0.000000e+00> : vector<16xf32>
    %140 = vector.multi_reduction <add>, %139, %cst_40 [1] : vector<16x16xf32> to vector<16xf32>
    %141 = vector.shape_cast %140 : vector<16xf32> to vector<16x1xf32>
    %142 = tpu.reciprocal %141 {approx = true} : vector<16x1xf32> -> vector<16x1xf32>
    %143 = vector.broadcast %142 : vector<16x1xf32> to vector<16x16xf32>
    %144 = arith.mulf %139, %143 : vector<16x16xf32>
    %145 = arith.truncf %144 : vector<16x16xf32> to vector<16x16xbf16>
    %cst_41 = arith.constant 0.000000e+00 : f32
    %146 = vector.shape_cast %122 : vector<1x32xi1> to vector<1x32xi1>
    %147 = vector.broadcast %146 : vector<1x32xi1> to vector<16x32xi1>
    %148 = vector.broadcast %cst_41 : f32 to vector<16x32xf32>
    %149 = arith.select %147, %45, %148 : vector<16x32xi1>, vector<16x32xf32>
    %150 = arith.truncf %149 : vector<16x32xf32> to vector<16x32xbf16>
    %cst_42 = arith.constant dense<0.000000e+00> : vector<16x32xf32>
    %151 = tpu.matmul %145, %150, %cst_42 {dimension_numbers = #tpu.dot_dimension_numbers<[1], [0], [0], [1], [0, 0, 1, 1], [], []>} : vector<16x16xbf16>, vector<16x32xbf16>, vector<16x32xf32> -> vector<16x32xf32>
    %152 = arith.addf %117, %151 : vector<16x32xf32>
    %c24_i32_43 = arith.constant 24 : i32
    %153 = vector.broadcast %c24_i32_43 : i32 to vector<1x32xi32>
    %154 = arith.cmpi sge, %46, %153 : vector<1x32xi32>
    %c32_i32 = arith.constant 32 : i32
    %155 = vector.broadcast %c32_i32 : i32 to vector<1x32xi32>
    %156 = arith.cmpi slt, %46, %155 : vector<1x32xi32>
    %157 = arith.andi %154, %156 : vector<1x32xi1>
    %cst_44 = arith.constant 0.000000e+00 : f32
    %158 = vector.shape_cast %157 : vector<1x32xi1> to vector<1x32xi1>
    %159 = vector.broadcast %158 : vector<1x32xi1> to vector<16x32xi1>
    %160 = vector.broadcast %cst_44 : f32 to vector<16x32xf32>
    %161 = arith.select %159, %43, %160 : vector<16x32xi1>, vector<16x32xf32>
    %162 = arith.truncf %161 : vector<16x32xf32> to vector<16x32xbf16>
    %cst_45 = arith.constant dense<0.000000e+00> : vector<16x16xf32>
    %163 = tpu.matmul %162, %48, %cst_45 {dimension_numbers = #tpu.dot_dimension_numbers<[1], [0], [0], [1], [0, 0, 1, 1], [], []>} : vector<16x32xbf16>, vector<32x16xbf16>, vector<16x16xf32> -> vector<16x16xf32>
    %cst_46 = arith.constant 0.353553385 : f32
    %164 = vector.broadcast %cst_46 : f32 to vector<16x16xf32>
    %165 = arith.mulf %163, %164 : vector<16x16xf32>
    %cst_47 = arith.constant -1.000000e+30 : f32
    %166 = vector.shape_cast %4 : vector<1x16xi1> to vector<1x16xi1>
    %167 = vector.broadcast %166 : vector<1x16xi1> to vector<16x16xi1>
    %168 = vector.broadcast %cst_47 : f32 to vector<16x16xf32>
    %169 = arith.select %167, %165, %168 : vector<16x16xi1>, vector<16x16xf32>
    %cst_48 = arith.constant dense<0xFF800000> : vector<16xf32>
    %170 = vector.multi_reduction <maximumf>, %169, %cst_48 [1] : vector<16x16xf32> to vector<16xf32>
    %171 = vector.shape_cast %170 : vector<16xf32> to vector<16x1xf32>
    %172 = vector.broadcast %171 : vector<16x1xf32> to vector<16x16xf32>
    %173 = arith.subf %169, %172 : vector<16x16xf32>
    %174 = math.exp %173 : vector<16x16xf32>
    %cst_49 = arith.constant dense<0.000000e+00> : vector<16xf32>
    %175 = vector.multi_reduction <add>, %174, %cst_49 [1] : vector<16x16xf32> to vector<16xf32>
    %176 = vector.shape_cast %175 : vector<16xf32> to vector<16x1xf32>
    %177 = tpu.reciprocal %176 {approx = true} : vector<16x1xf32> -> vector<16x1xf32>
    %178 = vector.broadcast %177 : vector<16x1xf32> to vector<16x16xf32>
    %179 = arith.mulf %174, %178 : vector<16x16xf32>
    %180 = arith.truncf %179 : vector<16x16xf32> to vector<16x16xbf16>
    %cst_50 = arith.constant 0.000000e+00 : f32
    %181 = vector.shape_cast %157 : vector<1x32xi1> to vector<1x32xi1>
    %182 = vector.broadcast %181 : vector<1x32xi1> to vector<16x32xi1>
    %183 = vector.broadcast %cst_50 : f32 to vector<16x32xf32>
    %184 = arith.select %182, %45, %183 : vector<16x32xi1>, vector<16x32xf32>
    %185 = arith.truncf %184 : vector<16x32xf32> to vector<16x32xbf16>
    %cst_51 = arith.constant dense<0.000000e+00> : vector<16x32xf32>
    %186 = tpu.matmul %180, %185, %cst_51 {dimension_numbers = #tpu.dot_dimension_numbers<[1], [0], [0], [1], [0, 0, 1, 1], [], []>} : vector<16x16xbf16>, vector<16x32xbf16>, vector<16x32xf32> -> vector<16x32xf32>
    %187 = arith.addf %152, %186 : vector<16x32xf32>
    %c0_52 = arith.constant 0 : index
    %c0_53 = arith.constant 0 : index
    %c0_54 = arith.constant 0 : index
    %188 = vector.load %arg7[%c0_52, %c0_53, %c0_54] : memref<1x32x32xbf16, #tpu.memory_space<vmem>>, vector<1x32x32xbf16>
    %189 = vector.shape_cast %188 : vector<1x32x32xbf16> to vector<32x32xbf16>
    %190 = arith.truncf %187 : vector<16x32xf32> to vector<16x32xbf16>
    %cst_55 = arith.constant dense<0.000000e+00> : vector<16x32xf32>
    %191 = tpu.matmul %190, %189, %cst_55 {dimension_numbers = #tpu.dot_dimension_numbers<[1], [0], [0], [1], [0, 0, 1, 1], [], []>} : vector<16x32xbf16>, vector<32x32xbf16>, vector<16x32xf32> -> vector<16x32xf32>
    %192 = arith.addf %8, %191 : vector<16x32xf32>
    %c0_56 = arith.constant 0 : index
    %c0_57 = arith.constant 0 : index
    %c0_58 = arith.constant 0 : index
    %193 = vector.load %arg8[%c0_56, %c0_57, %c0_58] : memref<1x1x32xf32, #tpu.memory_space<vmem>>, vector<1x1x32xf32>
    %194 = vector.shape_cast %193 : vector<1x1x32xf32> to vector<1x32xf32>
    %195 = vector.broadcast %194 : vector<1x32xf32> to vector<16x32xf32>
    %196 = arith.addf %192, %195 : vector<16x32xf32>
    %c0_59 = arith.constant 0 : index
    %c0_60 = arith.constant 0 : index
    %c0_61 = arith.constant 0 : index
    %197 = vector.load %arg9[%c0_59, %c0_60, %c0_61] : memref<1x2x32xf32, #tpu.memory_space<vmem>>, vector<1x2x32xf32>
    %198 = vector.shape_cast %197 : vector<1x2x32xf32> to vector<2x32xf32>
    %199 = vector.extract_strided_slice %198 {offsets = [0, 0], sizes = [1, 32], strides = [1, 1]} : vector<2x32xf32> to vector<1x32xf32>
    %200 = vector.extract_strided_slice %198 {offsets = [1, 0], sizes = [1, 32], strides = [1, 1]} : vector<2x32xf32> to vector<1x32xf32>
    %cst_62 = arith.constant dense<0.000000e+00> : vector<16xf32>
    %201 = vector.multi_reduction <add>, %196, %cst_62 [1] : vector<16x32xf32> to vector<16xf32>
    %202 = vector.shape_cast %201 : vector<16xf32> to vector<16x1xf32>
    %cst_63 = arith.constant 3.200000e+01 : f32
    %203 = vector.broadcast %cst_63 : f32 to vector<16x1xf32>
    %204 = arith.divf %202, %203 : vector<16x1xf32>
    %205 = vector.broadcast %204 : vector<16x1xf32> to vector<16x32xf32>
    %206 = arith.subf %196, %205 : vector<16x32xf32>
    %207 = arith.mulf %206, %206 : vector<16x32xf32>
    %cst_64 = arith.constant dense<0.000000e+00> : vector<16xf32>
    %208 = vector.multi_reduction <add>, %207, %cst_64 [1] : vector<16x32xf32> to vector<16xf32>
    %209 = vector.shape_cast %208 : vector<16xf32> to vector<16x1xf32>
    %cst_65 = arith.constant 3.200000e+01 : f32
    %210 = vector.broadcast %cst_65 : f32 to vector<16x1xf32>
    %211 = arith.divf %209, %210 : vector<16x1xf32>
    %212 = vector.broadcast %204 : vector<16x1xf32> to vector<16x32xf32>
    %213 = arith.subf %196, %212 : vector<16x32xf32>
    %cst_66 = arith.constant 9.99999996E-13 : f32
    %214 = vector.broadcast %cst_66 : f32 to vector<16x1xf32>
    %215 = arith.addf %211, %214 : vector<16x1xf32>
    %216 = math.rsqrt %215 : vector<16x1xf32>
    %217 = vector.broadcast %216 : vector<16x1xf32> to vector<16x32xf32>
    %218 = arith.mulf %213, %217 : vector<16x32xf32>
    %219 = vector.broadcast %199 : vector<1x32xf32> to vector<16x32xf32>
    %220 = arith.mulf %218, %219 : vector<16x32xf32>
    %221 = vector.broadcast %200 : vector<1x32xf32> to vector<16x32xf32>
    %222 = arith.addf %220, %221 : vector<16x32xf32>
    %c0_67 = arith.constant 0 : index
    %c0_68 = arith.constant 0 : index
    %c0_69 = arith.constant 0 : index
    %223 = vector.load %arg10[%c0_67, %c0_68, %c0_69] : memref<1x32x64xbf16, #tpu.memory_space<vmem>>, vector<1x32x64xbf16>
    %224 = vector.shape_cast %223 : vector<1x32x64xbf16> to vector<32x64xbf16>
    %225 = arith.truncf %222 : vector<16x32xf32> to vector<16x32xbf16>
    %cst_70 = arith.constant dense<0.000000e+00> : vector<16x64xf32>
    %226 = tpu.matmul %225, %224, %cst_70 {dimension_numbers = #tpu.dot_dimension_numbers<[1], [0], [0], [1], [0, 0, 1, 1], [], []>} : vector<16x32xbf16>, vector<32x64xbf16>, vector<16x64xf32> -> vector<16x64xf32>
    %c0_71 = arith.constant 0 : index
    %c0_72 = arith.constant 0 : index
    %c0_73 = arith.constant 0 : index
    %227 = vector.load %arg11[%c0_71, %c0_72, %c0_73] : memref<1x1x64xf32, #tpu.memory_space<vmem>>, vector<1x1x64xf32>
    %228 = vector.shape_cast %227 : vector<1x1x64xf32> to vector<1x64xf32>
    %229 = vector.broadcast %228 : vector<1x64xf32> to vector<16x64xf32>
    %230 = arith.addf %226, %229 : vector<16x64xf32>
    %cst_74 = arith.constant 0.000000e+00 : f32
    %231 = vector.broadcast %cst_74 : f32 to vector<16x64xf32>
    %232 = arith.maximumf %230, %231 : vector<16x64xf32>
    %c0_75 = arith.constant 0 : index
    %c0_76 = arith.constant 0 : index
    %c0_77 = arith.constant 0 : index
    %233 = vector.load %arg12[%c0_75, %c0_76, %c0_77] : memref<1x64x32xbf16, #tpu.memory_space<vmem>>, vector<1x64x32xbf16>
    %234 = vector.shape_cast %233 : vector<1x64x32xbf16> to vector<64x32xbf16>
    %235 = arith.truncf %232 : vector<16x64xf32> to vector<16x64xbf16>
    %cst_78 = arith.constant dense<0.000000e+00> : vector<16x32xf32>
    %236 = tpu.matmul %235, %234, %cst_78 {dimension_numbers = #tpu.dot_dimension_numbers<[1], [0], [0], [1], [0, 0, 1, 1], [], []>} : vector<16x64xbf16>, vector<64x32xbf16>, vector<16x32xf32> -> vector<16x32xf32>
    %237 = arith.addf %196, %236 : vector<16x32xf32>
    %c0_79 = arith.constant 0 : index
    %c0_80 = arith.constant 0 : index
    %c0_81 = arith.constant 0 : index
    %238 = vector.load %arg13[%c0_79, %c0_80, %c0_81] : memref<1x1x32xf32, #tpu.memory_space<vmem>>, vector<1x1x32xf32>
    %239 = vector.shape_cast %238 : vector<1x1x32xf32> to vector<1x32xf32>
    %240 = vector.broadcast %239 : vector<1x32xf32> to vector<16x32xf32>
    %241 = arith.addf %237, %240 : vector<16x32xf32>
    %c0_82 = arith.constant 0 : index
    %c0_83 = arith.constant 0 : index
    %242 = vector.load %arg16[%c0_82, %c0_83] : memref<16x32xf32, #tpu.memory_space<vmem>>, vector<16x32xf32>
    tpu.vector_store %arg16[%c0_82, %c0_83], %241 {strides = array<i32>} : memref<16x32xf32, #tpu.memory_space<vmem>>, vector<16x32xf32>,
    %243 = arith.truncf %241 : vector<16x32xf32> to vector<16x32xbf16>
    %c0_84 = arith.constant 0 : index
    %c0_85 = arith.constant 0 : index
    %c0_86 = arith.constant 0 : index
    %244 = vector.load %arg15[%c0_84, %c0_85, %c0_86] : memref<1x16x32xbf16, #tpu.memory_space<vmem>>, vector<1x16x32xbf16>
    %245 = vector.shape_cast %244 : vector<1x16x32xbf16> to vector<16x32xbf16>
    %246 = vector.shape_cast %243 : vector<16x32xbf16> to vector<1x16x32xbf16>
    tpu.vector_store %arg15[%c0_84, %c0_85, %c0_86], %246 {strides = array<i32>} : memref<1x16x32xbf16, #tpu.memory_space<vmem>>, vector<1x16x32xbf16>,
    %c1_i32 = arith.constant 1 : i32
    %247 = arith.cmpi eq, %arg1, %c1_i32 : i32
    %248 = arith.extui %247 : i1 to i32
    %c0_i32_87 = arith.constant 0 : i32
    %249 = arith.cmpi ne, %248, %c0_i32_87 : i32
    scf.if %249 {
      %c0_88 = arith.constant 0 : index
      %c0_89 = arith.constant 0 : index
      %250 = vector.load %arg14[%c0_88, %c0_89] : memref<2x32xf32, #tpu.memory_space<vmem>>, vector<1x32xf32>
      %c1 = arith.constant 1 : index
      %c0_90 = arith.constant 0 : index
      %251 = vector.load %arg14[%c1, %c0_90] : memref<2x32xf32, #tpu.memory_space<vmem>>, vector<1x32xf32>
      %cst_91 = arith.constant dense<0.000000e+00> : vector<16xf32>
      %252 = vector.multi_reduction <add>, %241, %cst_91 [1] : vector<16x32xf32> to vector<16xf32>
      %253 = vector.shape_cast %252 : vector<16xf32> to vector<16x1xf32>
      %cst_92 = arith.constant 3.200000e+01 : f32
      %254 = vector.broadcast %cst_92 : f32 to vector<16x1xf32>
      %255 = arith.divf %253, %254 : vector<16x1xf32>
      %256 = vector.broadcast %255 : vector<16x1xf32> to vector<16x32xf32>
      %257 = arith.subf %241, %256 : vector<16x32xf32>
      %258 = arith.mulf %257, %257 : vector<16x32xf32>
      %cst_93 = arith.constant dense<0.000000e+00> : vector<16xf32>
      %259 = vector.multi_reduction <add>, %258, %cst_93 [1] : vector<16x32xf32> to vector<16xf32>
      %260 = vector.shape_cast %259 : vector<16xf32> to vector<16x1xf32>
      %cst_94 = arith.constant 3.200000e+01 : f32
      %261 = vector.broadcast %cst_94 : f32 to vector<16x1xf32>
      %262 = arith.divf %260, %261 : vector<16x1xf32>
      %263 = vector.broadcast %255 : vector<16x1xf32> to vector<16x32xf32>
      %264 = arith.subf %241, %263 : vector<16x32xf32>
      %cst_95 = arith.constant 9.99999996E-13 : f32
      %265 = vector.broadcast %cst_95 : f32 to vector<16x1xf32>
      %266 = arith.addf %262, %265 : vector<16x1xf32>
      %267 = math.rsqrt %266 : vector<16x1xf32>
      %268 = vector.broadcast %267 : vector<16x1xf32> to vector<16x32xf32>
      %269 = arith.mulf %264, %268 : vector<16x32xf32>
      %270 = vector.broadcast %250 : vector<1x32xf32> to vector<16x32xf32>
      %271 = arith.mulf %269, %270 : vector<16x32xf32>
      %272 = vector.broadcast %251 : vector<1x32xf32> to vector<16x32xf32>
      %273 = arith.addf %271, %272 : vector<16x32xf32>
      %274 = arith.truncf %273 : vector<16x32xf32> to vector<16x32xbf16>
      %c0_96 = arith.constant 0 : index
      %c0_97 = arith.constant 0 : index
      %c0_98 = arith.constant 0 : index
      %275 = vector.load %arg15[%c0_96, %c0_97, %c0_98] : memref<1x16x32xbf16, #tpu.memory_space<vmem>>, vector<1x16x32xbf16>
      %276 = vector.shape_cast %275 : vector<1x16x32xbf16> to vector<16x32xbf16>
      %277 = vector.shape_cast %274 : vector<16x32xbf16> to vector<1x16x32xbf16>
      tpu.vector_store %arg15[%c0_96, %c0_97, %c0_98], %277 {strides = array<i32>} : memref<1x16x32xbf16, #tpu.memory_space<vmem>>, vector<1x16x32xbf16>,
    } else {
    }
    return
  }
  func.func @transform_0(%arg0: i32, %arg1: i32, %arg2: memref<2xi32, #tpu.memory_space<smem>>) -> (i32, i32, i32) {
    %c0_i32 = arith.constant 0 : i32
    %c0_i32_0 = arith.constant 0 : i32
    %c0_i32_1 = arith.constant 0 : i32
    return %arg0, %c0_i32, %c0_i32_0 : i32, i32, i32
  }
  func.func @transform_1(%arg0: i32, %arg1: i32, %arg2: memref<2xi32, #tpu.memory_space<smem>>) -> (i32, i32, i32) {
    %c0_i32 = arith.constant 0 : i32
    %c0_i32_0 = arith.constant 0 : i32
    %c0_i32_1 = arith.constant 0 : i32
    return %arg1, %c0_i32, %c0_i32_0 : i32, i32, i32
  }
  func.func @transform_2(%arg0: i32, %arg1: i32, %arg2: memref<2xi32, #tpu.memory_space<smem>>) -> (i32, i32, i32) {
    %c0_i32 = arith.constant 0 : i32
    %c0_i32_0 = arith.constant 0 : i32
    %c0_i32_1 = arith.constant 0 : i32
    return %arg1, %c0_i32, %c0_i32_0 : i32, i32, i32
  }
  func.func @transform_3(%arg0: i32, %arg1: i32, %arg2: memref<2xi32, #tpu.memory_space<smem>>) -> (i32, i32, i32) {
    %c0_i32 = arith.constant 0 : i32
    %c0_i32_0 = arith.constant 0 : i32
    %c0_i32_1 = arith.constant 0 : i32
    return %arg1, %c0_i32, %c0_i32_0 : i32, i32, i32
  }
  func.func @transform_4(%arg0: i32, %arg1: i32, %arg2: memref<2xi32, #tpu.memory_space<smem>>) -> (i32, i32, i32) {
    %c0_i32 = arith.constant 0 : i32
    %c0_i32_0 = arith.constant 0 : i32
    %c0_i32_1 = arith.constant 0 : i32
    return %arg1, %c0_i32, %c0_i32_0 : i32, i32, i32
  }
  func.func @transform_5(%arg0: i32, %arg1: i32, %arg2: memref<2xi32, #tpu.memory_space<smem>>) -> (i32, i32, i32) {
    %c0_i32 = arith.constant 0 : i32
    %c0_i32_0 = arith.constant 0 : i32
    %c0_i32_1 = arith.constant 0 : i32
    return %arg1, %c0_i32, %c0_i32_0 : i32, i32, i32
  }
  func.func @transform_6(%arg0: i32, %arg1: i32, %arg2: memref<2xi32, #tpu.memory_space<smem>>) -> (i32, i32, i32) {
    %c0_i32 = arith.constant 0 : i32
    %c0_i32_0 = arith.constant 0 : i32
    %c0_i32_1 = arith.constant 0 : i32
    return %arg1, %c0_i32, %c0_i32_0 : i32, i32, i32
  }
  func.func @transform_7(%arg0: i32, %arg1: i32, %arg2: memref<2xi32, #tpu.memory_space<smem>>) -> (i32, i32, i32) {
    %c0_i32 = arith.constant 0 : i32
    %c0_i32_0 = arith.constant 0 : i32
    %c0_i32_1 = arith.constant 0 : i32
    return %arg1, %c0_i32, %c0_i32_0 : i32, i32, i32
  }
  func.func @transform_8(%arg0: i32, %arg1: i32, %arg2: memref<2xi32, #tpu.memory_space<smem>>) -> (i32, i32, i32) {
    %c0_i32 = arith.constant 0 : i32
    %c0_i32_0 = arith.constant 0 : i32
    %c0_i32_1 = arith.constant 0 : i32
    return %arg1, %c0_i32, %c0_i32_0 : i32, i32, i32
  }
  func.func @transform_9(%arg0: i32, %arg1: i32, %arg2: memref<2xi32, #tpu.memory_space<smem>>) -> (i32, i32, i32) {
    %c0_i32 = arith.constant 0 : i32
    %c0_i32_0 = arith.constant 0 : i32
    %c0_i32_1 = arith.constant 0 : i32
    return %arg1, %c0_i32, %c0_i32_0 : i32, i32, i32
  }
  func.func @transform_10(%arg0: i32, %arg1: i32, %arg2: memref<2xi32, #tpu.memory_space<smem>>) -> (i32, i32, i32) {
    %c0_i32 = arith.constant 0 : i32
    %c0_i32_0 = arith.constant 0 : i32
    %c0_i32_1 = arith.constant 0 : i32
    return %arg1, %c0_i32, %c0_i32_0 : i32, i32, i32
  }
  func.func @transform_11(%arg0: i32, %arg1: i32, %arg2: memref<2xi32, #tpu.memory_space<smem>>) -> (i32, i32) {
    %c0_i32 = arith.constant 0 : i32
    %c0_i32_0 = arith.constant 0 : i32
    %c0_i32_1 = arith.constant 0 : i32
    return %c0_i32, %c0_i32_0 : i32, i32
  }
  func.func @transform_12(%arg0: i32, %arg1: i32, %arg2: memref<2xi32, #tpu.memory_space<smem>>) -> (i32, i32, i32) {
    %c0_i32 = arith.constant 0 : i32
    %c0_i32_0 = arith.constant 0 : i32
    %c0_i32_1 = arith.constant 0 : i32
    return %arg0, %c0_i32, %c0_i32_0 : i32, i32, i32
  }
}

module attributes {stable_mosaic.version = 11 : i64} {
  func.func @_src_kv_kernel(%arg0: i32, %arg1: i32, %arg2: memref<1x16x32xbf16, #tpu.memory_space<vmem>>, %arg3: memref<1x2x32x32xbf16, #tpu.memory_space<vmem>>, %arg4: memref<1x2x1x32xf32, #tpu.memory_space<vmem>>, %arg5: memref<1x2x16x32xbf16, #tpu.memory_space<vmem>>) attributes {dimension_semantics = [#tpu.dimension_semantics<parallel>, #tpu.dimension_semantics<parallel>], iteration_bounds = array<i64: 2, 1>, scalar_prefetch = 0 : i64, scratch_operands = 0 : i64, tpu.core_type = #tpu.core_type<tc>, window_params = [{transform_indices = @transform_0, window_bounds = array<i64: 1, 16, 32>}, {transform_indices = @transform_1, window_bounds = array<i64: 1, 2, 32, 32>}, {transform_indices = @transform_2, window_bounds = array<i64: 1, 2, 1, 32>}, {transform_indices = @transform_3, window_bounds = array<i64: 1, 2, 16, 32>}]} {
    %c0 = arith.constant 0 : index
    %c0_0 = arith.constant 0 : index
    %c0_1 = arith.constant 0 : index
    %0 = vector.load %arg2[%c0, %c0_0, %c0_1] : memref<1x16x32xbf16, #tpu.memory_space<vmem>>, vector<1x16x32xbf16>
    %1 = vector.shape_cast %0 : vector<1x16x32xbf16> to vector<16x32xbf16>
    %2 = arith.extf %1 : vector<16x32xbf16> to vector<16x32xf32>
    %c0_2 = arith.constant 0 : index
    %c0_3 = arith.constant 0 : index
    %c0_4 = arith.constant 0 : index
    %c0_5 = arith.constant 0 : index
    %3 = vector.load %arg3[%c0_2, %c0_3, %c0_4, %c0_5] : memref<1x2x32x32xbf16, #tpu.memory_space<vmem>>, vector<1x1x32x32xbf16>
    %4 = vector.shape_cast %3 : vector<1x1x32x32xbf16> to vector<32x32xbf16>
    %5 = arith.truncf %2 : vector<16x32xf32> to vector<16x32xbf16>
    %cst = arith.constant dense<0.000000e+00> : vector<16x32xf32>
    %6 = tpu.matmul %5, %4, %cst {dimension_numbers = #tpu.dot_dimension_numbers<[1], [0], [0], [1], [0, 0, 1, 1], [], []>} : vector<16x32xbf16>, vector<32x32xbf16>, vector<16x32xf32> -> vector<16x32xf32>
    %c0_6 = arith.constant 0 : index
    %c0_7 = arith.constant 0 : index
    %c0_8 = arith.constant 0 : index
    %c0_9 = arith.constant 0 : index
    %7 = vector.load %arg4[%c0_6, %c0_7, %c0_8, %c0_9] : memref<1x2x1x32xf32, #tpu.memory_space<vmem>>, vector<1x1x1x32xf32>
    %8 = vector.shape_cast %7 : vector<1x1x1x32xf32> to vector<1x32xf32>
    %9 = vector.broadcast %8 : vector<1x32xf32> to vector<16x32xf32>
    %10 = arith.addf %6, %9 : vector<16x32xf32>
    %11 = arith.truncf %10 : vector<16x32xf32> to vector<16x32xbf16>
    %c0_10 = arith.constant 0 : index
    %c0_11 = arith.constant 0 : index
    %c0_12 = arith.constant 0 : index
    %c0_13 = arith.constant 0 : index
    %12 = vector.load %arg5[%c0_10, %c0_11, %c0_12, %c0_13] : memref<1x2x16x32xbf16, #tpu.memory_space<vmem>>, vector<1x1x16x32xbf16>
    %13 = vector.shape_cast %12 : vector<1x1x16x32xbf16> to vector<16x32xbf16>
    %14 = vector.shape_cast %11 : vector<16x32xbf16> to vector<1x1x16x32xbf16>
    tpu.vector_store %arg5[%c0_10, %c0_11, %c0_12, %c0_13], %14 {strides = array<i32>} : memref<1x2x16x32xbf16, #tpu.memory_space<vmem>>, vector<1x1x16x32xbf16>,
    %c0_14 = arith.constant 0 : index
    %c1 = arith.constant 1 : index
    %c0_15 = arith.constant 0 : index
    %c0_16 = arith.constant 0 : index
    %15 = vector.load %arg3[%c0_14, %c1, %c0_15, %c0_16] : memref<1x2x32x32xbf16, #tpu.memory_space<vmem>>, vector<1x1x32x32xbf16>
    %16 = vector.shape_cast %15 : vector<1x1x32x32xbf16> to vector<32x32xbf16>
    %17 = arith.truncf %2 : vector<16x32xf32> to vector<16x32xbf16>
    %cst_17 = arith.constant dense<0.000000e+00> : vector<16x32xf32>
    %18 = tpu.matmul %17, %16, %cst_17 {dimension_numbers = #tpu.dot_dimension_numbers<[1], [0], [0], [1], [0, 0, 1, 1], [], []>} : vector<16x32xbf16>, vector<32x32xbf16>, vector<16x32xf32> -> vector<16x32xf32>
    %c0_18 = arith.constant 0 : index
    %c1_19 = arith.constant 1 : index
    %c0_20 = arith.constant 0 : index
    %c0_21 = arith.constant 0 : index
    %19 = vector.load %arg4[%c0_18, %c1_19, %c0_20, %c0_21] : memref<1x2x1x32xf32, #tpu.memory_space<vmem>>, vector<1x1x1x32xf32>
    %20 = vector.shape_cast %19 : vector<1x1x1x32xf32> to vector<1x32xf32>
    %21 = vector.broadcast %20 : vector<1x32xf32> to vector<16x32xf32>
    %22 = arith.addf %18, %21 : vector<16x32xf32>
    %23 = arith.truncf %22 : vector<16x32xf32> to vector<16x32xbf16>
    %c0_22 = arith.constant 0 : index
    %c1_23 = arith.constant 1 : index
    %c0_24 = arith.constant 0 : index
    %c0_25 = arith.constant 0 : index
    %24 = vector.load %arg5[%c0_22, %c1_23, %c0_24, %c0_25] : memref<1x2x16x32xbf16, #tpu.memory_space<vmem>>, vector<1x1x16x32xbf16>
    %25 = vector.shape_cast %24 : vector<1x1x16x32xbf16> to vector<16x32xbf16>
    %26 = vector.shape_cast %23 : vector<16x32xbf16> to vector<1x1x16x32xbf16>
    tpu.vector_store %arg5[%c0_22, %c1_23, %c0_24, %c0_25], %26 {strides = array<i32>} : memref<1x2x16x32xbf16, #tpu.memory_space<vmem>>, vector<1x1x16x32xbf16>,
    return
  }
  func.func @transform_0(%arg0: i32, %arg1: i32) -> (i32, i32, i32) {
    %c0_i32 = arith.constant 0 : i32
    %c0_i32_0 = arith.constant 0 : i32
    %c0_i32_1 = arith.constant 0 : i32
    return %arg0, %c0_i32, %c0_i32_0 : i32, i32, i32
  }
  func.func @transform_1(%arg0: i32, %arg1: i32) -> (i32, i32, i32, i32) {
    %c0_i32 = arith.constant 0 : i32
    %c0_i32_0 = arith.constant 0 : i32
    %c0_i32_1 = arith.constant 0 : i32
    %c0_i32_2 = arith.constant 0 : i32
    return %arg1, %c0_i32, %c0_i32_0, %c0_i32_1 : i32, i32, i32, i32
  }
  func.func @transform_2(%arg0: i32, %arg1: i32) -> (i32, i32, i32, i32) {
    %c0_i32 = arith.constant 0 : i32
    %c0_i32_0 = arith.constant 0 : i32
    %c0_i32_1 = arith.constant 0 : i32
    %c0_i32_2 = arith.constant 0 : i32
    return %arg1, %c0_i32, %c0_i32_0, %c0_i32_1 : i32, i32, i32, i32
  }
  func.func @transform_3(%arg0: i32, %arg1: i32) -> (i32, i32, i32, i32) {
    %c0_i32 = arith.constant 0 : i32
    %c0_i32_0 = arith.constant 0 : i32
    %c0_i32_1 = arith.constant 0 : i32
    return %arg0, %arg1, %c0_i32, %c0_i32_0 : i32, i32, i32, i32
  }
}

module attributes {stable_mosaic.version = 11 : i64} {
  func.func @_dec_embed_kernel(%arg0: i32, %arg1: memref<1x16x8xf32, #tpu.memory_space<vmem>>, %arg2: memref<8x32xbf16, #tpu.memory_space<vmem>>, %arg3: memref<1x32xf32, #tpu.memory_space<vmem>>, %arg4: memref<16x32xf32, #tpu.memory_space<vmem>>, %arg5: memref<1x16x32xbf16, #tpu.memory_space<vmem>>) attributes {dimension_semantics = [#tpu.dimension_semantics<parallel>], iteration_bounds = array<i64: 2>, scalar_prefetch = 0 : i64, scratch_operands = 0 : i64, tpu.core_type = #tpu.core_type<tc>, window_params = [{transform_indices = @transform_0, window_bounds = array<i64: 1, 16, 8>}, {pipeline_mode = #tpu.pipeline_mode<synchronous>, transform_indices = @transform_1, window_bounds = array<i64: 8, 32>}, {pipeline_mode = #tpu.pipeline_mode<synchronous>, transform_indices = @transform_2, window_bounds = array<i64: 1, 32>}, {pipeline_mode = #tpu.pipeline_mode<synchronous>, transform_indices = @transform_3, window_bounds = array<i64: 16, 32>}, {transform_indices = @transform_4, window_bounds = array<i64: 1, 16, 32>}]} {
    %c0 = arith.constant 0 : index
    %c0_0 = arith.constant 0 : index
    %c0_1 = arith.constant 0 : index
    %0 = vector.load %arg1[%c0, %c0_0, %c0_1] : memref<1x16x8xf32, #tpu.memory_space<vmem>>, vector<1x16x8xf32>
    %1 = vector.shape_cast %0 : vector<1x16x8xf32> to vector<16x8xf32>
    %c0_2 = arith.constant 0 : index
    %c0_3 = arith.constant 0 : index
    %2 = vector.load %arg2[%c0_2, %c0_3] : memref<8x32xbf16, #tpu.memory_space<vmem>>, vector<8x32xbf16>
    %3 = arith.truncf %1 : vector<16x8xf32> to vector<16x8xbf16>
    %cst = arith.constant dense<0.000000e+00> : vector<16x32xf32>
    %4 = tpu.matmul %3, %2, %cst {dimension_numbers = #tpu.dot_dimension_numbers<[1], [0], [0], [1], [0, 0, 1, 1], [], []>} : vector<16x8xbf16>, vector<8x32xbf16>, vector<16x32xf32> -> vector<16x32xf32>
    %c0_4 = arith.constant 0 : index
    %c0_5 = arith.constant 0 : index
    %5 = vector.load %arg3[%c0_4, %c0_5] : memref<1x32xf32, #tpu.memory_space<vmem>>, vector<1x32xf32>
    %6 = vector.broadcast %5 : vector<1x32xf32> to vector<16x32xf32>
    %7 = arith.addf %4, %6 : vector<16x32xf32>
    %c0_6 = arith.constant 0 : index
    %c0_7 = arith.constant 0 : index
    %8 = vector.load %arg4[%c0_6, %c0_7] : memref<16x32xf32, #tpu.memory_space<vmem>>, vector<16x32xf32>
    %9 = arith.addf %7, %8 : vector<16x32xf32>
    %10 = arith.truncf %9 : vector<16x32xf32> to vector<16x32xbf16>
    %c0_8 = arith.constant 0 : index
    %c0_9 = arith.constant 0 : index
    %c0_10 = arith.constant 0 : index
    %11 = vector.load %arg5[%c0_8, %c0_9, %c0_10] : memref<1x16x32xbf16, #tpu.memory_space<vmem>>, vector<1x16x32xbf16>
    %12 = vector.shape_cast %11 : vector<1x16x32xbf16> to vector<16x32xbf16>
    %13 = vector.shape_cast %10 : vector<16x32xbf16> to vector<1x16x32xbf16>
    tpu.vector_store %arg5[%c0_8, %c0_9, %c0_10], %13 {strides = array<i32>} : memref<1x16x32xbf16, #tpu.memory_space<vmem>>, vector<1x16x32xbf16>,
    return
  }
  func.func @transform_0(%arg0: i32) -> (i32, i32, i32) {
    %c0_i32 = arith.constant 0 : i32
    %c0_i32_0 = arith.constant 0 : i32
    %c0_i32_1 = arith.constant 0 : i32
    return %arg0, %c0_i32, %c0_i32_0 : i32, i32, i32
  }
  func.func @transform_1(%arg0: i32) -> (i32, i32) {
    %c0_i32 = arith.constant 0 : i32
    %c0_i32_0 = arith.constant 0 : i32
    %c0_i32_1 = arith.constant 0 : i32
    return %c0_i32, %c0_i32_0 : i32, i32
  }
  func.func @transform_2(%arg0: i32) -> (i32, i32) {
    %c0_i32 = arith.constant 0 : i32
    %c0_i32_0 = arith.constant 0 : i32
    %c0_i32_1 = arith.constant 0 : i32
    return %c0_i32, %c0_i32_0 : i32, i32
  }
  func.func @transform_3(%arg0: i32) -> (i32, i32) {
    %c0_i32 = arith.constant 0 : i32
    %c0_i32_0 = arith.constant 0 : i32
    %c0_i32_1 = arith.constant 0 : i32
    return %c0_i32, %c0_i32_0 : i32, i32
  }
  func.func @transform_4(%arg0: i32) -> (i32, i32, i32) {
    %c0_i32 = arith.constant 0 : i32
    %c0_i32_0 = arith.constant 0 : i32
    %c0_i32_1 = arith.constant 0 : i32
    return %arg0, %c0_i32, %c0_i32_0 : i32, i32, i32
  }
}

module attributes {stable_mosaic.version = 11 : i64} {
  func.func @_dec_stack_kernel(%arg0: i32, %arg1: i32, %arg2: memref<2xi32, #tpu.memory_space<smem>>, %arg3: memref<1x16x32xbf16, #tpu.memory_space<vmem>>, %arg4: memref<1x2x16x32xbf16, #tpu.memory_space<vmem>>, %arg5: memref<1x2x32xf32, #tpu.memory_space<vmem>>, %arg6: memref<1x32x96xbf16, #tpu.memory_space<vmem>>, %arg7: memref<1x1x96xf32, #tpu.memory_space<vmem>>, %arg8: memref<1x32x32xbf16, #tpu.memory_space<vmem>>, %arg9: memref<1x1x32xf32, #tpu.memory_space<vmem>>, %arg10: memref<1x2x32xf32, #tpu.memory_space<vmem>>, %arg11: memref<1x32x32xbf16, #tpu.memory_space<vmem>>, %arg12: memref<1x1x32xf32, #tpu.memory_space<vmem>>, %arg13: memref<1x32x32xbf16, #tpu.memory_space<vmem>>, %arg14: memref<1x1x32xf32, #tpu.memory_space<vmem>>, %arg15: memref<1x2x32xf32, #tpu.memory_space<vmem>>, %arg16: memref<1x32x64xbf16, #tpu.memory_space<vmem>>, %arg17: memref<1x1x64xf32, #tpu.memory_space<vmem>>, %arg18: memref<1x64x32xbf16, #tpu.memory_space<vmem>>, %arg19: memref<1x1x32xf32, #tpu.memory_space<vmem>>, %arg20: memref<1x16x32xbf16, #tpu.memory_space<vmem>>, %arg21: memref<16x32xf32, #tpu.memory_space<vmem>>) attributes {dimension_semantics = [#tpu.dimension_semantics<parallel>, #tpu.dimension_semantics<arbitrary>], iteration_bounds = array<i64: 2, 1>, scalar_prefetch = 1 : i64, scratch_operands = 1 : i64, tpu.core_type = #tpu.core_type<tc>, window_params = [{transform_indices = @transform_0, window_bounds = array<i64: 1, 16, 32>}, {transform_indices = @transform_1, window_bounds = array<i64: 1, 2, 16, 32>}, {transform_indices = @transform_2, window_bounds = array<i64: 1, 2, 32>}, {transform_indices = @transform_3, window_bounds = array<i64: 1, 32, 96>}, {transform_indices = @transform_4, window_bounds = array<i64: 1, 1, 96>}, {transform_indices = @transform_5, window_bounds = array<i64: 1, 32, 32>}, {transform_indices = @transform_6, window_bounds = array<i64: 1, 1, 32>}, {transform_indices = @transform_7, window_bounds = array<i64: 1, 2, 32>}, {transform_indices = @transform_8, window_bounds = array<i64: 1, 32, 32>}, {transform_indices = @transform_9, window_bounds = array<i64: 1, 1, 32>}, {transform_indices = @transform_10, window_bounds = array<i64: 1, 32, 32>}, {transform_indices = @transform_11, window_bounds = array<i64: 1, 1, 32>}, {transform_indices = @transform_12, window_bounds = array<i64: 1, 2, 32>}, {transform_indices = @transform_13, window_bounds = array<i64: 1, 32, 64>}, {transform_indices = @transform_14, window_bounds = array<i64: 1, 1, 64>}, {transform_indices = @transform_15, window_bounds = array<i64: 1, 64, 32>}, {transform_indices = @transform_16, window_bounds = array<i64: 1, 1, 32>}, {transform_indices = @transform_17, window_bounds = array<i64: 1, 16, 32>}]} {
    %0 = arith.index_cast %arg0 : i32 to index
    %1 = memref.load %arg2[%0] : memref<2xi32, #tpu.memory_space<smem>>
    %2 = tpu.iota {dimensions = array<i32: 1>} : vector<1x16xi32>
    %3 = vector.broadcast %1 : i32 to vector<1x16xi32>
    %4 = arith.cmpi slt, %2, %3 : vector<1x16xi32>
    %5 = tpu.iota {dimensions = array<i32: 1>} : vector<1x16xi32>
    %6 = vector.broadcast %1 : i32 to vector<1x16xi32>
    %7 = arith.cmpi slt, %5, %6 : vector<1x16xi32>
    %c0_i32 = arith.constant 0 : i32
    %8 = arith.cmpi eq, %arg1, %c0_i32 : i32
    %9 = arith.extui %8 : i1 to i32
    %c0_i32_0 = arith.constant 0 : i32
    %10 = arith.cmpi ne, %9, %c0_i32_0 : i32
    scf.if %10 {
      %c0_156 = arith.constant 0 : index
      %c0_157 = arith.constant 0 : index
      %c0_158 = arith.constant 0 : index
      %438 = vector.load %arg3[%c0_156, %c0_157, %c0_158] : memref<1x16x32xbf16, #tpu.memory_space<vmem>>, vector<1x16x32xbf16>
      %439 = vector.shape_cast %438 : vector<1x16x32xbf16> to vector<16x32xbf16>
      %440 = arith.extf %439 : vector<16x32xbf16> to vector<16x32xf32>
      %c0_159 = arith.constant 0 : index
      %c0_160 = arith.constant 0 : index
      %441 = vector.load %arg21[%c0_159, %c0_160] : memref<16x32xf32, #tpu.memory_space<vmem>>, vector<16x32xf32>
      tpu.vector_store %arg21[%c0_159, %c0_160], %440 {strides = array<i32>} : memref<16x32xf32, #tpu.memory_space<vmem>>, vector<16x32xf32>,
    } else {
    }
    %c0 = arith.constant 0 : index
    %c0_1 = arith.constant 0 : index
    %11 = vector.load %arg21[%c0, %c0_1] : memref<16x32xf32, #tpu.memory_space<vmem>>, vector<16x32xf32>
    %c0_2 = arith.constant 0 : index
    %c0_3 = arith.constant 0 : index
    %c0_4 = arith.constant 0 : index
    %12 = vector.load %arg5[%c0_2, %c0_3, %c0_4] : memref<1x2x32xf32, #tpu.memory_space<vmem>>, vector<1x2x32xf32>
    %13 = vector.shape_cast %12 : vector<1x2x32xf32> to vector<2x32xf32>
    %14 = vector.extract_strided_slice %13 {offsets = [0, 0], sizes = [1, 32], strides = [1, 1]} : vector<2x32xf32> to vector<1x32xf32>
    %15 = vector.extract_strided_slice %13 {offsets = [1, 0], sizes = [1, 32], strides = [1, 1]} : vector<2x32xf32> to vector<1x32xf32>
    %cst = arith.constant dense<0.000000e+00> : vector<16xf32>
    %16 = vector.multi_reduction <add>, %11, %cst [1] : vector<16x32xf32> to vector<16xf32>
    %17 = vector.shape_cast %16 : vector<16xf32> to vector<16x1xf32>
    %cst_5 = arith.constant 3.200000e+01 : f32
    %18 = vector.broadcast %cst_5 : f32 to vector<16x1xf32>
    %19 = arith.divf %17, %18 : vector<16x1xf32>
    %20 = vector.broadcast %19 : vector<16x1xf32> to vector<16x32xf32>
    %21 = arith.subf %11, %20 : vector<16x32xf32>
    %22 = arith.mulf %21, %21 : vector<16x32xf32>
    %cst_6 = arith.constant dense<0.000000e+00> : vector<16xf32>
    %23 = vector.multi_reduction <add>, %22, %cst_6 [1] : vector<16x32xf32> to vector<16xf32>
    %24 = vector.shape_cast %23 : vector<16xf32> to vector<16x1xf32>
    %cst_7 = arith.constant 3.200000e+01 : f32
    %25 = vector.broadcast %cst_7 : f32 to vector<16x1xf32>
    %26 = arith.divf %24, %25 : vector<16x1xf32>
    %27 = vector.broadcast %19 : vector<16x1xf32> to vector<16x32xf32>
    %28 = arith.subf %11, %27 : vector<16x32xf32>
    %cst_8 = arith.constant 9.99999996E-13 : f32
    %29 = vector.broadcast %cst_8 : f32 to vector<16x1xf32>
    %30 = arith.addf %26, %29 : vector<16x1xf32>
    %31 = math.rsqrt %30 : vector<16x1xf32>
    %32 = vector.broadcast %31 : vector<16x1xf32> to vector<16x32xf32>
    %33 = arith.mulf %28, %32 : vector<16x32xf32>
    %34 = vector.broadcast %14 : vector<1x32xf32> to vector<16x32xf32>
    %35 = arith.mulf %33, %34 : vector<16x32xf32>
    %36 = vector.broadcast %15 : vector<1x32xf32> to vector<16x32xf32>
    %37 = arith.addf %35, %36 : vector<16x32xf32>
    %c0_9 = arith.constant 0 : index
    %c0_10 = arith.constant 0 : index
    %c0_11 = arith.constant 0 : index
    %38 = vector.load %arg6[%c0_9, %c0_10, %c0_11] : memref<1x32x96xbf16, #tpu.memory_space<vmem>>, vector<1x32x96xbf16>
    %39 = vector.shape_cast %38 : vector<1x32x96xbf16> to vector<32x96xbf16>
    %40 = arith.truncf %37 : vector<16x32xf32> to vector<16x32xbf16>
    %cst_12 = arith.constant dense<0.000000e+00> : vector<16x96xf32>
    %41 = tpu.matmul %40, %39, %cst_12 {dimension_numbers = #tpu.dot_dimension_numbers<[1], [0], [0], [1], [0, 0, 1, 1], [], []>} : vector<16x32xbf16>, vector<32x96xbf16>, vector<16x96xf32> -> vector<16x96xf32>
    %c0_13 = arith.constant 0 : index
    %c0_14 = arith.constant 0 : index
    %c0_15 = arith.constant 0 : index
    %42 = vector.load %arg7[%c0_13, %c0_14, %c0_15] : memref<1x1x96xf32, #tpu.memory_space<vmem>>, vector<1x1x96xf32>
    %43 = vector.shape_cast %42 : vector<1x1x96xf32> to vector<1x96xf32>
    %44 = vector.broadcast %43 : vector<1x96xf32> to vector<16x96xf32>
    %45 = arith.addf %41, %44 : vector<16x96xf32>
    %46 = vector.extract_strided_slice %45 {offsets = [0, 0], sizes = [16, 32], strides = [1, 1]} : vector<16x96xf32> to vector<16x32xf32>
    %47 = vector.extract_strided_slice %45 {offsets = [0, 32], sizes = [16, 32], strides = [1, 1]} : vector<16x96xf32> to vector<16x32xf32>
    %48 = vector.extract_strided_slice %45 {offsets = [0, 64], sizes = [16, 32], strides = [1, 1]} : vector<16x96xf32> to vector<16x32xf32>
    %49 = tpu.iota {dimensions = array<i32: 1>} : vector<1x32xi32>
    %50 = arith.truncf %47 : vector<16x32xf32> to vector<16x32xbf16>
    %51 = tpu.transpose %50, [1, 0] : vector<16x32xbf16> -> vector<32x16xbf16>
    %c0_i32_16 = arith.constant 0 : i32
    %52 = vector.broadcast %c0_i32_16 : i32 to vector<1x32xi32>
    %53 = arith.cmpi sge, %49, %52 : vector<1x32xi32>
    %c8_i32 = arith.constant 8 : i32
    %54 = vector.broadcast %c8_i32 : i32 to vector<1x32xi32>
    %55 = arith.cmpi slt, %49, %54 : vector<1x32xi32>
    %56 = arith.andi %53, %55 : vector<1x32xi1>
    %cst_17 = arith.constant 0.000000e+00 : f32
    %57 = vector.shape_cast %56 : vector<1x32xi1> to vector<1x32xi1>
    %58 = vector.broadcast %57 : vector<1x32xi1> to vector<16x32xi1>
    %59 = vector.broadcast %cst_17 : f32 to vector<16x32xf32>
    %60 = arith.select %58, %46, %59 : vector<16x32xi1>, vector<16x32xf32>
    %61 = arith.truncf %60 : vector<16x32xf32> to vector<16x32xbf16>
    %cst_18 = arith.constant dense<0.000000e+00> : vector<16x16xf32>
    %62 = tpu.matmul %61, %51, %cst_18 {dimension_numbers = #tpu.dot_dimension_numbers<[1], [0], [0], [1], [0, 0, 1, 1], [], []>} : vector<16x32xbf16>, vector<32x16xbf16>, vector<16x16xf32> -> vector<16x16xf32>
    %cst_19 = arith.constant 0.353553385 : f32
    %63 = vector.broadcast %cst_19 : f32 to vector<16x16xf32>
    %64 = arith.mulf %62, %63 : vector<16x16xf32>
    %cst_20 = arith.constant -1.000000e+30 : f32
    %65 = vector.shape_cast %4 : vector<1x16xi1> to vector<1x16xi1>
    %66 = vector.broadcast %65 : vector<1x16xi1> to vector<16x16xi1>
    %67 = vector.broadcast %cst_20 : f32 to vector<16x16xf32>
    %68 = arith.select %66, %64, %67 : vector<16x16xi1>, vector<16x16xf32>
    %cst_21 = arith.constant dense<0xFF800000> : vector<16xf32>
    %69 = vector.multi_reduction <maximumf>, %68, %cst_21 [1] : vector<16x16xf32> to vector<16xf32>
    %70 = vector.shape_cast %69 : vector<16xf32> to vector<16x1xf32>
    %71 = vector.broadcast %70 : vector<16x1xf32> to vector<16x16xf32>
    %72 = arith.subf %68, %71 : vector<16x16xf32>
    %73 = math.exp %72 : vector<16x16xf32>
    %cst_22 = arith.constant dense<0.000000e+00> : vector<16xf32>
    %74 = vector.multi_reduction <add>, %73, %cst_22 [1] : vector<16x16xf32> to vector<16xf32>
    %75 = vector.shape_cast %74 : vector<16xf32> to vector<16x1xf32>
    %76 = tpu.reciprocal %75 {approx = true} : vector<16x1xf32> -> vector<16x1xf32>
    %77 = vector.broadcast %76 : vector<16x1xf32> to vector<16x16xf32>
    %78 = arith.mulf %73, %77 : vector<16x16xf32>
    %79 = arith.truncf %78 : vector<16x16xf32> to vector<16x16xbf16>
    %cst_23 = arith.constant 0.000000e+00 : f32
    %80 = vector.shape_cast %56 : vector<1x32xi1> to vector<1x32xi1>
    %81 = vector.broadcast %80 : vector<1x32xi1> to vector<16x32xi1>
    %82 = vector.broadcast %cst_23 : f32 to vector<16x32xf32>
    %83 = arith.select %81, %48, %82 : vector<16x32xi1>, vector<16x32xf32>
    %84 = arith.truncf %83 : vector<16x32xf32> to vector<16x32xbf16>
    %cst_24 = arith.constant dense<0.000000e+00> : vector<16x32xf32>
    %85 = tpu.matmul %79, %84, %cst_24 {dimension_numbers = #tpu.dot_dimension_numbers<[1], [0], [0], [1], [0, 0, 1, 1], [], []>} : vector<16x16xbf16>, vector<16x32xbf16>, vector<16x32xf32> -> vector<16x32xf32>
    %c8_i32_25 = arith.constant 8 : i32
    %86 = vector.broadcast %c8_i32_25 : i32 to vector<1x32xi32>
    %87 = arith.cmpi sge, %49, %86 : vector<1x32xi32>
    %c16_i32 = arith.constant 16 : i32
    %88 = vector.broadcast %c16_i32 : i32 to vector<1x32xi32>
    %89 = arith.cmpi slt, %49, %88 : vector<1x32xi32>
    %90 = arith.andi %87, %89 : vector<1x32xi1>
    %cst_26 = arith.constant 0.000000e+00 : f32
    %91 = vector.shape_cast %90 : vector<1x32xi1> to vector<1x32xi1>
    %92 = vector.broadcast %91 : vector<1x32xi1> to vector<16x32xi1>
    %93 = vector.broadcast %cst_26 : f32 to vector<16x32xf32>
    %94 = arith.select %92, %46, %93 : vector<16x32xi1>, vector<16x32xf32>
    %95 = arith.truncf %94 : vector<16x32xf32> to vector<16x32xbf16>
    %cst_27 = arith.constant dense<0.000000e+00> : vector<16x16xf32>
    %96 = tpu.matmul %95, %51, %cst_27 {dimension_numbers = #tpu.dot_dimension_numbers<[1], [0], [0], [1], [0, 0, 1, 1], [], []>} : vector<16x32xbf16>, vector<32x16xbf16>, vector<16x16xf32> -> vector<16x16xf32>
    %cst_28 = arith.constant 0.353553385 : f32
    %97 = vector.broadcast %cst_28 : f32 to vector<16x16xf32>
    %98 = arith.mulf %96, %97 : vector<16x16xf32>
    %cst_29 = arith.constant -1.000000e+30 : f32
    %99 = vector.shape_cast %4 : vector<1x16xi1> to vector<1x16xi1>
    %100 = vector.broadcast %99 : vector<1x16xi1> to vector<16x16xi1>
    %101 = vector.broadcast %cst_29 : f32 to vector<16x16xf32>
    %102 = arith.select %100, %98, %101 : vector<16x16xi1>, vector<16x16xf32>
    %cst_30 = arith.constant dense<0xFF800000> : vector<16xf32>
    %103 = vector.multi_reduction <maximumf>, %102, %cst_30 [1] : vector<16x16xf32> to vector<16xf32>
    %104 = vector.shape_cast %103 : vector<16xf32> to vector<16x1xf32>
    %105 = vector.broadcast %104 : vector<16x1xf32> to vector<16x16xf32>
    %106 = arith.subf %102, %105 : vector<16x16xf32>
    %107 = math.exp %106 : vector<16x16xf32>
    %cst_31 = arith.constant dense<0.000000e+00> : vector<16xf32>
    %108 = vector.multi_reduction <add>, %107, %cst_31 [1] : vector<16x16xf32> to vector<16xf32>
    %109 = vector.shape_cast %108 : vector<16xf32> to vector<16x1xf32>
    %110 = tpu.reciprocal %109 {approx = true} : vector<16x1xf32> -> vector<16x1xf32>
    %111 = vector.broadcast %110 : vector<16x1xf32> to vector<16x16xf32>
    %112 = arith.mulf %107, %111 : vector<16x16xf32>
    %113 = arith.truncf %112 : vector<16x16xf32> to vector<16x16xbf16>
    %cst_32 = arith.constant 0.000000e+00 : f32
    %114 = vector.shape_cast %90 : vector<1x32xi1> to vector<1x32xi1>
    %115 = vector.broadcast %114 : vector<1x32xi1> to vector<16x32xi1>
    %116 = vector.broadcast %cst_32 : f32 to vector<16x32xf32>
    %117 = arith.select %115, %48, %116 : vector<16x32xi1>, vector<16x32xf32>
    %118 = arith.truncf %117 : vector<16x32xf32> to vector<16x32xbf16>
    %cst_33 = arith.constant dense<0.000000e+00> : vector<16x32xf32>
    %119 = tpu.matmul %113, %118, %cst_33 {dimension_numbers = #tpu.dot_dimension_numbers<[1], [0], [0], [1], [0, 0, 1, 1], [], []>} : vector<16x16xbf16>, vector<16x32xbf16>, vector<16x32xf32> -> vector<16x32xf32>
    %120 = arith.addf %85, %119 : vector<16x32xf32>
    %c16_i32_34 = arith.constant 16 : i32
    %121 = vector.broadcast %c16_i32_34 : i32 to vector<1x32xi32>
    %122 = arith.cmpi sge, %49, %121 : vector<1x32xi32>
    %c24_i32 = arith.constant 24 : i32
    %123 = vector.broadcast %c24_i32 : i32 to vector<1x32xi32>
    %124 = arith.cmpi slt, %49, %123 : vector<1x32xi32>
    %125 = arith.andi %122, %124 : vector<1x32xi1>
    %cst_35 = arith.constant 0.000000e+00 : f32
    %126 = vector.shape_cast %125 : vector<1x32xi1> to vector<1x32xi1>
    %127 = vector.broadcast %126 : vector<1x32xi1> to vector<16x32xi1>
    %128 = vector.broadcast %cst_35 : f32 to vector<16x32xf32>
    %129 = arith.select %127, %46, %128 : vector<16x32xi1>, vector<16x32xf32>
    %130 = arith.truncf %129 : vector<16x32xf32> to vector<16x32xbf16>
    %cst_36 = arith.constant dense<0.000000e+00> : vector<16x16xf32>
    %131 = tpu.matmul %130, %51, %cst_36 {dimension_numbers = #tpu.dot_dimension_numbers<[1], [0], [0], [1], [0, 0, 1, 1], [], []>} : vector<16x32xbf16>, vector<32x16xbf16>, vector<16x16xf32> -> vector<16x16xf32>
    %cst_37 = arith.constant 0.353553385 : f32
    %132 = vector.broadcast %cst_37 : f32 to vector<16x16xf32>
    %133 = arith.mulf %131, %132 : vector<16x16xf32>
    %cst_38 = arith.constant -1.000000e+30 : f32
    %134 = vector.shape_cast %4 : vector<1x16xi1> to vector<1x16xi1>
    %135 = vector.broadcast %134 : vector<1x16xi1> to vector<16x16xi1>
    %136 = vector.broadcast %cst_38 : f32 to vector<16x16xf32>
    %137 = arith.select %135, %133, %136 : vector<16x16xi1>, vector<16x16xf32>
    %cst_39 = arith.constant dense<0xFF800000> : vector<16xf32>
    %138 = vector.multi_reduction <maximumf>, %137, %cst_39 [1] : vector<16x16xf32> to vector<16xf32>
    %139 = vector.shape_cast %138 : vector<16xf32> to vector<16x1xf32>
    %140 = vector.broadcast %139 : vector<16x1xf32> to vector<16x16xf32>
    %141 = arith.subf %137, %140 : vector<16x16xf32>
    %142 = math.exp %141 : vector<16x16xf32>
    %cst_40 = arith.constant dense<0.000000e+00> : vector<16xf32>
    %143 = vector.multi_reduction <add>, %142, %cst_40 [1] : vector<16x16xf32> to vector<16xf32>
    %144 = vector.shape_cast %143 : vector<16xf32> to vector<16x1xf32>
    %145 = tpu.reciprocal %144 {approx = true} : vector<16x1xf32> -> vector<16x1xf32>
    %146 = vector.broadcast %145 : vector<16x1xf32> to vector<16x16xf32>
    %147 = arith.mulf %142, %146 : vector<16x16xf32>
    %148 = arith.truncf %147 : vector<16x16xf32> to vector<16x16xbf16>
    %cst_41 = arith.constant 0.000000e+00 : f32
    %149 = vector.shape_cast %125 : vector<1x32xi1> to vector<1x32xi1>
    %150 = vector.broadcast %149 : vector<1x32xi1> to vector<16x32xi1>
    %151 = vector.broadcast %cst_41 : f32 to vector<16x32xf32>
    %152 = arith.select %150, %48, %151 : vector<16x32xi1>, vector<16x32xf32>
    %153 = arith.truncf %152 : vector<16x32xf32> to vector<16x32xbf16>
    %cst_42 = arith.constant dense<0.000000e+00> : vector<16x32xf32>
    %154 = tpu.matmul %148, %153, %cst_42 {dimension_numbers = #tpu.dot_dimension_numbers<[1], [0], [0], [1], [0, 0, 1, 1], [], []>} : vector<16x16xbf16>, vector<16x32xbf16>, vector<16x32xf32> -> vector<16x32xf32>
    %155 = arith.addf %120, %154 : vector<16x32xf32>
    %c24_i32_43 = arith.constant 24 : i32
    %156 = vector.broadcast %c24_i32_43 : i32 to vector<1x32xi32>
    %157 = arith.cmpi sge, %49, %156 : vector<1x32xi32>
    %c32_i32 = arith.constant 32 : i32
    %158 = vector.broadcast %c32_i32 : i32 to vector<1x32xi32>
    %159 = arith.cmpi slt, %49, %158 : vector<1x32xi32>
    %160 = arith.andi %157, %159 : vector<1x32xi1>
    %cst_44 = arith.constant 0.000000e+00 : f32
    %161 = vector.shape_cast %160 : vector<1x32xi1> to vector<1x32xi1>
    %162 = vector.broadcast %161 : vector<1x32xi1> to vector<16x32xi1>
    %163 = vector.broadcast %cst_44 : f32 to vector<16x32xf32>
    %164 = arith.select %162, %46, %163 : vector<16x32xi1>, vector<16x32xf32>
    %165 = arith.truncf %164 : vector<16x32xf32> to vector<16x32xbf16>
    %cst_45 = arith.constant dense<0.000000e+00> : vector<16x16xf32>
    %166 = tpu.matmul %165, %51, %cst_45 {dimension_numbers = #tpu.dot_dimension_numbers<[1], [0], [0], [1], [0, 0, 1, 1], [], []>} : vector<16x32xbf16>, vector<32x16xbf16>, vector<16x16xf32> -> vector<16x16xf32>
    %cst_46 = arith.constant 0.353553385 : f32
    %167 = vector.broadcast %cst_46 : f32 to vector<16x16xf32>
    %168 = arith.mulf %166, %167 : vector<16x16xf32>
    %cst_47 = arith.constant -1.000000e+30 : f32
    %169 = vector.shape_cast %4 : vector<1x16xi1> to vector<1x16xi1>
    %170 = vector.broadcast %169 : vector<1x16xi1> to vector<16x16xi1>
    %171 = vector.broadcast %cst_47 : f32 to vector<16x16xf32>
    %172 = arith.select %170, %168, %171 : vector<16x16xi1>, vector<16x16xf32>
    %cst_48 = arith.constant dense<0xFF800000> : vector<16xf32>
    %173 = vector.multi_reduction <maximumf>, %172, %cst_48 [1] : vector<16x16xf32> to vector<16xf32>
    %174 = vector.shape_cast %173 : vector<16xf32> to vector<16x1xf32>
    %175 = vector.broadcast %174 : vector<16x1xf32> to vector<16x16xf32>
    %176 = arith.subf %172, %175 : vector<16x16xf32>
    %177 = math.exp %176 : vector<16x16xf32>
    %cst_49 = arith.constant dense<0.000000e+00> : vector<16xf32>
    %178 = vector.multi_reduction <add>, %177, %cst_49 [1] : vector<16x16xf32> to vector<16xf32>
    %179 = vector.shape_cast %178 : vector<16xf32> to vector<16x1xf32>
    %180 = tpu.reciprocal %179 {approx = true} : vector<16x1xf32> -> vector<16x1xf32>
    %181 = vector.broadcast %180 : vector<16x1xf32> to vector<16x16xf32>
    %182 = arith.mulf %177, %181 : vector<16x16xf32>
    %183 = arith.truncf %182 : vector<16x16xf32> to vector<16x16xbf16>
    %cst_50 = arith.constant 0.000000e+00 : f32
    %184 = vector.shape_cast %160 : vector<1x32xi1> to vector<1x32xi1>
    %185 = vector.broadcast %184 : vector<1x32xi1> to vector<16x32xi1>
    %186 = vector.broadcast %cst_50 : f32 to vector<16x32xf32>
    %187 = arith.select %185, %48, %186 : vector<16x32xi1>, vector<16x32xf32>
    %188 = arith.truncf %187 : vector<16x32xf32> to vector<16x32xbf16>
    %cst_51 = arith.constant dense<0.000000e+00> : vector<16x32xf32>
    %189 = tpu.matmul %183, %188, %cst_51 {dimension_numbers = #tpu.dot_dimension_numbers<[1], [0], [0], [1], [0, 0, 1, 1], [], []>} : vector<16x16xbf16>, vector<16x32xbf16>, vector<16x32xf32> -> vector<16x32xf32>
    %190 = arith.addf %155, %189 : vector<16x32xf32>
    %c0_52 = arith.constant 0 : index
    %c0_53 = arith.constant 0 : index
    %c0_54 = arith.constant 0 : index
    %191 = vector.load %arg8[%c0_52, %c0_53, %c0_54] : memref<1x32x32xbf16, #tpu.memory_space<vmem>>, vector<1x32x32xbf16>
    %192 = vector.shape_cast %191 : vector<1x32x32xbf16> to vector<32x32xbf16>
    %193 = arith.truncf %190 : vector<16x32xf32> to vector<16x32xbf16>
    %cst_55 = arith.constant dense<0.000000e+00> : vector<16x32xf32>
    %194 = tpu.matmul %193, %192, %cst_55 {dimension_numbers = #tpu.dot_dimension_numbers<[1], [0], [0], [1], [0, 0, 1, 1], [], []>} : vector<16x32xbf16>, vector<32x32xbf16>, vector<16x32xf32> -> vector<16x32xf32>
    %195 = arith.addf %11, %194 : vector<16x32xf32>
    %c0_56 = arith.constant 0 : index
    %c0_57 = arith.constant 0 : index
    %c0_58 = arith.constant 0 : index
    %196 = vector.load %arg9[%c0_56, %c0_57, %c0_58] : memref<1x1x32xf32, #tpu.memory_space<vmem>>, vector<1x1x32xf32>
    %197 = vector.shape_cast %196 : vector<1x1x32xf32> to vector<1x32xf32>
    %198 = vector.broadcast %197 : vector<1x32xf32> to vector<16x32xf32>
    %199 = arith.addf %195, %198 : vector<16x32xf32>
    %c0_59 = arith.constant 0 : index
    %c0_60 = arith.constant 0 : index
    %c0_61 = arith.constant 0 : index
    %200 = vector.load %arg10[%c0_59, %c0_60, %c0_61] : memref<1x2x32xf32, #tpu.memory_space<vmem>>, vector<1x2x32xf32>
    %201 = vector.shape_cast %200 : vector<1x2x32xf32> to vector<2x32xf32>
    %202 = vector.extract_strided_slice %201 {offsets = [0, 0], sizes = [1, 32], strides = [1, 1]} : vector<2x32xf32> to vector<1x32xf32>
    %203 = vector.extract_strided_slice %201 {offsets = [1, 0], sizes = [1, 32], strides = [1, 1]} : vector<2x32xf32> to vector<1x32xf32>
    %cst_62 = arith.constant dense<0.000000e+00> : vector<16xf32>
    %204 = vector.multi_reduction <add>, %199, %cst_62 [1] : vector<16x32xf32> to vector<16xf32>
    %205 = vector.shape_cast %204 : vector<16xf32> to vector<16x1xf32>
    %cst_63 = arith.constant 3.200000e+01 : f32
    %206 = vector.broadcast %cst_63 : f32 to vector<16x1xf32>
    %207 = arith.divf %205, %206 : vector<16x1xf32>
    %208 = vector.broadcast %207 : vector<16x1xf32> to vector<16x32xf32>
    %209 = arith.subf %199, %208 : vector<16x32xf32>
    %210 = arith.mulf %209, %209 : vector<16x32xf32>
    %cst_64 = arith.constant dense<0.000000e+00> : vector<16xf32>
    %211 = vector.multi_reduction <add>, %210, %cst_64 [1] : vector<16x32xf32> to vector<16xf32>
    %212 = vector.shape_cast %211 : vector<16xf32> to vector<16x1xf32>
    %cst_65 = arith.constant 3.200000e+01 : f32
    %213 = vector.broadcast %cst_65 : f32 to vector<16x1xf32>
    %214 = arith.divf %212, %213 : vector<16x1xf32>
    %215 = vector.broadcast %207 : vector<16x1xf32> to vector<16x32xf32>
    %216 = arith.subf %199, %215 : vector<16x32xf32>
    %cst_66 = arith.constant 9.99999996E-13 : f32
    %217 = vector.broadcast %cst_66 : f32 to vector<16x1xf32>
    %218 = arith.addf %214, %217 : vector<16x1xf32>
    %219 = math.rsqrt %218 : vector<16x1xf32>
    %220 = vector.broadcast %219 : vector<16x1xf32> to vector<16x32xf32>
    %221 = arith.mulf %216, %220 : vector<16x32xf32>
    %222 = vector.broadcast %202 : vector<1x32xf32> to vector<16x32xf32>
    %223 = arith.mulf %221, %222 : vector<16x32xf32>
    %224 = vector.broadcast %203 : vector<1x32xf32> to vector<16x32xf32>
    %225 = arith.addf %223, %224 : vector<16x32xf32>
    %c0_67 = arith.constant 0 : index
    %c0_68 = arith.constant 0 : index
    %c0_69 = arith.constant 0 : index
    %226 = vector.load %arg11[%c0_67, %c0_68, %c0_69] : memref<1x32x32xbf16, #tpu.memory_space<vmem>>, vector<1x32x32xbf16>
    %227 = vector.shape_cast %226 : vector<1x32x32xbf16> to vector<32x32xbf16>
    %228 = arith.truncf %225 : vector<16x32xf32> to vector<16x32xbf16>
    %cst_70 = arith.constant dense<0.000000e+00> : vector<16x32xf32>
    %229 = tpu.matmul %228, %227, %cst_70 {dimension_numbers = #tpu.dot_dimension_numbers<[1], [0], [0], [1], [0, 0, 1, 1], [], []>} : vector<16x32xbf16>, vector<32x32xbf16>, vector<16x32xf32> -> vector<16x32xf32>
    %c0_71 = arith.constant 0 : index
    %c0_72 = arith.constant 0 : index
    %c0_73 = arith.constant 0 : index
    %230 = vector.load %arg12[%c0_71, %c0_72, %c0_73] : memref<1x1x32xf32, #tpu.memory_space<vmem>>, vector<1x1x32xf32>
    %231 = vector.shape_cast %230 : vector<1x1x32xf32> to vector<1x32xf32>
    %232 = vector.broadcast %231 : vector<1x32xf32> to vector<16x32xf32>
    %233 = arith.addf %229, %232 : vector<16x32xf32>
    %c0_74 = arith.constant 0 : index
    %c0_75 = arith.constant 0 : index
    %c0_76 = arith.constant 0 : index
    %c0_77 = arith.constant 0 : index
    %234 = vector.load %arg4[%c0_74, %c0_75, %c0_76, %c0_77] : memref<1x2x16x32xbf16, #tpu.memory_space<vmem>>, vector<1x1x16x32xbf16>
    %235 = vector.shape_cast %234 : vector<1x1x16x32xbf16> to vector<16x32xbf16>
    %c0_78 = arith.constant 0 : index
    %c1 = arith.constant 1 : index
    %c0_79 = arith.constant 0 : index
    %c0_80 = arith.constant 0 : index
    %236 = vector.load %arg4[%c0_78, %c1, %c0_79, %c0_80] : memref<1x2x16x32xbf16, #tpu.memory_space<vmem>>, vector<1x1x16x32xbf16>
    %237 = vector.shape_cast %236 : vector<1x1x16x32xbf16> to vector<16x32xbf16>
    %238 = tpu.iota {dimensions = array<i32: 1>} : vector<1x32xi32>
    %239 = tpu.transpose %235, [1, 0] : vector<16x32xbf16> -> vector<32x16xbf16>
    %c0_i32_81 = arith.constant 0 : i32
    %240 = vector.broadcast %c0_i32_81 : i32 to vector<1x32xi32>
    %241 = arith.cmpi sge, %238, %240 : vector<1x32xi32>
    %c8_i32_82 = arith.constant 8 : i32
    %242 = vector.broadcast %c8_i32_82 : i32 to vector<1x32xi32>
    %243 = arith.cmpi slt, %238, %242 : vector<1x32xi32>
    %244 = arith.andi %241, %243 : vector<1x32xi1>
    %cst_83 = arith.constant 0.000000e+00 : f32
    %245 = vector.shape_cast %244 : vector<1x32xi1> to vector<1x32xi1>
    %246 = vector.broadcast %245 : vector<1x32xi1> to vector<16x32xi1>
    %247 = vector.broadcast %cst_83 : f32 to vector<16x32xf32>
    %248 = arith.select %246, %233, %247 : vector<16x32xi1>, vector<16x32xf32>
    %249 = arith.truncf %248 : vector<16x32xf32> to vector<16x32xbf16>
    %cst_84 = arith.constant dense<0.000000e+00> : vector<16x16xf32>
    %250 = tpu.matmul %249, %239, %cst_84 {dimension_numbers = #tpu.dot_dimension_numbers<[1], [0], [0], [1], [0, 0, 1, 1], [], []>} : vector<16x32xbf16>, vector<32x16xbf16>, vector<16x16xf32> -> vector<16x16xf32>
    %cst_85 = arith.constant 0.353553385 : f32
    %251 = vector.broadcast %cst_85 : f32 to vector<16x16xf32>
    %252 = arith.mulf %250, %251 : vector<16x16xf32>
    %cst_86 = arith.constant -1.000000e+30 : f32
    %253 = vector.shape_cast %7 : vector<1x16xi1> to vector<1x16xi1>
    %254 = vector.broadcast %253 : vector<1x16xi1> to vector<16x16xi1>
    %255 = vector.broadcast %cst_86 : f32 to vector<16x16xf32>
    %256 = arith.select %254, %252, %255 : vector<16x16xi1>, vector<16x16xf32>
    %cst_87 = arith.constant dense<0xFF800000> : vector<16xf32>
    %257 = vector.multi_reduction <maximumf>, %256, %cst_87 [1] : vector<16x16xf32> to vector<16xf32>
    %258 = vector.shape_cast %257 : vector<16xf32> to vector<16x1xf32>
    %259 = vector.broadcast %258 : vector<16x1xf32> to vector<16x16xf32>
    %260 = arith.subf %256, %259 : vector<16x16xf32>
    %261 = math.exp %260 : vector<16x16xf32>
    %cst_88 = arith.constant dense<0.000000e+00> : vector<16xf32>
    %262 = vector.multi_reduction <add>, %261, %cst_88 [1] : vector<16x16xf32> to vector<16xf32>
    %263 = vector.shape_cast %262 : vector<16xf32> to vector<16x1xf32>
    %264 = tpu.reciprocal %263 {approx = true} : vector<16x1xf32> -> vector<16x1xf32>
    %265 = vector.broadcast %264 : vector<16x1xf32> to vector<16x16xf32>
    %266 = arith.mulf %261, %265 : vector<16x16xf32>
    %267 = arith.truncf %266 : vector<16x16xf32> to vector<16x16xbf16>
    %cst_89 = arith.constant 0.000000e+00 : f32
    %268 = arith.truncf %cst_89 : f32 to bf16
    %269 = vector.shape_cast %244 : vector<1x32xi1> to vector<1x32xi1>
    %270 = vector.broadcast %269 : vector<1x32xi1> to vector<16x32xi1>
    %271 = vector.broadcast %268 : bf16 to vector<16x32xbf16>
    %272 = arith.select %270, %237, %271 : vector<16x32xi1>, vector<16x32xbf16>
    %cst_90 = arith.constant dense<0.000000e+00> : vector<16x32xf32>
    %273 = tpu.matmul %267, %272, %cst_90 {dimension_numbers = #tpu.dot_dimension_numbers<[1], [0], [0], [1], [0, 0, 1, 1], [], []>} : vector<16x16xbf16>, vector<16x32xbf16>, vector<16x32xf32> -> vector<16x32xf32>
    %c8_i32_91 = arith.constant 8 : i32
    %274 = vector.broadcast %c8_i32_91 : i32 to vector<1x32xi32>
    %275 = arith.cmpi sge, %238, %274 : vector<1x32xi32>
    %c16_i32_92 = arith.constant 16 : i32
    %276 = vector.broadcast %c16_i32_92 : i32 to vector<1x32xi32>
    %277 = arith.cmpi slt, %238, %276 : vector<1x32xi32>
    %278 = arith.andi %275, %277 : vector<1x32xi1>
    %cst_93 = arith.constant 0.000000e+00 : f32
    %279 = vector.shape_cast %278 : vector<1x32xi1> to vector<1x32xi1>
    %280 = vector.broadcast %279 : vector<1x32xi1> to vector<16x32xi1>
    %281 = vector.broadcast %cst_93 : f32 to vector<16x32xf32>
    %282 = arith.select %280, %233, %281 : vector<16x32xi1>, vector<16x32xf32>
    %283 = arith.truncf %282 : vector<16x32xf32> to vector<16x32xbf16>
    %cst_94 = arith.constant dense<0.000000e+00> : vector<16x16xf32>
    %284 = tpu.matmul %283, %239, %cst_94 {dimension_numbers = #tpu.dot_dimension_numbers<[1], [0], [0], [1], [0, 0, 1, 1], [], []>} : vector<16x32xbf16>, vector<32x16xbf16>, vector<16x16xf32> -> vector<16x16xf32>
    %cst_95 = arith.constant 0.353553385 : f32
    %285 = vector.broadcast %cst_95 : f32 to vector<16x16xf32>
    %286 = arith.mulf %284, %285 : vector<16x16xf32>
    %cst_96 = arith.constant -1.000000e+30 : f32
    %287 = vector.shape_cast %7 : vector<1x16xi1> to vector<1x16xi1>
    %288 = vector.broadcast %287 : vector<1x16xi1> to vector<16x16xi1>
    %289 = vector.broadcast %cst_96 : f32 to vector<16x16xf32>
    %290 = arith.select %288, %286, %289 : vector<16x16xi1>, vector<16x16xf32>
    %cst_97 = arith.constant dense<0xFF800000> : vector<16xf32>
    %291 = vector.multi_reduction <maximumf>, %290, %cst_97 [1] : vector<16x16xf32> to vector<16xf32>
    %292 = vector.shape_cast %291 : vector<16xf32> to vector<16x1xf32>
    %293 = vector.broadcast %292 : vector<16x1xf32> to vector<16x16xf32>
    %294 = arith.subf %290, %293 : vector<16x16xf32>
    %295 = math.exp %294 : vector<16x16xf32>
    %cst_98 = arith.constant dense<0.000000e+00> : vector<16xf32>
    %296 = vector.multi_reduction <add>, %295, %cst_98 [1] : vector<16x16xf32> to vector<16xf32>
    %297 = vector.shape_cast %296 : vector<16xf32> to vector<16x1xf32>
    %298 = tpu.reciprocal %297 {approx = true} : vector<16x1xf32> -> vector<16x1xf32>
    %299 = vector.broadcast %298 : vector<16x1xf32> to vector<16x16xf32>
    %300 = arith.mulf %295, %299 : vector<16x16xf32>
    %301 = arith.truncf %300 : vector<16x16xf32> to vector<16x16xbf16>
    %cst_99 = arith.constant 0.000000e+00 : f32
    %302 = arith.truncf %cst_99 : f32 to bf16
    %303 = vector.shape_cast %278 : vector<1x32xi1> to vector<1x32xi1>
    %304 = vector.broadcast %303 : vector<1x32xi1> to vector<16x32xi1>
    %305 = vector.broadcast %302 : bf16 to vector<16x32xbf16>
    %306 = arith.select %304, %237, %305 : vector<16x32xi1>, vector<16x32xbf16>
    %cst_100 = arith.constant dense<0.000000e+00> : vector<16x32xf32>
    %307 = tpu.matmul %301, %306, %cst_100 {dimension_numbers = #tpu.dot_dimension_numbers<[1], [0], [0], [1], [0, 0, 1, 1], [], []>} : vector<16x16xbf16>, vector<16x32xbf16>, vector<16x32xf32> -> vector<16x32xf32>
    %308 = arith.addf %273, %307 : vector<16x32xf32>
    %c16_i32_101 = arith.constant 16 : i32
    %309 = vector.broadcast %c16_i32_101 : i32 to vector<1x32xi32>
    %310 = arith.cmpi sge, %238, %309 : vector<1x32xi32>
    %c24_i32_102 = arith.constant 24 : i32
    %311 = vector.broadcast %c24_i32_102 : i32 to vector<1x32xi32>
    %312 = arith.cmpi slt, %238, %311 : vector<1x32xi32>
    %313 = arith.andi %310, %312 : vector<1x32xi1>
    %cst_103 = arith.constant 0.000000e+00 : f32
    %314 = vector.shape_cast %313 : vector<1x32xi1> to vector<1x32xi1>
    %315 = vector.broadcast %314 : vector<1x32xi1> to vector<16x32xi1>
    %316 = vector.broadcast %cst_103 : f32 to vector<16x32xf32>
    %317 = arith.select %315, %233, %316 : vector<16x32xi1>, vector<16x32xf32>
    %318 = arith.truncf %317 : vector<16x32xf32> to vector<16x32xbf16>
    %cst_104 = arith.constant dense<0.000000e+00> : vector<16x16xf32>
    %319 = tpu.matmul %318, %239, %cst_104 {dimension_numbers = #tpu.dot_dimension_numbers<[1], [0], [0], [1], [0, 0, 1, 1], [], []>} : vector<16x32xbf16>, vector<32x16xbf16>, vector<16x16xf32> -> vector<16x16xf32>
    %cst_105 = arith.constant 0.353553385 : f32
    %320 = vector.broadcast %cst_105 : f32 to vector<16x16xf32>
    %321 = arith.mulf %319, %320 : vector<16x16xf32>
    %cst_106 = arith.constant -1.000000e+30 : f32
    %322 = vector.shape_cast %7 : vector<1x16xi1> to vector<1x16xi1>
    %323 = vector.broadcast %322 : vector<1x16xi1> to vector<16x16xi1>
    %324 = vector.broadcast %cst_106 : f32 to vector<16x16xf32>
    %325 = arith.select %323, %321, %324 : vector<16x16xi1>, vector<16x16xf32>
    %cst_107 = arith.constant dense<0xFF800000> : vector<16xf32>
    %326 = vector.multi_reduction <maximumf>, %325, %cst_107 [1] : vector<16x16xf32> to vector<16xf32>
    %327 = vector.shape_cast %326 : vector<16xf32> to vector<16x1xf32>
    %328 = vector.broadcast %327 : vector<16x1xf32> to vector<16x16xf32>
    %329 = arith.subf %325, %328 : vector<16x16xf32>
    %330 = math.exp %329 : vector<16x16xf32>
    %cst_108 = arith.constant dense<0.000000e+00> : vector<16xf32>
    %331 = vector.multi_reduction <add>, %330, %cst_108 [1] : vector<16x16xf32> to vector<16xf32>
    %332 = vector.shape_cast %331 : vector<16xf32> to vector<16x1xf32>
    %333 = tpu.reciprocal %332 {approx = true} : vector<16x1xf32> -> vector<16x1xf32>
    %334 = vector.broadcast %333 : vector<16x1xf32> to vector<16x16xf32>
    %335 = arith.mulf %330, %334 : vector<16x16xf32>
    %336 = arith.truncf %335 : vector<16x16xf32> to vector<16x16xbf16>
    %cst_109 = arith.constant 0.000000e+00 : f32
    %337 = arith.truncf %cst_109 : f32 to bf16
    %338 = vector.shape_cast %313 : vector<1x32xi1> to vector<1x32xi1>
    %339 = vector.broadcast %338 : vector<1x32xi1> to vector<16x32xi1>
    %340 = vector.broadcast %337 : bf16 to vector<16x32xbf16>
    %341 = arith.select %339, %237, %340 : vector<16x32xi1>, vector<16x32xbf16>
    %cst_110 = arith.constant dense<0.000000e+00> : vector<16x32xf32>
    %342 = tpu.matmul %336, %341, %cst_110 {dimension_numbers = #tpu.dot_dimension_numbers<[1], [0], [0], [1], [0, 0, 1, 1], [], []>} : vector<16x16xbf16>, vector<16x32xbf16>, vector<16x32xf32> -> vector<16x32xf32>
    %343 = arith.addf %308, %342 : vector<16x32xf32>
    %c24_i32_111 = arith.constant 24 : i32
    %344 = vector.broadcast %c24_i32_111 : i32 to vector<1x32xi32>
    %345 = arith.cmpi sge, %238, %344 : vector<1x32xi32>
    %c32_i32_112 = arith.constant 32 : i32
    %346 = vector.broadcast %c32_i32_112 : i32 to vector<1x32xi32>
    %347 = arith.cmpi slt, %238, %346 : vector<1x32xi32>
    %348 = arith.andi %345, %347 : vector<1x32xi1>
    %cst_113 = arith.constant 0.000000e+00 : f32
    %349 = vector.shape_cast %348 : vector<1x32xi1> to vector<1x32xi1>
    %350 = vector.broadcast %349 : vector<1x32xi1> to vector<16x32xi1>
    %351 = vector.broadcast %cst_113 : f32 to vector<16x32xf32>
    %352 = arith.select %350, %233, %351 : vector<16x32xi1>, vector<16x32xf32>
    %353 = arith.truncf %352 : vector<16x32xf32> to vector<16x32xbf16>
    %cst_114 = arith.constant dense<0.000000e+00> : vector<16x16xf32>
    %354 = tpu.matmul %353, %239, %cst_114 {dimension_numbers = #tpu.dot_dimension_numbers<[1], [0], [0], [1], [0, 0, 1, 1], [], []>} : vector<16x32xbf16>, vector<32x16xbf16>, vector<16x16xf32> -> vector<16x16xf32>
    %cst_115 = arith.constant 0.353553385 : f32
    %355 = vector.broadcast %cst_115 : f32 to vector<16x16xf32>
    %356 = arith.mulf %354, %355 : vector<16x16xf32>
    %cst_116 = arith.constant -1.000000e+30 : f32
    %357 = vector.shape_cast %7 : vector<1x16xi1> to vector<1x16xi1>
    %358 = vector.broadcast %357 : vector<1x16xi1> to vector<16x16xi1>
    %359 = vector.broadcast %cst_116 : f32 to vector<16x16xf32>
    %360 = arith.select %358, %356, %359 : vector<16x16xi1>, vector<16x16xf32>
    %cst_117 = arith.constant dense<0xFF800000> : vector<16xf32>
    %361 = vector.multi_reduction <maximumf>, %360, %cst_117 [1] : vector<16x16xf32> to vector<16xf32>
    %362 = vector.shape_cast %361 : vector<16xf32> to vector<16x1xf32>
    %363 = vector.broadcast %362 : vector<16x1xf32> to vector<16x16xf32>
    %364 = arith.subf %360, %363 : vector<16x16xf32>
    %365 = math.exp %364 : vector<16x16xf32>
    %cst_118 = arith.constant dense<0.000000e+00> : vector<16xf32>
    %366 = vector.multi_reduction <add>, %365, %cst_118 [1] : vector<16x16xf32> to vector<16xf32>
    %367 = vector.shape_cast %366 : vector<16xf32> to vector<16x1xf32>
    %368 = tpu.reciprocal %367 {approx = true} : vector<16x1xf32> -> vector<16x1xf32>
    %369 = vector.broadcast %368 : vector<16x1xf32> to vector<16x16xf32>
    %370 = arith.mulf %365, %369 : vector<16x16xf32>
    %371 = arith.truncf %370 : vector<16x16xf32> to vector<16x16xbf16>
    %cst_119 = arith.constant 0.000000e+00 : f32
    %372 = arith.truncf %cst_119 : f32 to bf16
    %373 = vector.shape_cast %348 : vector<1x32xi1> to vector<1x32xi1>
    %374 = vector.broadcast %373 : vector<1x32xi1> to vector<16x32xi1>
    %375 = vector.broadcast %372 : bf16 to vector<16x32xbf16>
    %376 = arith.select %374, %237, %375 : vector<16x32xi1>, vector<16x32xbf16>
    %cst_120 = arith.constant dense<0.000000e+00> : vector<16x32xf32>
    %377 = tpu.matmul %371, %376, %cst_120 {dimension_numbers = #tpu.dot_dimension_numbers<[1], [0], [0], [1], [0, 0, 1, 1], [], []>} : vector<16x16xbf16>, vector<16x32xbf16>, vector<16x32xf32> -> vector<16x32xf32>
    %378 = arith.addf %343, %377 : vector<16x32xf32>
    %c0_121 = arith.constant 0 : index
    %c0_122 = arith.constant 0 : index
    %c0_123 = arith.constant 0 : index
    %379 = vector.load %arg13[%c0_121, %c0_122, %c0_123] : memref<1x32x32xbf16, #tpu.memory_space<vmem>>, vector<1x32x32xbf16>
    %380 = vector.shape_cast %379 : vector<1x32x32xbf16> to vector<32x32xbf16>
    %381 = arith.truncf %378 : vector<16x32xf32> to vector<16x32xbf16>
    %cst_124 = arith.constant dense<0.000000e+00> : vector<16x32xf32>
    %382 = tpu.matmul %381, %380, %cst_124 {dimension_numbers = #tpu.dot_dimension_numbers<[1], [0], [0], [1], [0, 0, 1, 1], [], []>} : vector<16x32xbf16>, vector<32x32xbf16>, vector<16x32xf32> -> vector<16x32xf32>
    %383 = arith.addf %199, %382 : vector<16x32xf32>
    %c0_125 = arith.constant 0 : index
    %c0_126 = arith.constant 0 : index
    %c0_127 = arith.constant 0 : index
    %384 = vector.load %arg14[%c0_125, %c0_126, %c0_127] : memref<1x1x32xf32, #tpu.memory_space<vmem>>, vector<1x1x32xf32>
    %385 = vector.shape_cast %384 : vector<1x1x32xf32> to vector<1x32xf32>
    %386 = vector.broadcast %385 : vector<1x32xf32> to vector<16x32xf32>
    %387 = arith.addf %383, %386 : vector<16x32xf32>
    %c0_128 = arith.constant 0 : index
    %c0_129 = arith.constant 0 : index
    %c0_130 = arith.constant 0 : index
    %388 = vector.load %arg15[%c0_128, %c0_129, %c0_130] : memref<1x2x32xf32, #tpu.memory_space<vmem>>, vector<1x2x32xf32>
    %389 = vector.shape_cast %388 : vector<1x2x32xf32> to vector<2x32xf32>
    %390 = vector.extract_strided_slice %389 {offsets = [0, 0], sizes = [1, 32], strides = [1, 1]} : vector<2x32xf32> to vector<1x32xf32>
    %391 = vector.extract_strided_slice %389 {offsets = [1, 0], sizes = [1, 32], strides = [1, 1]} : vector<2x32xf32> to vector<1x32xf32>
    %cst_131 = arith.constant dense<0.000000e+00> : vector<16xf32>
    %392 = vector.multi_reduction <add>, %387, %cst_131 [1] : vector<16x32xf32> to vector<16xf32>
    %393 = vector.shape_cast %392 : vector<16xf32> to vector<16x1xf32>
    %cst_132 = arith.constant 3.200000e+01 : f32
    %394 = vector.broadcast %cst_132 : f32 to vector<16x1xf32>
    %395 = arith.divf %393, %394 : vector<16x1xf32>
    %396 = vector.broadcast %395 : vector<16x1xf32> to vector<16x32xf32>
    %397 = arith.subf %387, %396 : vector<16x32xf32>
    %398 = arith.mulf %397, %397 : vector<16x32xf32>
    %cst_133 = arith.constant dense<0.000000e+00> : vector<16xf32>
    %399 = vector.multi_reduction <add>, %398, %cst_133 [1] : vector<16x32xf32> to vector<16xf32>
    %400 = vector.shape_cast %399 : vector<16xf32> to vector<16x1xf32>
    %cst_134 = arith.constant 3.200000e+01 : f32
    %401 = vector.broadcast %cst_134 : f32 to vector<16x1xf32>
    %402 = arith.divf %400, %401 : vector<16x1xf32>
    %403 = vector.broadcast %395 : vector<16x1xf32> to vector<16x32xf32>
    %404 = arith.subf %387, %403 : vector<16x32xf32>
    %cst_135 = arith.constant 9.99999996E-13 : f32
    %405 = vector.broadcast %cst_135 : f32 to vector<16x1xf32>
    %406 = arith.addf %402, %405 : vector<16x1xf32>
    %407 = math.rsqrt %406 : vector<16x1xf32>
    %408 = vector.broadcast %407 : vector<16x1xf32> to vector<16x32xf32>
    %409 = arith.mulf %404, %408 : vector<16x32xf32>
    %410 = vector.broadcast %390 : vector<1x32xf32> to vector<16x32xf32>
    %411 = arith.mulf %409, %410 : vector<16x32xf32>
    %412 = vector.broadcast %391 : vector<1x32xf32> to vector<16x32xf32>
    %413 = arith.addf %411, %412 : vector<16x32xf32>
    %c0_136 = arith.constant 0 : index
    %c0_137 = arith.constant 0 : index
    %c0_138 = arith.constant 0 : index
    %414 = vector.load %arg16[%c0_136, %c0_137, %c0_138] : memref<1x32x64xbf16, #tpu.memory_space<vmem>>, vector<1x32x64xbf16>
    %415 = vector.shape_cast %414 : vector<1x32x64xbf16> to vector<32x64xbf16>
    %416 = arith.truncf %413 : vector<16x32xf32> to vector<16x32xbf16>
    %cst_139 = arith.constant dense<0.000000e+00> : vector<16x64xf32>
    %417 = tpu.matmul %416, %415, %cst_139 {dimension_numbers = #tpu.dot_dimension_numbers<[1], [0], [0], [1], [0, 0, 1, 1], [], []>} : vector<16x32xbf16>, vector<32x64xbf16>, vector<16x64xf32> -> vector<16x64xf32>
    %c0_140 = arith.constant 0 : index
    %c0_141 = arith.constant 0 : index
    %c0_142 = arith.constant 0 : index
    %418 = vector.load %arg17[%c0_140, %c0_141, %c0_142] : memref<1x1x64xf32, #tpu.memory_space<vmem>>, vector<1x1x64xf32>
    %419 = vector.shape_cast %418 : vector<1x1x64xf32> to vector<1x64xf32>
    %420 = vector.broadcast %419 : vector<1x64xf32> to vector<16x64xf32>
    %421 = arith.addf %417, %420 : vector<16x64xf32>
    %cst_143 = arith.constant 0.000000e+00 : f32
    %422 = vector.broadcast %cst_143 : f32 to vector<16x64xf32>
    %423 = arith.maximumf %421, %422 : vector<16x64xf32>
    %c0_144 = arith.constant 0 : index
    %c0_145 = arith.constant 0 : index
    %c0_146 = arith.constant 0 : index
    %424 = vector.load %arg18[%c0_144, %c0_145, %c0_146] : memref<1x64x32xbf16, #tpu.memory_space<vmem>>, vector<1x64x32xbf16>
    %425 = vector.shape_cast %424 : vector<1x64x32xbf16> to vector<64x32xbf16>
    %426 = arith.truncf %423 : vector<16x64xf32> to vector<16x64xbf16>
    %cst_147 = arith.constant dense<0.000000e+00> : vector<16x32xf32>
    %427 = tpu.matmul %426, %425, %cst_147 {dimension_numbers = #tpu.dot_dimension_numbers<[1], [0], [0], [1], [0, 0, 1, 1], [], []>} : vector<16x64xbf16>, vector<64x32xbf16>, vector<16x32xf32> -> vector<16x32xf32>
    %428 = arith.addf %387, %427 : vector<16x32xf32>
    %c0_148 = arith.constant 0 : index
    %c0_149 = arith.constant 0 : index
    %c0_150 = arith.constant 0 : index
    %429 = vector.load %arg19[%c0_148, %c0_149, %c0_150] : memref<1x1x32xf32, #tpu.memory_space<vmem>>, vector<1x1x32xf32>
    %430 = vector.shape_cast %429 : vector<1x1x32xf32> to vector<1x32xf32>
    %431 = vector.broadcast %430 : vector<1x32xf32> to vector<16x32xf32>
    %432 = arith.addf %428, %431 : vector<16x32xf32>
    %c0_151 = arith.constant 0 : index
    %c0_152 = arith.constant 0 : index
    %433 = vector.load %arg21[%c0_151, %c0_152] : memref<16x32xf32, #tpu.memory_space<vmem>>, vector<16x32xf32>
    tpu.vector_store %arg21[%c0_151, %c0_152], %432 {strides = array<i32>} : memref<16x32xf32, #tpu.memory_space<vmem>>, vector<16x32xf32>,
    %434 = arith.truncf %432 : vector<16x32xf32> to vector<16x32xbf16>
    %c0_153 = arith.constant 0 : index
    %c0_154 = arith.constant 0 : index
    %c0_155 = arith.constant 0 : index
    %435 = vector.load %arg20[%c0_153, %c0_154, %c0_155] : memref<1x16x32xbf16, #tpu.memory_space<vmem>>, vector<1x16x32xbf16>
    %436 = vector.shape_cast %435 : vector<1x16x32xbf16> to vector<16x32xbf16>
    %437 = vector.shape_cast %434 : vector<16x32xbf16> to vector<1x16x32xbf16>
    tpu.vector_store %arg20[%c0_153, %c0_154, %c0_155], %437 {strides = array<i32>} : memref<1x16x32xbf16, #tpu.memory_space<vmem>>, vector<1x16x32xbf16>,
    return
  }
  func.func @transform_0(%arg0: i32, %arg1: i32, %arg2: memref<2xi32, #tpu.memory_space<smem>>) -> (i32, i32, i32) {
    %c0_i32 = arith.constant 0 : i32
    %c0_i32_0 = arith.constant 0 : i32
    %c0_i32_1 = arith.constant 0 : i32
    return %arg0, %c0_i32, %c0_i32_0 : i32, i32, i32
  }
  func.func @transform_1(%arg0: i32, %arg1: i32, %arg2: memref<2xi32, #tpu.memory_space<smem>>) -> (i32, i32, i32, i32) {
    %c0_i32 = arith.constant 0 : i32
    %c0_i32_0 = arith.constant 0 : i32
    %c0_i32_1 = arith.constant 0 : i32
    return %arg0, %arg1, %c0_i32, %c0_i32_0 : i32, i32, i32, i32
  }
  func.func @transform_2(%arg0: i32, %arg1: i32, %arg2: memref<2xi32, #tpu.memory_space<smem>>) -> (i32, i32, i32) {
    %c0_i32 = arith.constant 0 : i32
    %c0_i32_0 = arith.constant 0 : i32
    %c0_i32_1 = arith.constant 0 : i32
    return %arg1, %c0_i32, %c0_i32_0 : i32, i32, i32
  }
  func.func @transform_3(%arg0: i32, %arg1: i32, %arg2: memref<2xi32, #tpu.memory_space<smem>>) -> (i32, i32, i32) {
    %c0_i32 = arith.constant 0 : i32
    %c0_i32_0 = arith.constant 0 : i32
    %c0_i32_1 = arith.constant 0 : i32
    return %arg1, %c0_i32, %c0_i32_0 : i32, i32, i32
  }
  func.func @transform_4(%arg0: i32, %arg1: i32, %arg2: memref<2xi32, #tpu.memory_space<smem>>) -> (i32, i32, i32) {
    %c0_i32 = arith.constant 0 : i32
    %c0_i32_0 = arith.constant 0 : i32
    %c0_i32_1 = arith.constant 0 : i32
    return %arg1, %c0_i32, %c0_i32_0 : i32, i32, i32
  }
  func.func @transform_5(%arg0: i32, %arg1: i32, %arg2: memref<2xi32, #tpu.memory_space<smem>>) -> (i32, i32, i32) {
    %c0_i32 = arith.constant 0 : i32
    %c0_i32_0 = arith.constant 0 : i32
    %c0_i32_1 = arith.constant 0 : i32
    return %arg1, %c0_i32, %c0_i32_0 : i32, i32, i32
  }
  func.func @transform_6(%arg0: i32, %arg1: i32, %arg2: memref<2xi32, #tpu.memory_space<smem>>) -> (i32, i32, i32) {
    %c0_i32 = arith.constant 0 : i32
    %c0_i32_0 = arith.constant 0 : i32
    %c0_i32_1 = arith.constant 0 : i32
    return %arg1, %c0_i32, %c0_i32_0 : i32, i32, i32
  }
  func.func @transform_7(%arg0: i32, %arg1: i32, %arg2: memref<2xi32, #tpu.memory_space<smem>>) -> (i32, i32, i32) {
    %c0_i32 = arith.constant 0 : i32
    %c0_i32_0 = arith.constant 0 : i32
    %c0_i32_1 = arith.constant 0 : i32
    return %arg1, %c0_i32, %c0_i32_0 : i32, i32, i32
  }
  func.func @transform_8(%arg0: i32, %arg1: i32, %arg2: memref<2xi32, #tpu.memory_space<smem>>) -> (i32, i32, i32) {
    %c0_i32 = arith.constant 0 : i32
    %c0_i32_0 = arith.constant 0 : i32
    %c0_i32_1 = arith.constant 0 : i32
    return %arg1, %c0_i32, %c0_i32_0 : i32, i32, i32
  }
  func.func @transform_9(%arg0: i32, %arg1: i32, %arg2: memref<2xi32, #tpu.memory_space<smem>>) -> (i32, i32, i32) {
    %c0_i32 = arith.constant 0 : i32
    %c0_i32_0 = arith.constant 0 : i32
    %c0_i32_1 = arith.constant 0 : i32
    return %arg1, %c0_i32, %c0_i32_0 : i32, i32, i32
  }
  func.func @transform_10(%arg0: i32, %arg1: i32, %arg2: memref<2xi32, #tpu.memory_space<smem>>) -> (i32, i32, i32) {
    %c0_i32 = arith.constant 0 : i32
    %c0_i32_0 = arith.constant 0 : i32
    %c0_i32_1 = arith.constant 0 : i32
    return %arg1, %c0_i32, %c0_i32_0 : i32, i32, i32
  }
  func.func @transform_11(%arg0: i32, %arg1: i32, %arg2: memref<2xi32, #tpu.memory_space<smem>>) -> (i32, i32, i32) {
    %c0_i32 = arith.constant 0 : i32
    %c0_i32_0 = arith.constant 0 : i32
    %c0_i32_1 = arith.constant 0 : i32
    return %arg1, %c0_i32, %c0_i32_0 : i32, i32, i32
  }
  func.func @transform_12(%arg0: i32, %arg1: i32, %arg2: memref<2xi32, #tpu.memory_space<smem>>) -> (i32, i32, i32) {
    %c0_i32 = arith.constant 0 : i32
    %c0_i32_0 = arith.constant 0 : i32
    %c0_i32_1 = arith.constant 0 : i32
    return %arg1, %c0_i32, %c0_i32_0 : i32, i32, i32
  }
  func.func @transform_13(%arg0: i32, %arg1: i32, %arg2: memref<2xi32, #tpu.memory_space<smem>>) -> (i32, i32, i32) {
    %c0_i32 = arith.constant 0 : i32
    %c0_i32_0 = arith.constant 0 : i32
    %c0_i32_1 = arith.constant 0 : i32
    return %arg1, %c0_i32, %c0_i32_0 : i32, i32, i32
  }
  func.func @transform_14(%arg0: i32, %arg1: i32, %arg2: memref<2xi32, #tpu.memory_space<smem>>) -> (i32, i32, i32) {
    %c0_i32 = arith.constant 0 : i32
    %c0_i32_0 = arith.constant 0 : i32
    %c0_i32_1 = arith.constant 0 : i32
    return %arg1, %c0_i32, %c0_i32_0 : i32, i32, i32
  }
  func.func @transform_15(%arg0: i32, %arg1: i32, %arg2: memref<2xi32, #tpu.memory_space<smem>>) -> (i32, i32, i32) {
    %c0_i32 = arith.constant 0 : i32
    %c0_i32_0 = arith.constant 0 : i32
    %c0_i32_1 = arith.constant 0 : i32
    return %arg1, %c0_i32, %c0_i32_0 : i32, i32, i32
  }
  func.func @transform_16(%arg0: i32, %arg1: i32, %arg2: memref<2xi32, #tpu.memory_space<smem>>) -> (i32, i32, i32) {
    %c0_i32 = arith.constant 0 : i32
    %c0_i32_0 = arith.constant 0 : i32
    %c0_i32_1 = arith.constant 0 : i32
    return %arg1, %c0_i32, %c0_i32_0 : i32, i32, i32
  }
  func.func @transform_17(%arg0: i32, %arg1: i32, %arg2: memref<2xi32, #tpu.memory_space<smem>>) -> (i32, i32, i32) {
    %c0_i32 = arith.constant 0 : i32
    %c0_i32_0 = arith.constant 0 : i32
    %c0_i32_1 = arith.constant 0 : i32
    return %arg0, %c0_i32, %c0_i32_0 : i32, i32, i32
  }
}

module attributes {stable_mosaic.version = 11 : i64} {
  func.func @_head_kernel(%arg0: i32, %arg1: memref<1x16x32xbf16, #tpu.memory_space<vmem>>, %arg2: memref<2x32xf32, #tpu.memory_space<vmem>>, %arg3: memref<32x128xbf16, #tpu.memory_space<vmem>>, %arg4: memref<1x128xf32, #tpu.memory_space<vmem>>, %arg5: memref<1x16x128xf32, #tpu.memory_space<vmem>>) attributes {dimension_semantics = [#tpu.dimension_semantics<parallel>], iteration_bounds = array<i64: 2>, scalar_prefetch = 0 : i64, scratch_operands = 0 : i64, tpu.core_type = #tpu.core_type<tc>, window_params = [{transform_indices = @transform_0, window_bounds = array<i64: 1, 16, 32>}, {pipeline_mode = #tpu.pipeline_mode<synchronous>, transform_indices = @transform_1, window_bounds = array<i64: 2, 32>}, {pipeline_mode = #tpu.pipeline_mode<synchronous>, transform_indices = @transform_2, window_bounds = array<i64: 32, 128>}, {pipeline_mode = #tpu.pipeline_mode<synchronous>, transform_indices = @transform_3, window_bounds = array<i64: 1, 128>}, {transform_indices = @transform_4, window_bounds = array<i64: 1, 16, 128>}]} {
    %c0 = arith.constant 0 : index
    %c0_0 = arith.constant 0 : index
    %c0_1 = arith.constant 0 : index
    %0 = vector.load %arg1[%c0, %c0_0, %c0_1] : memref<1x16x32xbf16, #tpu.memory_space<vmem>>, vector<1x16x32xbf16>
    %1 = vector.shape_cast %0 : vector<1x16x32xbf16> to vector<16x32xbf16>
    %2 = arith.extf %1 : vector<16x32xbf16> to vector<16x32xf32>
    %c0_2 = arith.constant 0 : index
    %c0_3 = arith.constant 0 : index
    %3 = vector.load %arg2[%c0_2, %c0_3] : memref<2x32xf32, #tpu.memory_space<vmem>>, vector<1x32xf32>
    %c1 = arith.constant 1 : index
    %c0_4 = arith.constant 0 : index
    %4 = vector.load %arg2[%c1, %c0_4] : memref<2x32xf32, #tpu.memory_space<vmem>>, vector<1x32xf32>
    %cst = arith.constant dense<0.000000e+00> : vector<16xf32>
    %5 = vector.multi_reduction <add>, %2, %cst [1] : vector<16x32xf32> to vector<16xf32>
    %6 = vector.shape_cast %5 : vector<16xf32> to vector<16x1xf32>
    %cst_5 = arith.constant 3.200000e+01 : f32
    %7 = vector.broadcast %cst_5 : f32 to vector<16x1xf32>
    %8 = arith.divf %6, %7 : vector<16x1xf32>
    %9 = vector.broadcast %8 : vector<16x1xf32> to vector<16x32xf32>
    %10 = arith.subf %2, %9 : vector<16x32xf32>
    %11 = arith.mulf %10, %10 : vector<16x32xf32>
    %cst_6 = arith.constant dense<0.000000e+00> : vector<16xf32>
    %12 = vector.multi_reduction <add>, %11, %cst_6 [1] : vector<16x32xf32> to vector<16xf32>
    %13 = vector.shape_cast %12 : vector<16xf32> to vector<16x1xf32>
    %cst_7 = arith.constant 3.200000e+01 : f32
    %14 = vector.broadcast %cst_7 : f32 to vector<16x1xf32>
    %15 = arith.divf %13, %14 : vector<16x1xf32>
    %16 = vector.broadcast %8 : vector<16x1xf32> to vector<16x32xf32>
    %17 = arith.subf %2, %16 : vector<16x32xf32>
    %cst_8 = arith.constant 9.99999996E-13 : f32
    %18 = vector.broadcast %cst_8 : f32 to vector<16x1xf32>
    %19 = arith.addf %15, %18 : vector<16x1xf32>
    %20 = math.rsqrt %19 : vector<16x1xf32>
    %21 = vector.broadcast %20 : vector<16x1xf32> to vector<16x32xf32>
    %22 = arith.mulf %17, %21 : vector<16x32xf32>
    %23 = vector.broadcast %3 : vector<1x32xf32> to vector<16x32xf32>
    %24 = arith.mulf %22, %23 : vector<16x32xf32>
    %25 = vector.broadcast %4 : vector<1x32xf32> to vector<16x32xf32>
    %26 = arith.addf %24, %25 : vector<16x32xf32>
    %c0_9 = arith.constant 0 : index
    %c0_10 = arith.constant 0 : index
    %27 = vector.load %arg3[%c0_9, %c0_10] : memref<32x128xbf16, #tpu.memory_space<vmem>>, vector<32x128xbf16>
    %28 = arith.truncf %26 : vector<16x32xf32> to vector<16x32xbf16>
    %cst_11 = arith.constant dense<0.000000e+00> : vector<16x128xf32>
    %29 = tpu.matmul %28, %27, %cst_11 {dimension_numbers = #tpu.dot_dimension_numbers<[1], [0], [0], [1], [0, 0, 1, 1], [], []>} : vector<16x32xbf16>, vector<32x128xbf16>, vector<16x128xf32> -> vector<16x128xf32>
    %c0_12 = arith.constant 0 : index
    %c0_13 = arith.constant 0 : index
    %30 = vector.load %arg4[%c0_12, %c0_13] : memref<1x128xf32, #tpu.memory_space<vmem>>, vector<1x128xf32>
    %31 = vector.broadcast %30 : vector<1x128xf32> to vector<16x128xf32>
    %32 = arith.addf %29, %31 : vector<16x128xf32>
    %cst_14 = arith.constant dense<0xFF800000> : vector<16xf32>
    %33 = vector.multi_reduction <maximumf>, %32, %cst_14 [1] : vector<16x128xf32> to vector<16xf32>
    %34 = vector.shape_cast %33 : vector<16xf32> to vector<16x1xf32>
    %35 = vector.broadcast %34 : vector<16x1xf32> to vector<16x128xf32>
    %36 = arith.subf %32, %35 : vector<16x128xf32>
    %37 = math.exp %36 : vector<16x128xf32>
    %cst_15 = arith.constant dense<0.000000e+00> : vector<16xf32>
    %38 = vector.multi_reduction <add>, %37, %cst_15 [1] : vector<16x128xf32> to vector<16xf32>
    %39 = vector.shape_cast %38 : vector<16xf32> to vector<16x1xf32>
    %40 = math.log %39 : vector<16x1xf32>
    %41 = vector.broadcast %40 : vector<16x1xf32> to vector<16x128xf32>
    %42 = arith.subf %36, %41 : vector<16x128xf32>
    %c0_16 = arith.constant 0 : index
    %c0_17 = arith.constant 0 : index
    %c0_18 = arith.constant 0 : index
    %43 = vector.load %arg5[%c0_16, %c0_17, %c0_18] : memref<1x16x128xf32, #tpu.memory_space<vmem>>, vector<1x16x128xf32>
    %44 = vector.shape_cast %43 : vector<1x16x128xf32> to vector<16x128xf32>
    %45 = vector.shape_cast %42 : vector<16x128xf32> to vector<1x16x128xf32>
    tpu.vector_store %arg5[%c0_16, %c0_17, %c0_18], %45 {strides = array<i32>} : memref<1x16x128xf32, #tpu.memory_space<vmem>>, vector<1x16x128xf32>,
    return
  }
  func.func @transform_0(%arg0: i32) -> (i32, i32, i32) {
    %c0_i32 = arith.constant 0 : i32
    %c0_i32_0 = arith.constant 0 : i32
    %c0_i32_1 = arith.constant 0 : i32
    return %arg0, %c0_i32, %c0_i32_0 : i32, i32, i32
  }
  func.func @transform_1(%arg0: i32) -> (i32, i32) {
    %c0_i32 = arith.constant 0 : i32
    %c0_i32_0 = arith.constant 0 : i32
    %c0_i32_1 = arith.constant 0 : i32
    return %c0_i32, %c0_i32_0 : i32, i32
  }
  func.func @transform_2(%arg0: i32) -> (i32, i32) {
    %c0_i32 = arith.constant 0 : i32
    %c0_i32_0 = arith.constant 0 : i32
    %c0_i32_1 = arith.constant 0 : i32
    return %c0_i32, %c0_i32_0 : i32, i32
  }
  func.func @transform_3(%arg0: i32) -> (i32, i32) {
    %c0_i32 = arith.constant 0 : i32
    %c0_i32_0 = arith.constant 0 : i32
    %c0_i32_1 = arith.constant 0 : i32
    return %c0_i32, %c0_i32_0 : i32, i32
  }
  func.func @transform_4(%arg0: i32) -> (i32, i32, i32) {
    %c0_i32 = arith.constant 0 : i32
    %c0_i32_0 = arith.constant 0 : i32
    %c0_i32_1 = arith.constant 0 : i32
    return %arg0, %c0_i32, %c0_i32_0 : i32, i32, i32
  }
}

</mosaic_0001>

<bundles_post_ra>
// kernel: _device_forward.10
= control target key start
LH: loop header
LB: loop body
LE: loop exit
PB: predicated region body
PF: predicated region fallthrough
CT: control target
= control target key end

     0   :  { %s503_s18 = smov 0   ;;  %s549_s0 = inlined_call_operand.vmem [shape: f32[2,16,20], index: 0, kind: input, shape index: {}]   ;;  %s550_s1 = inlined_call_operand.vmem [shape: bf16[20,32], index: 1, kind: input, shape index: {}]   ;;  %s551_s2 = inlined_call_operand.vmem [shape: f32[1,32], index: 2, kind: input, shape index: {}]   ;;  %s552_s3 = inlined_call_operand.vmem [shape: f32[2,32], index: 3, kind: input, shape index: {}]   ;;  %s553_s4 = inlined_call_operand.vmem [shape: f32[16,32], index: 4, kind: input, shape index: {}]   ;;  %s554_s5 = inlined_call_operand.vmem [shape: bf16[2,16,32], index: 5, kind: output, shape index: {}]  }
   0x1 LB: > { %s413_s19 = sadd.s32 4294967295, %s469_s18   ;;  %p417_p0 = scmp.ge.s32.totalorder %s469_s18, 1  ;;  %s469_s18 = sphi %s503_s18, %s15_s18  }
   0x2   : > { %p187_p1 = scmp.lt.s32.totalorder %s469_s18, 3 }
   0x4   : > { %p188_p2 = pnand %p417_p0, %p187_p1 }
   0x5   : > { %v457_v0 = vld [vmem:[%s550_s1] sm:$0xff] (!%p188_p2)   ;;  %v471_v1 = vmov (!%p188_p2), 0.0   ;;  %v458_v2 = vld [vmem:[%s550_s1 + $0x8] ss:$0 sps:$4 sm:$0x33] (!%p188_p2)   ;;  %vm252_vm0 = vcmask (!%p188_p2), 1041408  }
   0x6   : > { %191 = sbr.rel (%p188_p2) target bundleno = 559 (0x22f), region = 40  ;;  %439 = vmatprep.subr.bf16.mxu0 (!%p188_p2), %v471_v1  ;;  %p215_p3 = scmp.lt.s32.totalorder (!%p188_p2), %s413_s19, 1  ;;  %v254_v3 = vsel (!%p188_p2), %vm252_vm0, %v458_v2, 0  ;;  %vm472_vm1 = vmmov (!%p188_p2), 0   ;;  %vm248_vm2 = vcmask (!%p188_p2), 162816   ;;  %vm299_vm3 = vcmask (!%p188_p2), 261120  }
   0x7   : > { %440 = vmatpush3.bf16.msra.mxu0 (!%p188_p2), %v457_v0  ;;  %443 = vmatprep.mubr.msk.bf16.mxu0 (!%p188_p2), %vm472_vm1, %v471_v1  ;;  %v422_v7 = vld [vmem:[%s551_s2] ss:$0 sm:$0xff] (!%p188_p2)  ;;  %v427_v35 = vld [vmem:[%s552_s3 + $0x1] ss:$0 sm:$0xff] (!%p188_p2)  ;;  %vm355_vm4 = vcmask (!%p188_p2), 257024   ;;  %v344_v47 = vld [vmem:[%s553_s4 + $0x8] sm:$0xff] (!%p188_p2) }
   0x8   : > { %441 = vmatprep.subr.bf16.mxu0 (!%p188_p2), %v471_v1  ;;  %v426_v33 = vld [vmem:[%s552_s3] ss:$0 sm:$0xff] (!%p188_p2) }
   0x9   : > { %v343_v42 = vld [vmem:[%s553_s4] sm:$0xff] (!%p188_p2) }
   0xb   : > { %442 = vmatpush3.bf16.msra.mxu0 (!%p188_p2), %v254_v3 }
   0xd   : > { %s556_s19 = smov (!%p215_p3, %s413_s19), 1 }
   0xe   : > { %s432_s24 = sshll.u32 %s556_s19, 4  ;;  %s433_s11 = sshll.u32 %s556_s19, 3 }
   0xf   : > { %s219_s27 = scalar_lea.vmem %s549_s0, %s432_s24  ;;  %s224_s14 = scalar_lea.vmem %s554_s5, %s433_s11 }
  0x10   : > { %v226_v4 = vld [vmem:[%s219_s27] sm:$0xff]  ;;  %v227_v5 = vld [vmem:[%s219_s27 + $0x8] sm:$0xff] }
  0x11   : > { %v231_v6 = vpack.c.bf16 %v227_v5, %v226_v4 }
  0x13   : > { %444 = vmatmul.mubr.msk.bf16.vlgmr.msra.gmra.mrb[0].mxu0 %vm248_vm2, %v231_v6 }
  0xe6   : > { %v290_v8 = vpop.f32.mrb[0].mxu0 }
  0xe7   : > { %v291_v9 = vadd.f32 %v422_v7, %v290_v8  ;;  %v445_v10 = vpop.f32.mrb[1].mxu0 }
  0xe8   : > { %v293_v11 = vpop.f32.mrb[2].mxu0 }
  0xe9   : > { %v294_v12 = vadd.f32 %v422_v7, %v293_v11  ;;  %v446_v13 = vpop.f32.mrb[3].mxu0  ;;  %v300_v14 = vsel %vm299_vm3, %v291_v9, 0.0 }
  0xea   : > { %301 = vadd.xlane.f32.xlu0 %v300_v14 }
  0xeb   : > { %v303_v15 = vsel %vm299_vm3, %v294_v12, 0.0 }
  0xee   : > { %304 = vadd.xlane.f32.xlu0 %v303_v15 }
 0x177   : > { %v302_v16 = vpop.xlane.xlu0 %301 }
 0x178   : > { %v307_v17 = vmul.f32 0.03125, %v302_v16 }
 0x17a   : > { %v309_v18 = vsub.f32 %v291_v9, %v307_v17 }
 0x17b   : > { %v305_v19 = vpop.xlane.xlu0 %304 }
 0x17c   : > { %v308_v20 = vmul.f32 0.03125, %v305_v19  ;;  %v311_v21 = vmul.f32 %v309_v18, %v309_v18 }
 0x17e   : > { %v310_v22 = vsub.f32 %v294_v12, %v308_v20  ;;  %v313_v23 = vsel %vm299_vm3, %v311_v21, 0.0 }
 0x17f   : > { %314 = vadd.xlane.f32.xlu1 %v313_v23 }
 0x180   : > { %v312_v24 = vmul.f32 %v310_v22, %v310_v22 }
 0x182   : > { %v316_v25 = vsel %vm299_vm3, %v312_v24, 0.0 }
 0x183   : > { %317 = vadd.xlane.f32.xlu1 %v316_v25 }
 0x20c   : > { %v315_v26 = vpop.xlane.xlu1 %314 }
 0x20d   : > { %v319_v27 = vmul.f32 0.03125, %v315_v26 }
 0x20f   : > { %v321_v28 = vadd.f32 1e-12, %v319_v27 }
 0x210   : > { %v318_v29 = vpop.xlane.xlu1 %317 }
 0x211   : > { %459 = vrsqrt.f32 %v321_v28  ;;  %v320_v30 = vmul.f32 0.03125, %v318_v29 }
 0x213   : > { %v322_v31 = vadd.f32 1e-12, %v320_v30 }
 0x215   : > { %461 = vrsqrt.f32 %v322_v31 }
 0x21b   : > { %v460_v32 = vpop.eup %459 }
 0x21c   : > { %v325_v34 = vmul.f32 %v460_v32, %v309_v18 }
 0x21e   : > { %v331_v36 = vmul.f32 %v426_v33, %v325_v34 }
 0x21f   : > { %v462_v37 = vpop.eup %461 }
 0x220   : > { %v337_v38 = vadd.f32 %v427_v35, %v331_v36  ;;  %v326_v39 = vmul.f32 %v462_v37, %v310_v22 }
 0x222   : > { %v339_v40 = vmax.f32 %v337_v38, 0.0  ;;  %v332_v41 = vmul.f32 %v426_v33, %v326_v39 }
 0x224   : > { %v341_v43 = vmul.f32 5.656854, %v339_v40  ;;  %v338_v44 = vadd.f32 %v427_v35, %v332_v41 }
 0x226   : > { %v345_v45 = vadd.f32 %v343_v42, %v341_v43  ;;  %v340_v46 = vmax.f32 %v338_v44, 0.0 }
 0x228   : > { %v434_v48 = vpack.c.bf16 %v345_v45, %v345_v45  ;;  %v342_v49 = vmul.f32 5.656854, %v340_v46 }
 0x22a   : > { %356 = vst.msk [vmem:[%s224_s14] sm:$0xf] %vm355_vm4, %v434_v48  ;;  %v346_v50 = vadd.f32 %v344_v47, %v342_v49 }
 0x22c   : > { %v435_v51 = vpack.c.bf16 %v346_v50, %v346_v50 }
 0x22e   : > { %357 = vst.msk [vmem:[%s224_s14 + $0x4] sm:$0xf] %vm355_vm4, %v435_v51 }
 0x22f PF: > { %s15_s18 = sadd.s32 1, %s469_s18  }
 0x230   : > { %p12_p4 = scmp.ge.s32.totalorder %s15_s18, 4  }
 0x232   :  { %14 = sbr.rel (!%p12_p4) target bundleno = 1 (0x1), region = 70 }

// kernel: _device_forward.12
= control target key start
LH: loop header
LB: loop body
LE: loop exit
PB: predicated region body
PF: predicated region fallthrough
CT: control target
= control target key end

     0   :  { %s436_s15 = smov 0   ;;  %s466_s0 = inlined_call_operand.vmem [shape: bf16[2,16,32], index: 0, kind: input, shape index: {}]   ;;  %s467_s1 = inlined_call_operand.vmem [shape: f32[2,32], index: 1, kind: input, shape index: {}]   ;;  %s468_s2 = inlined_call_operand.vmem [shape: bf16[32,128], index: 2, kind: input, shape index: {}]   ;;  %s469_s3 = inlined_call_operand.vmem [shape: f32[1,128], index: 3, kind: input, shape index: {}]   ;;  %s470_s4 = inlined_call_operand.vmem [shape: f32[2,16,128], index: 4, kind: output, shape index: {}]  }
   0x1 LB: > { %s351_s1 = sadd.s32 4294967295, %s407_s15   ;;  %p355_p0 = scmp.ge.s32.totalorder %s407_s15, 1  ;;  %s407_s15 = sphi %s436_s15, %s14_s15  }
   0x2   : > { %p162_p1 = scmp.lt.s32.totalorder %s407_s15, 3 }
   0x4   : > { %p163_p2 = pnand %p355_p0, %p162_p1 }
   0x5   : > { %v390_v0 = vld [vmem:[%s468_s2] sm:$0xff] (!%p163_p2)   ;;  %v409_v1 = vmov (!%p163_p2), 0.0   ;;  %v391_v2 = vld [vmem:[%s468_s2 + $0x8] sm:$0xff] (!%p163_p2)   ;;  %vm410_vm0 = vmmov (!%p163_p2), 0   ;;  %p188_p3 = scmp.lt.s32.totalorder (!%p163_p2), %s351_s1, 1  ;;  %vm229_vm1 = vcmask (!%p163_p2), 261120  }
   0x6   : > { %166 = sbr.rel (%p163_p2) target bundleno = 550 (0x226), region = 36  ;;  %372 = vmatprep.subr.bf16.mxu0 (!%p163_p2), %v409_v1  ;;  %376 = vmatprep.mubr.msk.bf16.mxu0 (!%p163_p2), %vm410_vm0, %v409_v1  ;;  %v360_v4 = vld [vmem:[%s469_s3] ss:$0 sm:$0xff] (!%p163_p2) }
   0x7   : > { %373 = vmatpush3.bf16.msra.mxu0 (!%p163_p2), %v390_v0 }
   0x8   : > { %374 = vmatprep.subr.bf16.mxu0 (!%p163_p2), %v409_v1 }
   0xb   : > { %375 = vmatpush3.bf16.msra.mxu0 (!%p163_p2), %v391_v2 }
   0xd   : > { %s472_s1 = smov (!%p188_p3, %s351_s1), 1 }
   0xe   : > { %s367_s20 = sshll.u32 %s472_s1, 3  ;;  %s368_s26 = sshll.u32 %s472_s1, 4 }
   0xf   : > { %s192_s23 = scalar_lea.vmem %s466_s0, %s367_s20  ;;  %s197_s29 = scalar_lea.vmem %s470_s4, %s368_s26 }
  0x10   : > { %v392_v3 = vld [vmem:[%s192_s23] sm:$0xff]  }
  0x11   : > { %377 = vmatmul.mubr.msk.bf16.vlgmr.msra.gmra.mrb[0].mxu0 %vm229_vm1, %v392_v3 }
  0xe4   : > { %v267_v5 = vpop.f32.mrb[0].mxu0 }
  0xe5   : > { %v268_v6 = vadd.f32 %v360_v4, %v267_v5  ;;  %v378_v7 = vpop.f32.mrb[1].mxu0 }
  0xe6   : > { %v270_v8 = vpop.f32.mrb[2].mxu0 }
  0xe7   : > { %274 = vmax.xlane.f32.xlu0 %v268_v6  ;;  %v379_v9 = vpop.f32.mrb[3].mxu0  ;;  %v271_v10 = vadd.f32 %v360_v4, %v270_v8 }
  0xeb   : > { %276 = vmax.xlane.f32.xlu0 %v271_v10 }
 0x174   : > { %v275_v11 = vpop.xlane.xlu0 %274 }
 0x175   : > { %v278_v12 = vsub.f32 %v268_v6, %v275_v11 }
 0x177   : > { %v280_v13 = vmul.f32 1.442695, %v278_v12 }
 0x178   : > { %v277_v14 = vpop.xlane.xlu0 %276 }
 0x179   : > { %v279_v15 = vsub.f32 %v271_v10, %v277_v14  ;;  %393 = vpow2.f32 %v280_v13 }
 0x17b   : > { %v282_v16 = vmul.f32 1.442695, %v279_v15 }
 0x17d   : > { %395 = vpow2.f32 %v282_v16 }
 0x183   : > { %v394_v17 = vpop.eup %393 }
 0x184   : > { %284 = vadd.xlane.f32.xlu1 %v394_v17 }
 0x187   : > { %v396_v18 = vpop.eup %395 }
 0x188   : > { %286 = vadd.xlane.f32.xlu1 %v396_v18 }
 0x211   : > { %v285_v19 = vpop.xlane.xlu1 %284 }
 0x212   : > { %397 = vlog2.f32 %v285_v19 }
 0x215   : > { %v287_v20 = vpop.xlane.xlu1 %286 }
 0x216   : > { %399 = vlog2.f32 %v287_v20 }
 0x21c   : > { %v398_v21 = vpop.eup %397 }
 0x21d   : > { %v289_v22 = vmul.f32 0.6931472, %v398_v21 }
 0x21f   : > { %v292_v23 = vsub.f32 %v278_v12, %v289_v22 }
 0x220   : > { %v400_v24 = vpop.eup %399 }
 0x221   : > { %294 = vst [vmem:[%s197_s29] sm:$0xff] %v292_v23  ;;  %v291_v25 = vmul.f32 0.6931472, %v400_v24 }
 0x223   : > { %v293_v26 = vsub.f32 %v279_v15, %v291_v25 }
 0x225   : > { %295 = vst [vmem:[%s197_s29 + $0x8] sm:$0xff] %v293_v26 }
 0x226 PF: > { %s14_s15 = sadd.s32 1, %s407_s15  }
 0x227   : > { %p11_p4 = scmp.ge.s32.totalorder %s14_s15, 4  }
 0x229   :  { %13 = sbr.rel (!%p11_p4) target bundleno = 1 (0x1), region = 66 }

// kernel: _device_forward.11
= control target key start
LH: loop header
LB: loop body
LE: loop exit
PB: predicated region body
PF: predicated region fallthrough
CT: control target
= control target key end

     0   :  { %s2590_s0 = inlined_call_operand.vmem [shape: s32[2], index: 0, kind: input, shape index: {}]   ;;  %s2591_s1 = inlined_call_operand.vmem [shape: bf16[2,16,32], index: 1, kind: input, shape index: {}]   ;;  %s2592_s2 = inlined_call_operand.vmem [shape: f32[2,2,32], index: 2, kind: input, shape index: {}]   ;;  %s2593_s3 = inlined_call_operand.vmem [shape: bf16[2,32,96], index: 3, kind: input, shape index: {}]   ;;  %s2594_s4 = inlined_call_operand.vmem [shape: f32[2,1,96], index: 4, kind: input, shape index: {}]   ;;  %s2595_s5 = inlined_call_operand.vmem [shape: bf16[2,32,32], index: 5, kind: input, shape index: {}]   ;;  %s2596_s6 = inlined_call_operand.vmem [shape: f32[2,1,32], index: 6, kind: input, shape index: {}]   ;;  %s2597_s7 = inlined_call_operand.vmem [shape: f32[2,2,32], index: 7, kind: input, shape index: {}]   ;;  %s2598_s8 = inlined_call_operand.vmem [shape: bf16[2,32,64], index: 8, kind: input, shape index: {}]   ;;  %s2599_s9 = inlined_call_operand.vmem [shape: f32[2,1,64], index: 9, kind: input, shape index: {}]   ;;  %s2600_s10 = inlined_call_operand.vmem [shape: bf16[2,64,32], index: 10, kind: input, shape index: {}]   ;;  %s2601_s11 = inlined_call_operand.vmem [shape: f32[2,1,32], index: 11, kind: input, shape index: {}]   ;;  %s2602_s12 = inlined_call_operand.vmem [shape: f32[2,32], index: 12, kind: input, shape index: {}]   ;;  %s2603_s13 = inlined_call_operand.vmem [shape: bf16[2,16,32], index: 13, kind: output, shape index: {}]  }
   0x1   :  { %2608 = sst [smem:[#allocation11_spill]] %s2591_s1  ;;  %s18_s27 = sshll.u32 %s2590_s0, 4  ;;  %s19_s27 = int_to_ptr.vmem [resolvable:$true] %s18_s27 }
   0x2   :  { %2609 = sst [smem:[#allocation12_spill]] %s2592_s2  ;;  %s2079_s28 = scalar_lea.vmem %s19_s27, 16 }
   0x3   :  { %2610 = sst [smem:[#allocation13_spill]] %s2593_s3  ;;  %p2080_p0 = scmp.ne.s32.totalorder %s19_s27, %s2079_s28 }
   0x4   :  { %2611 = sst [smem:[#allocation14_spill]] %s2595_s5  ;;  %p2084_p1 = scmp.lt.s32.totalorder %s19_s27, %s19_s27 }
   0x5   :  { %2612 = sst [smem:[#allocation15_spill]] %s2596_s6  ;;  %p2085_p2 = scmp.lt.s32.totalorder %s2079_s28, %s2079_s28 }
   0x6   :  { %2613 = sst [smem:[#allocation16_spill]] %s2602_s12 }
   0x7   :  { %p2086_p3 = por %p2085_p2, %p2084_p1 }
   0x9   :  { %p2087_p4 = pnand %p2086_p3, %p2080_p0 }
   0xb   :  { %2090 = shalt.err (!%p2087_p4)  }
   0xc   :  { %s2133_s29 = smov [#allocation4]  }
   0xd   :  { %21 = dma.vmem_to_smem %s19_s27, 16, %s2133_s29, [#allocation3] }
   0xe   :  { %2111 = dma.done.wait [#allocation3], 16 }
   0xf   :  { %2112 = vsyncadd [#allocation3], 4294967280 }
  0x10   :  { %23 = sfence }
  0x11   :  { %s2211_s30 = smov 0   ;;  %s2213_s14 = smov 0  }
  0x12   :  { %s2215_s15 = smov 0   ;;  %s2217_s0 = smov 0  }
  0x13   :  { %s2219_s16 = smov 0  }
  0x14 LB: > { %2614 = sst [smem:[#allocation6_spill]] %s2123_s15  ;;  %s38_s17 = sadd.s32 1, %s2123_s15  ;;  %s2131_s16 = sphi %s2219_s16, %s29_s16   ;;  %s2127_s0 = sphi %s2217_s0, %s2641_s0   ;;  %s2123_s15 = sphi %s2215_s15, %s2640_s15   ;;  %s2119_s14 = sphi %s2213_s14, %s2639_s14   ;;  %s2115_s30 = sphi %s2211_s30, %s2638_s30  }
  0x15   : > { %2615 = sst [smem:[#allocation7_spill]] %s2127_s0  ;;  %s41_s18 = sadd.s32 1, %s2127_s0 }
  0x16   : > { %2616 = sst [smem:[#allocation8_spill]] %s2131_s16  ;;  %p39_p5 = scmp.ge.s32.totalorder %s38_s17, 2 }
  0x17   : > { %p1772_p6 = scmp.ge.s32.totalorder %s2131_s16, 1  ;;  %p471_p7 = scmp.lt.s32.totalorder %s2131_s16, 5 }
  0x18   : > { %s2643_s17 = smov (%p39_p5, %s38_s17), 0  ;;  %s2645_s18 = smov (!%p39_p5, %s41_s18), %s2127_s0 }
  0x19   : > { %2617 = sst [smem:[#allocation9_spill]] %s2643_s17  ;;  %p472_p8 = pnand %p1772_p6, %p471_p7 }
  0x1a   : > { %p43_p9 = scmp.ge.s32.totalorder %s2645_s18, 2  ;;  %p553_p10 = scmp.lt.s32.totalorder (!%p472_p8), %s2119_s14, 1  ;;  %v605_v0 = vlaneseq (!%p472_p8) }
  0x1b   : > { %475 = sbr.rel (%p472_p8) target bundleno = 2818 (0xb02), region = 68  ;;  %p558_p11 = scmp.lt.s32.totalorder (!%p472_p8), %s2115_s30, 1 }
  0x1c   : > { %s2647_s18 = smov (%p43_p9, %s2645_s18), 0  ;;  %s604_s19 = sld [smem:[#allocation4 + %s2119_s14]] (!%p472_p8)  ;;  %v2248_v1 = vand.u32 (!%p472_p8), 127, %v605_v0 }
  0x1d   : > { %2618 = sst [smem:[#allocation10_spill]] %s2647_s18  ;;  %s2619_s1 = sld [smem:[#allocation11_spill]] (!%p472_p8) }
  0x1e   : > { %s2620_s2 = sld [smem:[#allocation12_spill]] (!%p472_p8)  ;;  %s2621_s3 = sld [smem:[#allocation13_spill]] (!%p472_p8) }
  0x1f   : > { %s2622_s5 = sld [smem:[#allocation14_spill]] (!%p472_p8)  ;;  %p1787_p12 = scmp.ne.s32.totalorder (!%p472_p8), %s2115_s30, 0 }
  0x22   : > { %s2649_s14 = smov (!%p553_p10, %s2119_s14), 1  ;;  %v607_v2 = vstv %s604_s19  ;;  %vm617_vm1 = vcmask (!%p1787_p12), 261120  }
  0x23   : > { %s2245_s20 = scalar_select %p558_p11, %s2115_s30, 1  ;;  %vm2279_vm0 = vcmp.lt.s32.totalorder %v2248_v1, %v607_v2 }
  0x24   : > { %s1835_s21 = sshll.u32 %s2649_s14, 3 }
  0x25   : > { %s557_s24 = scalar_lea.vmem %s2619_s1, %s1835_s21  ;;  %s1775_s25 = sshll.u32 %s2245_s20, 1 }
  0x26   : > { %s2257_s28 = scalar_lea.vmem %s2620_s2, %s1775_s25  ;;  %s1836_s29 = sshll.u32 %s2245_s20, 4  ;;  %v1846_v4 = vld [vmem:[%s557_s24] sm:$0xff] (!%p1787_p12)  }
  0x27   : > { %s2263_s0 = scalar_lea.vmem %s2621_s3, %s1836_s29  ;;  %s2272_s1 = scalar_lea.vmem %s2622_s5, %s1836_s29  ;;  %v1847_v5 = vunpack.c.l.bf16 (!%p1787_p12), %v1846_v4  ;;  %v1848_v6 = vunpack.c.h.bf16 (!%p1787_p12), %v1846_v4 }
  0x28   : > { %s2286_s15 = scalar_lea.vmem %s2597_s7, %s1775_s25  ;;  %s2291_s22 = scalar_lea.vmem %s2598_s8, %s1836_s29 }
  0x29   : > { %s589_s12 = scalar_lea.vmem %s2599_s9, %s2245_s20  ;;  %s1839_s26 = sshll.u32 %s2245_s20, 5  ;;  %618 = vst.msk [vmem:[#allocation2] sm:$0xff] (!%p1787_p12), %vm617_vm1, %v1847_v5  ;;  %619 = vst.msk [vmem:[#allocation2 + $0x8] sm:$0xff] (!%p1787_p12), %vm617_vm1, %v1848_v6 }
  0x2a   : > { %s2301_s3 = scalar_lea.vmem %s2600_s10, %s1839_s26  ;;  %s597_s25 = scalar_lea.vmem %s2601_s11, %s2245_s20 }
  0x2b   : > { %s2310_s19 = scalar_lea.vmem %s2603_s13, %s1835_s21  ;;  %612 = sbr.rel (%p1787_p12) target bundleno = 50 (0x32), region = 72 }
  0x32 PF: > { %v2313_v7 = vld [vmem:[#allocation2] sm:$0xff]  ;;  %vm623_vm2 = vcmask 261120   ;;  %v2315_v8 = vld [vmem:[#allocation2 + $0x8] sm:$0xff]  ;;  %v2134_v22 = vmov 0.0   ;;  %vm2135_vm3 = vmmov 0   ;;  %v2336_v30 = vshrl.u32 %v605_v0, 7  ;;  %s2626_s6 = scalar_lea.vmem %s2594_s4, %s2245_s20 }
  0x33   : > { %v624_v9 = vsel %vm623_vm2, %v2313_v7, 0.0  ;;  %v627_v10 = vsel %vm623_vm2, %v2315_v8, 0.0  ;;  %v2025_v21 = vld [vmem:[%s2263_s0] sm:$0xff]   ;;  %1879 = vmatprep.subr.bf16.mxu0 %v2134_v22  ;;  %1887 = vmatprep.subr.bf16.mxu1 %v2134_v22  ;;  %v2026_v23 = vld [vmem:[%s2263_s0 + $0x8] sm:$0xff]   ;;  %vm831_vm4 = vcmp.ge.s32.totalorder %v2248_v1, 8  ;;  %vm832_vm5 = vcmp.lt.s32.totalorder %v2248_v1, 16 }
  0x34   : > { %625 = vadd.xlane.f32.xlu0 %v624_v9  ;;  %1880 = vmatpush3.bf16.msra.mxu0 %v2025_v21  ;;  %v653_v31 = vsub.s32 0, %v2336_v30  ;;  %v622_v32 = vld [vmem:[%s2257_s28] sm:$0x3]  ;;  %v659_v36 = vsub.s32 1, %v2336_v30  ;;  %vm1001_vm6 = vcmp.ge.s32.totalorder %v2248_v1, 16  ;;  %vm1002_vm7 = vcmp.lt.s32.totalorder %v2248_v1, 24  ;;  %vm2359_vm10 = vmand %vm831_vm4, %vm832_vm5 }
  0x35   : > { %1883 = vmatprep.mubr.msk.bf16.mxu0 %vm2135_vm3, %v2134_v22  ;;  %1881 = vmatprep.subr.bf16.mxu0 %v2134_v22  ;;  %v1788_v45 = vld [vmem:[%s2626_s6] ss:$0 sm:$0xff]  ;;  %vm1129_vm8 = vcmp.ge.s32.totalorder %v2248_v1, 24  ;;  %vm1130_vm9 = vcmp.lt.s32.totalorder %v2248_v1, 32  ;;  %vm2363_vm11 = vmand %vm1001_vm6, %vm1002_vm7  ;;  %vm733_vm12 = vcmp.lt.s32.totalorder %v2248_v1, 8  ;;  %s2136_s0 = smov 96  }
  0x36   : > { %1889 = vmatprep.mubr.msk.bf16.mxu1 %vm2135_vm3, %v2134_v22  ;;  %v654_v35 = vrot.slane %v622_v32, %v653_v31  ;;  %v660_v40 = vrot.slane %v622_v32, %v659_v36  ;;  %vm2370_vm13 = vmand %vm1129_vm8, %vm1130_vm9  ;;  %vm796_vm14 = vcmask 130048   ;;  %s2137_s16 = smov 64   ;;  %s2633_s28 = sld [smem:[#allocation15_spill]]  ;;  %v1816_v30 = vld [vmem:[%s589_s12] ss:$0 sm:$0xff]  ;;  %vm1537_vm5 = vcmask 257024  }
  0x37   : > { %vm1794_vm15 = vmpackc.low %vm2359_vm10, %vm2359_vm10  ;;  %p1828_p13 = scmp.ne.s32.totalorder %s2115_s30, 1 }
  0x38   : > { %628 = vadd.xlane.f32.xlu0 %v627_v10  ;;  %1882 = vmatpush3.bf16.msra.mxu0 %v2026_v23  ;;  %vm1803_vm1 = vmpackc.low %vm2363_vm11, %vm2363_vm11  ;;  %s2635_s14 = sld [smem:[#allocation16_spill]] (!%p1828_p13) }
  0x39   : > { %1893 = vmatprep.subr.bf16.mxu0 %v2134_v22  ;;  %vm1808_vm4 = vmpackc.low %vm2370_vm13, %vm2370_vm13 }
  0x3c   : > { %s2634_s29 = scalar_lea.vmem %s2633_s28, %s2245_s20 }
  0xc1   : > { %v626_v11 = vpop.xlane.xlu0 %625 }
  0xc2   : > { %v631_v12 = vmul.f32 0.03125, %v626_v11 }
  0xc4   : > { %v633_v13 = vsub.f32 %v2313_v7, %v631_v12 }
  0xc5   : > { %v629_v14 = vpop.xlane.xlu0 %628 }
  0xc6   : > { %v632_v15 = vmul.f32 0.03125, %v629_v14  ;;  %v635_v16 = vmul.f32 %v633_v13, %v633_v13 }
  0xc8   : > { %v634_v17 = vsub.f32 %v2315_v8, %v632_v15  ;;  %v637_v18 = vsel %vm623_vm2, %v635_v16, 0.0 }
  0xc9   : > { %638 = vadd.xlane.f32.xlu1 %v637_v18 }
  0xca   : > { %v636_v19 = vmul.f32 %v634_v17, %v634_v17 }
  0xcc   : > { %v640_v20 = vsel %vm623_vm2, %v636_v19, 0.0 }
  0xcd   : > { %641 = vadd.xlane.f32.xlu1 %v640_v20 }
 0x156   : > { %v639_v24 = vpop.xlane.xlu1 %638 }
 0x157   : > { %v643_v25 = vmul.f32 0.03125, %v639_v24 }
 0x159   : > { %v645_v26 = vadd.f32 1e-12, %v643_v25 }
 0x15a   : > { %v642_v27 = vpop.xlane.xlu1 %641 }
 0x15b   : > { %2035 = vrsqrt.f32 %v645_v26  ;;  %v644_v28 = vmul.f32 0.03125, %v642_v27 }
 0x15d   : > { %v646_v29 = vadd.f32 1e-12, %v644_v28 }
 0x15f   : > { %2037 = vrsqrt.f32 %v646_v29 }
 0x165   : > { %v2036_v33 = vpop.eup %2035 }
 0x166   : > { %v649_v34 = vmul.f32 %v2036_v33, %v633_v13 }
 0x168   : > { %v655_v39 = vmul.f32 %v654_v35, %v649_v34 }
 0x169   : > { %v2038_v37 = vpop.eup %2037 }
 0x16a   : > { %v650_v38 = vmul.f32 %v2038_v37, %v634_v17  ;;  %v661_v42 = vadd.f32 %v660_v40, %v655_v39 }
 0x16c   : > { %v656_v41 = vmul.f32 %v654_v35, %v650_v38 }
 0x16e   : > { %v662_v43 = vadd.f32 %v660_v40, %v656_v41 }
 0x170   : > { %v667_v44 = vpack.c.bf16 %v662_v43, %v661_v42 }
 0x172   : > { %1884 = vmatmul.mubr.msk.bf16.vlgmr.msra.gmra.mrb[0].mxu0 %vm623_vm2, %v667_v44 }
 0x173   : > { %1895 = vmatprep.mubr.msk.bf16.mxu0 %vm2135_vm3, %v2134_v22 }
 0x245   : > { %v724_v47 = vpop.f32.mrb[0].mxu0 }
 0x246   : > { %v2367_v49 = vadd.f32 %v1788_v45, %v724_v47  ;;  %v1885_v50 = vpop.f32.mrb[1].mxu0 }
 0x247   : > { %v727_v52 = vpop.f32.mrb[2].mxu0 }
 0x248   : > { %v2374_v53 = vadd.f32 %v1788_v45, %v727_v52  ;;  %v1886_v54 = vpop.f32.mrb[3].mxu0  ;;  %v737_v55 = vsel %vm733_vm12, %v2367_v49, 0.0  ;;  %v836_v56 = vsel %vm2359_vm10, %v2367_v49, 0.0  ;;  %v1006_v57 = vsel %vm2363_vm11, %v2367_v49, 0.0 }
 0x249   : > { %v1134_v58 = vsel %vm2370_vm13, %v2367_v49, 0.0 }
 0x24a   : > { %v731_v59 = vpack.c.bf16 %v2374_v53, %v2367_v49  ;;  %v738_v60 = vsel %vm733_vm12, %v2374_v53, 0.0  ;;  %v837_v61 = vsel %vm2359_vm10, %v2374_v53, 0.0  ;;  %v1007_v62 = vsel %vm2363_vm11, %v2374_v53, 0.0 }
 0x24b   : > { %v739_v63 = vpack.c.bf16 %v738_v60, %v737_v55  ;;  %v838_v0 = vpack.c.bf16 %v837_v61, %v836_v56  ;;  %v1008_v2 = vpack.c.bf16 %v1007_v62, %v1006_v57  ;;  %v1135_v4 = vsel %vm2370_vm13, %v2374_v53, 0.0 }
 0x24c   : > { %741 = vrot.lane.b32.xlu0 %v731_v59, %s2136_s0  ;;  %v1136_v5 = vpack.c.bf16 %v1135_v4, %v1134_v58  ;;  %v2020_v6 = vpack.i.bf16 %v2374_v53, %v2367_v49 }
 0x2be   : > { %v742_v9 = vpop.permute.xlu0 %741 }
 0x2bf   : > { %v747_v10 = vsel %vm623_vm2, %v742_v9, 0 }
 0x2c0   : > { %1888 = vmatpush3.bf16.xpose.msra.mxu1 %v747_v10  ;;  %1894 = vmatpush3.bf16.xpose.msra.mxu0 %v747_v10 }
 0x2c1   : > { %1911 = vmatprep.subr.bf16.mxu0 %v2134_v22  ;;  %1899 = vmatprep.subr.bf16.mxu1 %v2134_v22 }
 0x2c7   : > { %1890 = vmatmul.mubr.msk.bf16.vlgmr.msra.gmra.mrb[0].mxu1 %vm623_vm2, %v739_v63  ;;  %1896 = vmatmul.mubr.msk.bf16.vlgmr.msra.gmra.mrb[4].mxu0 %vm623_vm2, %v838_v0 }
 0x2c8   : > { %1912 = vmatpush3.bf16.xpose.msra.mxu0 %v747_v10  ;;  %1913 = vmatprep.mubr.msk.bf16.mxu0 %vm2135_vm3, %v2134_v22 }
 0x2c9   : > { %1923 = vmatprep.subr.bf16.mxu0 %v2134_v22  ;;  %1901 = vmatprep.mubr.msk.bf16.mxu1 %vm2135_vm3, %v2134_v22 }
 0x2cf   : > { %1914 = vmatmul.mubr.msk.bf16.vlgmr.msra.gmra.mrb[8].mxu0 %vm623_vm2, %v1008_v2 }
 0x2d0   : > { %1924 = vmatpush3.bf16.xpose.msra.mxu0 %v747_v10  ;;  %1925 = vmatprep.mubr.msk.bf16.mxu0 %vm2135_vm3, %v2134_v22 }
 0x2d1   : > { %1935 = vmatprep.subr.bf16.mxu0 %v2134_v22 }
 0x2d7   : > { %1926 = vmatmul.mubr.msk.bf16.vlgmr.msra.gmra.mrb[12].mxu0 %vm623_vm2, %v1136_v5 }
 0x2d8   : > { %1939 = vmatprep.mubr.msk.bf16.mxu0 %vm2135_vm3, %v2134_v22 }
 0x39a   : > { %v783_v11 = vpop.f32.mrb[0].mxu1  ;;  %v876_v12 = vpop.f32.mrb[4].mxu0 }
 0x39b   : > { %v883_v13 = vmul.f32 0.35355338, %v876_v12  ;;  %v1891_v14 = vpop.f32.mrb[1].mxu1  ;;  %v1897_v15 = vpop.f32.mrb[5].mxu0  ;;  %v790_v24 = vmul.f32 0.35355338, %v783_v11 }
 0x39c   : > { %v786_v16 = vpop.f32.mrb[2].mxu1  ;;  %v879_v17 = vpop.f32.mrb[6].mxu0 }
 0x39d   : > { %v885_v18 = vsel %vm2279_vm0, %v883_v13, -1e+30  ;;  %v884_v19 = vmul.f32 0.35355338, %v879_v17  ;;  %v1892_v20 = vpop.f32.mrb[3].mxu1  ;;  %v1898_v21 = vpop.f32.mrb[7].mxu0 }
 0x39e   : > { %v887_v23 = vsel %vm796_vm14, %v885_v18, -inf  ;;  %v794_v28 = vsel %vm2279_vm0, %v790_v24, -1e+30  ;;  %v791_v29 = vmul.f32 0.35355338, %v786_v16 }
 0x39f   : > { %888 = vmax.xlane.f32.xlu1 %v887_v23  ;;  %v886_v25 = vsel %vm2279_vm0, %v884_v19, -1e+30  ;;  %v797_v37 = vsel %vm796_vm14, %v794_v28, -inf }
 0x3a0   : > { %v890_v27 = vsel %vm796_vm14, %v886_v25, -inf  ;;  %v795_v38 = vsel %vm2279_vm0, %v791_v29, -1e+30 }
 0x3a1   : > { %v800_v41 = vsel %vm796_vm14, %v795_v38, -inf }
 0x3a2   : > { %v1046_v26 = vpop.f32.mrb[8].mxu0 }
 0x3a3   : > { %891 = vmax.xlane.f32.xlu1 %v890_v27  ;;  %v1915_v32 = vpop.f32.mrb[9].mxu0  ;;  %v1053_v35 = vmul.f32 0.35355338, %v1046_v26 }
 0x3a4   : > { %v1049_v33 = vpop.f32.mrb[10].mxu0 }
 0x3a5   : > { %v1916_v34 = vpop.f32.mrb[11].mxu0  ;;  %v1055_v39 = vsel %vm2279_vm0, %v1053_v35, -1e+30  ;;  %v1054_v42 = vmul.f32 0.35355338, %v1049_v33 }
 0x3a6   : > { %v1057_v52 = vsel %vm796_vm14, %v1055_v39, -inf }
 0x3a7   : > { %798 = vmax.xlane.f32.xlu1 %v797_v37  ;;  %v1056_v55 = vsel %vm2279_vm0, %v1054_v42, -1e+30 }
 0x3a8   : > { %v1060_v57 = vsel %vm796_vm14, %v1056_v55, -inf }
 0x3aa   : > { %v1174_v40 = vpop.f32.mrb[12].mxu0 }
 0x3ab   : > { %v1181_v43 = vmul.f32 0.35355338, %v1174_v40  ;;  %801 = vmax.xlane.f32.xlu1 %v800_v41  ;;  %v1927_v44 = vpop.f32.mrb[13].mxu0 }
 0x3ac   : > { %v1177_v45 = vpop.f32.mrb[14].mxu0  ;;  %v2027_v44 = vld [vmem:[%s2272_s1] sm:$0xff]  }
 0x3ad   : > { %v1183_v47 = vsel %vm2279_vm0, %v1181_v43, -1e+30  ;;  %v1928_v50 = vpop.f32.mrb[15].mxu0  ;;  %v1182_v56 = vmul.f32 0.35355338, %v1177_v45  ;;  %1936 = vmatpush3.bf16.msra.mxu0 %v2027_v44  ;;  %v2029_v44 = vld [vmem:[%s2291_s22] sm:$0xff]  }
 0x3ae   : > { %v1185_v54 = vsel %vm796_vm14, %v1183_v47, -inf  ;;  %1937 = vmatprep.subr.bf16.mxu0 %v2134_v22 }
 0x3af   : > { %1058 = vmax.xlane.f32.xlu1 %v1057_v52  ;;  %1186 = vmax.xlane.f32.xlu0 %v1185_v54  ;;  %v1184_v58 = vsel %vm2279_vm0, %v1182_v56, -1e+30  ;;  %vm1798_vm0 = vmpackc.low %vm733_vm12, %vm733_vm12 }
 0x3b0   : > { %v1188_v59 = vsel %vm796_vm14, %v1184_v58, -inf }
 0x3b3   : > { %1061 = vmax.xlane.f32.xlu1 %v1060_v57 }
 0x3b7   : > { %1189 = vmax.xlane.f32.xlu1 %v1188_v59 }
 0x42c   : > { %v889_v60 = vpop.xlane.xlu1 %888 }
 0x42d   : > { %v893_v61 = vsub.f32 %v885_v18, %v889_v60 }
 0x42f   : > { %v895_v62 = vmul.f32 1.442695, %v893_v61 }
 0x430   : > { %v892_v63 = vpop.xlane.xlu1 %891 }
 0x431   : > { %2039 = vpow2.f32 %v895_v62  ;;  %v894_v0 = vsub.f32 %v886_v25, %v892_v63 }
 0x433   : > { %v897_v5 = vmul.f32 1.442695, %v894_v0 }
 0x434   : > { %v799_v2 = vpop.xlane.xlu1 %798 }
 0x435   : > { %v803_v4 = vsub.f32 %v794_v28, %v799_v2 }
 0x437   : > { %v805_v9 = vmul.f32 1.442695, %v803_v4 }
 0x438   : > { %v802_v10 = vpop.xlane.xlu1 %801 }
 0x439   : > { %2041 = vpow2.f32 %v805_v9  ;;  %v804_v11 = vsub.f32 %v795_v38, %v802_v10 }
 0x43a   : > { %2043 = vpow2.f32 %v897_v5 }
 0x43b   : > { %v2445_v12 = vpop.eup %2039  ;;  %v807_v3 = vmul.f32 1.442695, %v804_v11 }
 0x43c   : > { %v1059_v13 = vpop.xlane.xlu1 %1058  ;;  %v1187_v14 = vpop.xlane.xlu0 %1186  ;;  %v899_v15 = vsel %vm796_vm14, %v2445_v12, 0.0 }
 0x43d   : > { %v1063_v16 = vsub.f32 %v1055_v39, %v1059_v13  ;;  %900 = vadd.xlane.f32.xlu1 %v899_v15  ;;  %2045 = vpow2.f32 %v807_v3  ;;  %v1191_v18 = vsub.f32 %v1183_v47, %v1187_v14  ;;  %v2028_v15 = vld [vmem:[%s2272_s1 + $0x8] sm:$0xff]  }
 0x43e   : > { %1938 = vmatpush3.bf16.msra.mxu0 %v2028_v15 }
 0x43f   : > { %v1065_v17 = vmul.f32 1.442695, %v1063_v16  ;;  %v1193_v23 = vmul.f32 1.442695, %v1191_v18  ;;  %1943 = vmatprep.subr.bf16.mxu0 %v2134_v22 }
 0x440   : > { %v1062_v19 = vpop.xlane.xlu1 %1061 }
 0x441   : > { %2047 = vpow2.f32 %v1065_v17  ;;  %v1064_v20 = vsub.f32 %v1056_v55, %v1062_v19 }
 0x443   : > { %v2449_v21 = vpop.eup %2041  ;;  %v1067_v24 = vmul.f32 1.442695, %v1064_v20 }
 0x444   : > { %v809_v25 = vsel %vm796_vm14, %v2449_v21, 0.0  ;;  %v2044_v26 = vpop.eup %2043  ;;  %v1190_v39 = vpop.xlane.xlu1 %1189 }
 0x445   : > { %2049 = vpow2.f32 %v1067_v24  ;;  %810 = vadd.xlane.f32.xlu1 %v809_v25  ;;  %v902_v27 = vsel %vm796_vm14, %v2044_v26, 0.0  ;;  %v1192_v40 = vsub.f32 %v1184_v58, %v1190_v39 }
 0x446   : > { %2051 = vpow2.f32 %v1193_v23  ;;  %v1815_v23 = vld [vmem:[%s2634_s29] ss:$0 sm:$0xff] }
 0x447   : > { %v2046_v28 = vpop.eup %2045  ;;  %v1195_v41 = vmul.f32 1.442695, %v1192_v40 }
 0x448   : > { %v812_v33 = vsel %vm796_vm14, %v2046_v28, 0.0 }
 0x449   : > { %903 = vadd.xlane.f32.xlu1 %v902_v27  ;;  %2053 = vpow2.f32 %v1195_v41 }
 0x44b   : > { %v2454_v29 = vpop.eup %2047 }
 0x44c   : > { %v1069_v32 = vsel %vm796_vm14, %v2454_v29, 0.0 }
 0x44d   : > { %1070 = vadd.xlane.f32.xlu0 %v1069_v32  ;;  %813 = vadd.xlane.f32.xlu1 %v812_v33 }
 0x44f   : > { %v2050_v34 = vpop.eup %2049 }
 0x450   : > { %v1072_v35 = vsel %vm796_vm14, %v2050_v34, 0.0  ;;  %v2460_v37 = vpop.eup %2051 }
 0x451   : > { %1073 = vadd.xlane.f32.xlu0 %v1072_v35  ;;  %v1197_v38 = vsel %vm796_vm14, %v2460_v37, 0.0 }
 0x453   : > { %v2054_v42 = vpop.eup %2053 }
 0x454   : > { %v1200_v43 = vsel %vm796_vm14, %v2054_v42, 0.0 }
 0x455   : > { %1198 = vadd.xlane.f32.xlu0 %v1197_v38 }
 0x45e   : > { %2021 = vrot.lane.b32.xlu1 %v2020_v6, %s2137_s16 }
 0x482   : > { %1201 = vadd.xlane.f32.xlu1 %v1200_v43 }
 0x4ca   : > { %v901_v45 = vpop.xlane.xlu1 %900 }
 0x4cb   : > { %2055 = vrcp.f32 %v901_v45  ;;  %v2030_v45 = vld [vmem:[%s2291_s22 + $0x8] sm:$0xff]   ;;  %s2636_s22 = smov (!%p1828_p13), %s2635_s14 }
 0x4d2   : > { %v811_v47 = vpop.xlane.xlu1 %810 }
 0x4d5   : > { %v2056_v53 = vpop.eup %2055 }
 0x4d6   : > { %v904_v50 = vpop.xlane.xlu1 %903  ;;  %v907_v57 = vmul.f32 %v2056_v53, %v2445_v12 }
 0x4d7   : > { %2057 = vrcp.f32 %v904_v50  ;;  %v2032_v50 = vld [vmem:[%s2301_s3 + $0x8] sm:$0xff]  }
 0x4da   : > { %v814_v52 = vpop.xlane.xlu1 %813  ;;  %v1071_v59 = vpop.xlane.xlu0 %1070 }
 0x4db   : > { %2059 = vrcp.f32 %v814_v52 }
 0x4dc   : > { %2061 = vrcp.f32 %v811_v47  ;;  %v2031_v47 = vld [vmem:[%s2301_s3] sm:$0xff]  }
 0x4de   : > { %v2022_v49 = vpop.permute.xlu1 %2021  ;;  %v1074_v46 = vpop.xlane.xlu0 %1073 }
 0x4df   : > { %v2024_v6 = vunpack.i.h.bf16 %v2022_v49  ;;  %v2023_v54 = vunpack.i.l.bf16 %v2022_v49  ;;  %2063 = vrcp.f32 %v1074_v46 }
 0x4e0   : > { %2065 = vrcp.f32 %v1071_v59 }
 0x4e1   : > { %v2058_v55 = vpop.eup %2057  ;;  %v1795_v56 = vpack.c.bf16 %v2024_v6, %v2023_v54 }
 0x4e2   : > { %v908_v58 = vmul.f32 %v2058_v55, %v2044_v26  ;;  %v1199_v48 = vpop.xlane.xlu0 %1198 }
 0x4e3   : > { %1900 = vmatpush3.bf16.msk.msra.mxu1 %vm1794_vm15, %v1795_v56  ;;  %2067 = vrcp.f32 %v1199_v48 }
 0x4e4   : > { %v909_v60 = vpack.c.bf16 %v908_v58, %v907_v57  ;;  %1905 = vmatprep.subr.bf16.mxu1 %v2134_v22 }
 0x4e5   : > { %v2060_v61 = vpop.eup %2059 }
 0x4e6   : > { %1902 = vmatmul.mubr.msk.bf16.vlgmr.msra.gmra.mrb[4].mxu1 %vm796_vm14, %v909_v60  ;;  %v2062_v62 = vpop.eup %2061  ;;  %v818_v63 = vmul.f32 %v2060_v61, %v2046_v28 }
 0x4e7   : > { %1906 = vmatpush3.bf16.msk.msra.mxu1 %vm1798_vm0, %v1795_v56  ;;  %1907 = vmatprep.mubr.msk.bf16.mxu1 %vm2135_vm3, %v2134_v22  ;;  %v817_v0 = vmul.f32 %v2062_v62, %v2449_v21 }
 0x4e8   : > { %1917 = vmatprep.subr.bf16.mxu1 %v2134_v22 }
 0x4e9   : > { %v819_v2 = vpack.c.bf16 %v818_v63, %v817_v0  ;;  %v2064_v1 = vpop.eup %2063 }
 0x4ea   : > { %v2066_v4 = vpop.eup %2065  ;;  %v1078_v5 = vmul.f32 %v2064_v1, %v2050_v34 }
 0x4eb   : > { %v1077_v9 = vmul.f32 %v2066_v4, %v2454_v29  ;;  %v2033_v4 = vld [vmem:[%s2301_s3 + $0x10] sm:$0xff]  }
 0x4ed   : > { %v1079_v10 = vpack.c.bf16 %v1078_v5, %v1077_v9  ;;  %v2068_v12 = vpop.eup %2067 }
 0x4ee   : > { %v1205_v13 = vmul.f32 %v2068_v12, %v2460_v37 }
 0x4f2   : > { %1908 = vmatmul.mubr.msk.bf16.vlgmr.msra.gmra.mrb[4].mxu1 %vm796_vm14, %v819_v2 }
 0x4f3   : > { %1918 = vmatpush3.bf16.msk.msra.mxu1 %vm1803_vm1, %v1795_v56  ;;  %1919 = vmatprep.mubr.msk.bf16.mxu1 %vm2135_vm3, %v2134_v22 }
 0x4f4   : > { %1929 = vmatprep.subr.bf16.mxu1 %v2134_v22 }
 0x4fe   : > { %1920 = vmatmul.mubr.msk.bf16.vlgmr.msra.gmra.mrb[4].mxu1 %vm796_vm14, %v1079_v10 }
 0x4ff   : > { %1930 = vmatpush3.bf16.msk.msra.mxu1 %vm1808_vm4, %v1795_v56  ;;  %1931 = vmatprep.mubr.msk.bf16.mxu1 %vm2135_vm3, %v2134_v22  ;;  %v1329_v56 = vld [vmem:[%s2286_s15] sm:$0x3] }
 0x500   : > { %1951 = vmatprep.subr.bf16.mxu1 %v2134_v22  ;;  %v1359_v58 = vrot.slane %v1329_v56, %v653_v31  ;;  %v1365_v46 = vrot.slane %v1329_v56, %v659_v36  ;;  %v2034_v31 = vld [vmem:[%s2301_s3 + $0x18] sm:$0xff]  }
 0x50f   : > { %v1202_v11 = vpop.xlane.xlu1 %1201 }
 0x510   : > { %2069 = vrcp.f32 %v1202_v11 }
 0x51a   : > { %v2070_v3 = vpop.eup %2069 }
 0x51b   : > { %v1206_v51 = vmul.f32 %v2070_v3, %v2054_v42 }
 0x51d   : > { %v1207_v14 = vpack.c.bf16 %v1206_v51, %v1205_v13  ;;  %v1825_v51 = vld [vmem:[%s597_s25] ss:$0 sm:$0xff] }
 0x51f   : > { %1932 = vmatmul.mubr.msk.bf16.vlgmr.msra.gmra.mrb[4].mxu1 %vm796_vm14, %v1207_v14 }
 0x520   : > { %1959 = vmatprep.mubr.msk.bf16.mxu1 %vm2135_vm3, %v2134_v22  ;;  %1952 = vmatpush3.bf16.msra.mxu1 %v2031_v47  ;;  %v1830_v47 = vld [vmem:[%s2636_s22 + $0x1] ss:$0 sm:$0xff] (!%p1828_p13) }
 0x521   : > { %1953 = vmatprep.subr.bf16.mxu1 %v2134_v22 }
 0x524   : > { %1954 = vmatpush3.bf16.msra.mxu1 %v2032_v50 }
 0x525   : > { %1955 = vmatprep.subr.bf16.mxu1 %v2134_v22 }
 0x528   : > { %1956 = vmatpush3.bf16.msra.mxu1 %v2033_v4 }
 0x529   : > { %1957 = vmatprep.subr.bf16.mxu1 %v2134_v22 }
 0x52c   : > { %1958 = vmatpush3.bf16.msra.mxu1 %v2034_v31 }
 0x5f2   : > { %v1248_v16 = vpop.f32.mrb[4].mxu1 }
 0x5f3   : > { %v1933_v17 = vpop.f32.mrb[5].mxu1 }
 0x5f4   : > { %v1251_v18 = vpop.f32.mrb[6].mxu1 }
 0x5f5   : > { %v1261_v19 = vpack.c.bf16 %v1251_v18, %v1248_v16  ;;  %v1934_v20 = vpop.f32.mrb[7].mxu1 }
 0x5f7   : > { %1940 = vmatmul.mubr.msk.bf16.vlgmr.msra.gmra.mrb[16].mxu0 %vm623_vm2, %v1261_v19 }
 0x5f8   : > { %1947 = vmatprep.mubr.msk.bf16.mxu0 %vm2135_vm3, %v2134_v22  ;;  %1944 = vmatpush3.bf16.msra.mxu0 %v2029_v44  ;;  %vm1471_vm3 = vcmask 523264   ;;  %v1829_v44 = vld [vmem:[%s2635_s14] ss:$0 sm:$0xff] (!%p1828_p13) }
 0x5f9   : > { %1945 = vmatprep.subr.bf16.mxu0 %v2134_v22 }
 0x5fc   : > { %1946 = vmatpush3.bf16.msra.mxu0 %v2030_v45 }
 0x6ca   : > { %v1311_v21 = vpop.f32.mrb[16].mxu0 }
 0x6cb   : > { %v1318_v24 = vadd.f32 %v1311_v21, %v2313_v7  ;;  %v1941_v25 = vpop.f32.mrb[17].mxu0 }
 0x6cc   : > { %v1314_v26 = vpop.f32.mrb[18].mxu0 }
 0x6cd   : > { %v2513_v27 = vadd.f32 %v1815_v23, %v1318_v24  ;;  %v1319_v28 = vadd.f32 %v1314_v26, %v2315_v8  ;;  %v1942_v29 = vpop.f32.mrb[19].mxu0 }
 0x6cf   : > { %v2516_v32 = vadd.f32 %v1815_v23, %v1319_v28  ;;  %v1330_v33 = vsel %vm623_vm2, %v2513_v27, 0.0 }
 0x6d0   : > { %1331 = vadd.xlane.f32.xlu0 %v1330_v33 }
 0x6d1   : > { %v1333_v34 = vsel %vm623_vm2, %v2516_v32, 0.0 }
 0x6d4   : > { %1334 = vadd.xlane.f32.xlu0 %v1333_v34 }
 0x75d   : > { %v1332_v7 = vpop.xlane.xlu0 %1331 }
 0x75e   : > { %v1336_v35 = vmul.f32 0.03125, %v1332_v7 }
 0x760   : > { %v1338_v37 = vsub.f32 %v2513_v27, %v1336_v35 }
 0x761   : > { %v1335_v38 = vpop.xlane.xlu0 %1334 }
 0x762   : > { %v1337_v8 = vmul.f32 0.03125, %v1335_v38  ;;  %v1340_v39 = vmul.f32 %v1338_v37, %v1338_v37 }
 0x764   : > { %v1339_v40 = vsub.f32 %v2516_v32, %v1337_v8  ;;  %v1342_v41 = vsel %vm623_vm2, %v1340_v39, 0.0 }
 0x765   : > { %1343 = vadd.xlane.f32.xlu0 %v1342_v41 }
 0x766   : > { %v1341_v42 = vmul.f32 %v1339_v40, %v1339_v40 }
 0x768   : > { %v1345_v43 = vsel %vm623_vm2, %v1341_v42, 0.0 }
 0x769   : > { %1346 = vadd.xlane.f32.xlu0 %v1345_v43 }
 0x7f2   : > { %v1344_v52 = vpop.xlane.xlu0 %1343 }
 0x7f3   : > { %v1348_v49 = vmul.f32 0.03125, %v1344_v52 }
 0x7f5   : > { %v1350_v53 = vadd.f32 1e-12, %v1348_v49 }
 0x7f6   : > { %v1347_v6 = vpop.xlane.xlu0 %1346 }
 0x7f7   : > { %2071 = vrsqrt.f32 %v1350_v53  ;;  %v1349_v54 = vmul.f32 0.03125, %v1347_v6 }
 0x7f9   : > { %v1351_v55 = vadd.f32 1e-12, %v1349_v54 }
 0x7fb   : > { %2073 = vrsqrt.f32 %v1351_v55 }
 0x801   : > { %v2072_v57 = vpop.eup %2071 }
 0x802   : > { %v1354_v59 = vmul.f32 %v2072_v57, %v1338_v37 }
 0x804   : > { %v1360_v61 = vmul.f32 %v1359_v58, %v1354_v59 }
 0x805   : > { %v2074_v60 = vpop.eup %2073 }
 0x806   : > { %v1355_v62 = vmul.f32 %v2074_v60, %v1339_v40  ;;  %v1366_v0 = vadd.f32 %v1365_v46, %v1360_v61 }
 0x808   : > { %v1361_v63 = vmul.f32 %v1359_v58, %v1355_v62 }
 0x80a   : > { %v1367_v2 = vadd.f32 %v1365_v46, %v1361_v63 }
 0x80c   : > { %v1372_v1 = vpack.c.bf16 %v1367_v2, %v1366_v0 }
 0x80e   : > { %1948 = vmatmul.mubr.msk.bf16.vlgmr.msra.gmra.mrb[20].mxu0 %vm623_vm2, %v1372_v1 }
 0x8e1   : > { %v1429_v36 = vpop.f32.mrb[20].mxu0 }
 0x8e2   : > { %v1430_v5 = vadd.f32 %v1816_v30, %v1429_v36  ;;  %v1949_v9 = vpop.f32.mrb[21].mxu0 }
 0x8e3   : > { %v1432_v10 = vpop.f32.mrb[22].mxu0 }
 0x8e4   : > { %v1433_v48 = vadd.f32 %v1816_v30, %v1432_v10  ;;  %v1950_v11 = vpop.f32.mrb[23].mxu0  ;;  %v1436_v12 = vmax.f32 %v1430_v5, 0.0 }
 0x8e6   : > { %v1437_v3 = vmax.f32 %v1433_v48, 0.0 }
 0x8e8   : > { %v1446_v13 = vpack.c.bf16 %v1437_v3, %v1436_v12 }
 0x8ea   : > { %1960 = vmatmul.mubr.msk.bf16.vlgmr.msra.gmra.mrb[8].mxu1 %vm1471_vm3, %v1446_v13 }
 0x9bd   : > { %v1509_v22 = vpop.f32.mrb[8].mxu1 }
 0x9be   : > { %v1516_v14 = vadd.f32 %v1509_v22, %v2513_v27  ;;  %v1961_v15 = vpop.f32.mrb[9].mxu1 }
 0x9bf   : > { %v1512_v16 = vpop.f32.mrb[10].mxu1 }
 0x9c0   : > { %v1525_v17 = vadd.f32 %v1825_v51, %v1516_v14  ;;  %v1517_v18 = vadd.f32 %v1512_v16, %v2516_v32  ;;  %v1962_v19 = vpop.f32.mrb[11].mxu1  ;;  %1543 = sbr.rel (%p1828_p13) target bundleno = 2818 (0xb02), region = 76 }
 0x9c2   : > { %1527 = vst.msk [vmem:[#allocation2] sm:$0xff] %vm623_vm2, %v1525_v17  ;;  %v1841_v20 = vpack.c.bf16 %v1525_v17, %v1525_v17  ;;  %v1526_v21 = vadd.f32 %v1825_v51, %v1517_v18  ;;  %v1546_v24 = vsel (!%p1828_p13), %vm623_vm2, %v1525_v17, 0.0 }
 0x9c3   : > { %1547 = vadd.xlane.f32.xlu0 (!%p1828_p13), %v1546_v24 }
 0x9c4   : > { %1538 = vst.msk [vmem:[%s2310_s19] sm:$0xf] %vm1537_vm5, %v1841_v20  ;;  %v1842_v23 = vpack.c.bf16 %v1526_v21, %v1526_v21  ;;  %v1549_v25 = vsel (!%p1828_p13), %vm623_vm2, %v1526_v21, 0.0 }
 0x9c5   : > { %1528 = vst.msk [vmem:[#allocation2 + $0x8] sm:$0xff] %vm623_vm2, %v1526_v21 }
 0x9c6   : > { %1539 = vst.msk [vmem:[%s2310_s19 + $0x4] sm:$0xf] %vm1537_vm5, %v1842_v23 }
 0x9c7   : > { %1550 = vadd.xlane.f32.xlu0 %v1549_v25 }
 0xa50   : > { %v1548_v26 = vpop.xlane.xlu0 %1547 }
 0xa51   : > { %v1552_v27 = vmul.f32 0.03125, %v1548_v26 }
 0xa53   : > { %v1554_v28 = vsub.f32 %v1525_v17, %v1552_v27 }
 0xa54   : > { %v1551_v29 = vpop.xlane.xlu0 %1550 }
 0xa55   : > { %v1553_v32 = vmul.f32 0.03125, %v1551_v29  ;;  %v1556_v33 = vmul.f32 %v1554_v28, %v1554_v28 }
 0xa57   : > { %v1555_v34 = vsub.f32 %v1526_v21, %v1553_v32  ;;  %v1558_v7 = vsel %vm623_vm2, %v1556_v33, 0.0 }
 0xa58   : > { %1559 = vadd.xlane.f32.xlu1 %v1558_v7 }
 0xa59   : > { %v1557_v35 = vmul.f32 %v1555_v34, %v1555_v34 }
 0xa5b   : > { %v1561_v37 = vsel %vm623_vm2, %v1557_v35, 0.0 }
 0xa5c   : > { %1562 = vadd.xlane.f32.xlu1 %v1561_v37 }
 0xae5   : > { %v1560_v38 = vpop.xlane.xlu1 %1559 }
 0xae6   : > { %v1564_v8 = vmul.f32 0.03125, %v1560_v38 }
 0xae8   : > { %v1566_v39 = vadd.f32 1e-12, %v1564_v8 }
 0xae9   : > { %v1563_v40 = vpop.xlane.xlu1 %1562 }
 0xaea   : > { %2075 = vrsqrt.f32 %v1566_v39  ;;  %v1565_v41 = vmul.f32 0.03125, %v1563_v40 }
 0xaec   : > { %v1567_v42 = vadd.f32 1e-12, %v1565_v41 }
 0xaee   : > { %2077 = vrsqrt.f32 %v1567_v42 }
 0xaf4   : > { %v2076_v43 = vpop.eup %2075 }
 0xaf5   : > { %v1570_v45 = vmul.f32 %v2076_v43, %v1554_v28 }
 0xaf7   : > { %v1576_v50 = vmul.f32 %v1829_v44, %v1570_v45 }
 0xaf8   : > { %v2078_v52 = vpop.eup %2077 }
 0xaf9   : > { %v1582_v49 = vadd.f32 %v1830_v47, %v1576_v50  ;;  %v1571_v53 = vmul.f32 %v2078_v52, %v1555_v34 }
 0xafb   : > { %v1843_v6 = vpack.c.bf16 %v1582_v49, %v1582_v49  ;;  %v1577_v54 = vmul.f32 %v1829_v44, %v1571_v53 }
 0xafd   : > { %1592 = vst.msk [vmem:[%s2310_s19] sm:$0xf] %vm1537_vm5, %v1843_v6  ;;  %v1583_v55 = vadd.f32 %v1830_v47, %v1577_v54 }
 0xaff   : > { %v1844_v56 = vpack.c.bf16 %v1583_v55, %v1583_v55 }
 0xb01   : > { %1593 = vst.msk [vmem:[%s2310_s19 + $0x4] sm:$0xf] %vm1537_vm5, %v1844_v56 }
 0xb02 PF: > { %s2637_s26 = sld [smem:[#allocation8_spill]]  ;;  %s2638_s30 = sld [smem:[#allocation6_spill]] }
 0xb03   : > { %s2639_s14 = sld [smem:[#allocation7_spill]]  ;;  %s2640_s15 = sld [smem:[#allocation9_spill]] }
 0xb04   : > { %s2641_s0 = sld [smem:[#allocation10_spill]] }
 0xb08   : > { %s29_s16 = sadd.s32 1, %s2637_s26  }
 0xb09   : > { %p26_p0 = scmp.ge.s32.totalorder %s29_s16, 6  }
 0xb0b   :  { %28 = sbr.rel (!%p26_p0) target bundleno = 20 (0x14), region = 136 }

// kernel: _device_forward.13
= control target key start
LH: loop header
LB: loop body
LE: loop exit
PB: predicated region body
PF: predicated region fallthrough
CT: control target
= control target key end

     0   :  { %s652_s12 = smov 0   ;;  %s654_s13 = smov 0   ;;  %s703_s0 = inlined_call_operand.vmem [shape: bf16[2,16,32], index: 0, kind: input, shape index: {}]   ;;  %s704_s1 = inlined_call_operand.vmem [shape: bf16[1,2,32,32], index: 1, kind: input, shape index: {}]   ;;  %s705_s2 = inlined_call_operand.vmem [shape: f32[1,2,1,32], index: 2, kind: input, shape index: {}]   ;;  %s706_s3 = inlined_call_operand.vmem [shape: bf16[2,2,16,32], index: 3, kind: output, shape index: {}]  }
   0x1   :  { %s656_s14 = smov 0  }
   0x2 LB: > { %s25_s15 = sadd.s32 1, %s624_s13  ;;  %p520_p0 = scmp.ge.s32.totalorder %s628_s14, 1  ;;  %s628_s14 = sphi %s656_s14, %s13_s14   ;;  %s624_s13 = sphi %s654_s13, %s708_s13   ;;  %s620_s12 = sphi %s652_s12, %s707_s12  }
   0x3   : > { %p27_p1 = scmp.ge.s32.totalorder %s25_s15, 2  ;;  %p170_p2 = scmp.lt.s32.totalorder %s628_s14, 3 }
   0x5   : > { %s710_s15 = smov (%p27_p1, %s25_s15), 0  ;;  %p171_p3 = pnand %p520_p0, %p170_p2 }
   0x6   : > { %v601_v0 = vld [vmem:[%s704_s1] sm:$0xff] (!%p171_p3)   ;;  %v630_v1 = vmov (!%p171_p3), 0.0   ;;  %v602_v2 = vld [vmem:[%s704_s1 + $0x10] sm:$0xff] (!%p171_p3)   ;;  %v603_v3 = vld [vmem:[%s704_s1 + $0x8] sm:$0xff] (!%p171_p3)   ;;  %vm631_vm0 = vmmov (!%p171_p3), 0   ;;  %p208_p4 = scmp.lt.s32.totalorder (!%p171_p3), %s620_s12, 1 }
   0x7   : > { %174 = sbr.rel (%p171_p3) target bundleno = 237 (0xed), region = 32  ;;  %559 = vmatprep.subr.bf16.mxu0 (!%p171_p3), %v630_v1  ;;  %567 = vmatprep.subr.bf16.mxu1 (!%p171_p3), %v630_v1  ;;  %v604_v4 = vld [vmem:[%s704_s1 + $0x18] sm:$0xff] (!%p171_p3)   ;;  %vm264_vm1 = vcmask (!%p171_p3), 261120   ;;  %v525_v6 = vld [vmem:[%s705_s2] ss:$0 sm:$0xff] (!%p171_p3)  ;;  %vm317_vm2 = vcmask (!%p171_p3), 257024  }
   0x8   : > { %560 = vmatpush3.bf16.msra.mxu0 (!%p171_p3), %v601_v0  ;;  %563 = vmatprep.mubr.msk.bf16.mxu0 (!%p171_p3), %vm631_vm0, %v630_v1  ;;  %v537_v7 = vld [vmem:[%s705_s2 + $0x1] ss:$0 sm:$0xff] (!%p171_p3) }
   0x9   : > { %568 = vmatpush3.bf16.msra.mxu1 (!%p171_p3), %v602_v2  ;;  %561 = vmatprep.subr.bf16.mxu0 (!%p171_p3), %v630_v1 }
   0xa   : > { %569 = vmatprep.subr.bf16.mxu1 (!%p171_p3), %v630_v1  ;;  %571 = vmatprep.mubr.msk.bf16.mxu1 (!%p171_p3), %vm631_vm0, %v630_v1 }
   0xc   : > { %562 = vmatpush3.bf16.msra.mxu0 (!%p171_p3), %v603_v3 }
   0xd   : > { %570 = vmatpush3.bf16.msra.mxu1 (!%p171_p3), %v604_v4 }
   0xe   : > { %s712_s12 = smov (!%p208_p4, %s620_s12), 1 }
   0xf   : > { %s547_s24 = sshll.u32 %s712_s12, 3  ;;  %s548_s5 = sshll.u32 %s712_s12, 4 }
  0x10   : > { %s212_s27 = scalar_lea.vmem %s703_s0, %s547_s24  ;;  %s231_s8 = scalar_lea.vmem %s706_s3, %s548_s5 }
  0x11   : > { %v605_v5 = vld [vmem:[%s212_s27] sm:$0xff]  }
  0x12   : > { %564 = vmatmul.mubr.msk.bf16.vlgmr.msra.gmra.mrb[0].mxu0 %vm264_vm1, %v605_v5  ;;  %572 = vmatmul.mubr.msk.bf16.vlgmr.msra.gmra.mrb[0].mxu1 %vm264_vm1, %v605_v5 }
  0xe5   : > { %v302_v8 = vpop.f32.mrb[0].mxu0  ;;  %v379_v9 = vpop.f32.mrb[0].mxu1 }
  0xe6   : > { %v303_v10 = vadd.f32 %v525_v6, %v302_v8  ;;  %v380_v11 = vadd.f32 %v537_v7, %v379_v9  ;;  %v565_v12 = vpop.f32.mrb[1].mxu0  ;;  %v573_v13 = vpop.f32.mrb[1].mxu1 }
  0xe7   : > { %v305_v14 = vpop.f32.mrb[2].mxu0  ;;  %v382_v15 = vpop.f32.mrb[2].mxu1 }
  0xe8   : > { %v549_v16 = vpack.c.bf16 %v303_v10, %v303_v10  ;;  %v551_v17 = vpack.c.bf16 %v380_v11, %v380_v11  ;;  %v306_v18 = vadd.f32 %v525_v6, %v305_v14  ;;  %v383_v19 = vadd.f32 %v537_v7, %v382_v15  ;;  %v566_v20 = vpop.f32.mrb[3].mxu0  ;;  %v574_v21 = vpop.f32.mrb[3].mxu1 }
  0xea   : > { %318 = vst.msk [vmem:[%s231_s8] sm:$0xf] %vm317_vm2, %v549_v16  ;;  %543 = vst.msk [vmem:[%s231_s8 + $0x8] sm:$0xf] %vm317_vm2, %v551_v17  ;;  %v550_v22 = vpack.c.bf16 %v306_v18, %v306_v18  ;;  %v552_v23 = vpack.c.bf16 %v383_v19, %v383_v19 }
  0xec   : > { %319 = vst.msk [vmem:[%s231_s8 + $0x4] sm:$0xf] %vm317_vm2, %v550_v22  ;;  %544 = vst.msk [vmem:[%s231_s8 + $0xc] sm:$0xf] %vm317_vm2, %v552_v23 }
  0xed PF: > { %s13_s14 = sadd.s32 1, %s628_s14   ;;  %s707_s12 = smov %s624_s13 }
  0xee   : > { %p10_p5 = scmp.ge.s32.totalorder %s13_s14, 4   ;;  %s708_s13 = smov %s710_s15 }
  0xf0   :  { %12 = sbr.rel (!%p10_p5) target bundleno = 2 (0x2), region = 71 }

// kernel: _device_forward.14
= control target key start
LH: loop header
LB: loop body
LE: loop exit
PB: predicated region body
PF: predicated region fallthrough
CT: control target
= control target key end

     0   :  { %s401_s15 = smov 0   ;;  %s430_s0 = inlined_call_operand.vmem [shape: f32[2,16,8], index: 0, kind: input, shape index: {}]   ;;  %s431_s1 = inlined_call_operand.vmem [shape: bf16[8,32], index: 1, kind: input, shape index: {}]   ;;  %s432_s2 = inlined_call_operand.vmem [shape: f32[1,32], index: 2, kind: input, shape index: {}]   ;;  %s433_s3 = inlined_call_operand.vmem [shape: f32[16,32], index: 3, kind: input, shape index: {}]   ;;  %s434_s4 = inlined_call_operand.vmem [shape: bf16[2,16,32], index: 4, kind: output, shape index: {}]  }
   0x1 LB: > { %s329_s16 = sadd.s32 4294967295, %s372_s15   ;;  %p333_p0 = scmp.ge.s32.totalorder %s372_s15, 1  ;;  %s372_s15 = sphi %s401_s15, %s14_s15  }
   0x2   : > { %p162_p1 = scmp.lt.s32.totalorder %s372_s15, 3 }
   0x4   : > { %p163_p2 = pnand %p333_p0, %p162_p1 }
   0x5   : > { %v201_v0 = vld [vmem:[%s431_s1] sm:$0xf] (!%p163_p2)  ;;  %vm214_vm0 = vcmask (!%p163_p2), 1043456   ;;  %p188_p3 = scmp.lt.s32.totalorder (!%p163_p2), %s329_s16, 1  ;;  %v374_v1 = vmov (!%p163_p2), 0.0   ;;  %vm375_vm1 = vmmov (!%p163_p2), 0  }
   0x6   : > { %166 = sbr.rel (%p163_p2) target bundleno = 240 (0xf0), region = 36  ;;  %350 = vmatprep.subr.bf16.mxu0 (!%p163_p2), %v374_v1  ;;  %v216_v2 = vsel (!%p163_p2), %vm214_vm0, %v201_v0, 0  ;;  %352 = vmatprep.mubr.msk.bf16.mxu0 (!%p163_p2), %vm375_vm1, %v374_v1  ;;  %vm210_vm2 = vcmask (!%p163_p2), 64512   ;;  %v338_v6 = vld [vmem:[%s432_s2] ss:$0 sm:$0xff] (!%p163_p2)  ;;  %v260_v12 = vld [vmem:[%s433_s3 + $0x8] sm:$0xff] (!%p163_p2) }
   0x7   : > { %351 = vmatpush3.bf16.msra.mxu0 (!%p163_p2), %v216_v2  ;;  %v259_v8 = vld [vmem:[%s433_s3] sm:$0xff] (!%p163_p2)  ;;  %vm271_vm3 = vcmask (!%p163_p2), 257024  }
   0xd   : > { %s436_s16 = smov (!%p188_p3, %s329_s16), 1 }
   0xe   : > { %s344_s19 = sshll.u32 %s436_s16, 4  ;;  %s345_s27 = sshll.u32 %s436_s16, 3 }
   0xf   : > { %s192_s22 = scalar_lea.vmem %s430_s0, %s344_s19  ;;  %s197_s6 = scalar_lea.vmem %s434_s4, %s345_s27 }
  0x10   : > { %v199_v3 = vld [vmem:[%s192_s22] sm:$0xff]  ;;  %v200_v4 = vld [vmem:[%s192_s22 + $0x8] sm:$0xff] }
  0x11   : > { %v202_v5 = vpack.c.bf16 %v200_v4, %v199_v3 }
  0x13   : > { %353 = vmatmul.mubr.msk.bf16.vlgmr.msra.gmra.mrb[0].mxu0 %vm210_vm2, %v202_v5 }
  0xe6   : > { %v252_v7 = vpop.f32.mrb[0].mxu0 }
  0xe7   : > { %v253_v9 = vadd.f32 %v338_v6, %v252_v7  ;;  %v354_v10 = vpop.f32.mrb[1].mxu0 }
  0xe8   : > { %v255_v11 = vpop.f32.mrb[2].mxu0 }
  0xe9   : > { %v261_v13 = vadd.f32 %v259_v8, %v253_v9  ;;  %v256_v14 = vadd.f32 %v338_v6, %v255_v11  ;;  %v355_v15 = vpop.f32.mrb[3].mxu0 }
  0xeb   : > { %v346_v16 = vpack.c.bf16 %v261_v13, %v261_v13  ;;  %v262_v17 = vadd.f32 %v260_v12, %v256_v14 }
  0xed   : > { %272 = vst.msk [vmem:[%s197_s6] sm:$0xf] %vm271_vm3, %v346_v16  ;;  %v347_v18 = vpack.c.bf16 %v262_v17, %v262_v17 }
  0xef   : > { %273 = vst.msk [vmem:[%s197_s6 + $0x4] sm:$0xf] %vm271_vm3, %v347_v18 }
  0xf0 PF: > { %s14_s15 = sadd.s32 1, %s372_s15  }
  0xf1   : > { %p11_p4 = scmp.ge.s32.totalorder %s14_s15, 4  }
  0xf3   :  { %13 = sbr.rel (!%p11_p4) target bundleno = 1 (0x1), region = 66 }

// kernel: _device_forward.16
= control target key start
LH: loop header
LB: loop body
LE: loop exit
PB: predicated region body
PF: predicated region fallthrough
CT: control target
= control target key end

     0   :  { %s483_s15 = smov 0   ;;  %s524_s0 = inlined_call_operand.vmem [shape: bf16[2,16,32], index: 0, kind: input, shape index: {}]   ;;  %s525_s1 = inlined_call_operand.vmem [shape: f32[2,32], index: 1, kind: input, shape index: {}]   ;;  %s526_s2 = inlined_call_operand.vmem [shape: bf16[32,128], index: 2, kind: input, shape index: {}]   ;;  %s527_s3 = inlined_call_operand.vmem [shape: f32[1,128], index: 3, kind: input, shape index: {}]   ;;  %s528_s4 = inlined_call_operand.vmem [shape: f32[2,16,128], index: 4, kind: output, shape index: {}]  }
   0x1 LB: > { %s390_s16 = sadd.s32 4294967295, %s454_s15   ;;  %p394_p0 = scmp.ge.s32.totalorder %s454_s15, 1  ;;  %s454_s15 = sphi %s483_s15, %s14_s15  }
   0x2   : > { %p162_p1 = scmp.lt.s32.totalorder %s454_s15, 3 }
   0x4   : > { %p163_p2 = pnand %p394_p0, %p162_p1 }
   0x5   : > { %p188_p3 = scmp.lt.s32.totalorder (!%p163_p2), %s390_s16, 1  ;;  %vm205_vm0 = vcmask (!%p163_p2), 261120   ;;  %v434_v15 = vld [vmem:[%s526_s2] sm:$0xff] (!%p163_p2)   ;;  %v456_v16 = vmov (!%p163_p2), 0.0   ;;  %v435_v17 = vld [vmem:[%s526_s2 + $0x8] sm:$0xff] (!%p163_p2)   ;;  %vm457_vm1 = vmmov (!%p163_p2), 0  }
   0x6   : > { %166 = sbr.rel (%p163_p2) target bundleno = 869 (0x365), region = 36  ;;  %416 = vmatprep.subr.bf16.mxu0 (!%p163_p2), %v456_v16  ;;  %420 = vmatprep.mubr.msk.bf16.mxu0 (!%p163_p2), %vm457_vm1, %v456_v16  ;;  %v399_v26 = vld [vmem:[%s525_s1] ss:$0 sm:$0xff] (!%p163_p2)  ;;  %v400_v30 = vld [vmem:[%s525_s1 + $0x1] ss:$0 sm:$0xff] (!%p163_p2) }
   0x7   : > { %417 = vmatpush3.bf16.msra.mxu0 (!%p163_p2), %v434_v15  ;;  %v401_v35 = vld [vmem:[%s527_s3] ss:$0 sm:$0xff] (!%p163_p2) }
   0x8   : > { %418 = vmatprep.subr.bf16.mxu0 (!%p163_p2), %v456_v16 }
   0xb   : > { %419 = vmatpush3.bf16.msra.mxu0 (!%p163_p2), %v435_v17 }
   0xd   : > { %s530_s16 = smov (!%p188_p3, %s390_s16), 1 }
   0xe   : > { %s407_s17 = sshll.u32 %s530_s16, 3  ;;  %s408_s5 = sshll.u32 %s530_s16, 4 }
   0xf   : > { %s192_s20 = scalar_lea.vmem %s524_s0, %s407_s17  ;;  %s197_s8 = scalar_lea.vmem %s528_s4, %s408_s5 }
  0x10   : > { %v410_v0 = vld [vmem:[%s192_s20] sm:$0xff]  }
  0x11   : > { %v411_v1 = vunpack.c.l.bf16 %v410_v0  ;;  %v412_v2 = vunpack.c.h.bf16 %v410_v0 }
  0x13   : > { %v206_v3 = vsel %vm205_vm0, %v411_v1, 0.0  ;;  %v209_v4 = vsel %vm205_vm0, %v412_v2, 0.0 }
  0x14   : > { %207 = vadd.xlane.f32.xlu0 %v206_v3 }
  0x18   : > { %210 = vadd.xlane.f32.xlu0 %v209_v4 }
  0xa1   : > { %v208_v5 = vpop.xlane.xlu0 %207 }
  0xa2   : > { %v213_v6 = vmul.f32 0.03125, %v208_v5 }
  0xa4   : > { %v215_v7 = vsub.f32 %v411_v1, %v213_v6 }
  0xa5   : > { %v211_v8 = vpop.xlane.xlu0 %210 }
  0xa6   : > { %v214_v9 = vmul.f32 0.03125, %v211_v8  ;;  %v217_v10 = vmul.f32 %v215_v7, %v215_v7 }
  0xa8   : > { %v216_v11 = vsub.f32 %v412_v2, %v214_v9  ;;  %v219_v12 = vsel %vm205_vm0, %v217_v10, 0.0 }
  0xa9   : > { %220 = vadd.xlane.f32.xlu1 %v219_v12 }
  0xaa   : > { %v218_v13 = vmul.f32 %v216_v11, %v216_v11 }
  0xac   : > { %v222_v14 = vsel %vm205_vm0, %v218_v13, 0.0 }
  0xad   : > { %223 = vadd.xlane.f32.xlu1 %v222_v14 }
 0x136   : > { %v221_v18 = vpop.xlane.xlu1 %220 }
 0x137   : > { %v225_v19 = vmul.f32 0.03125, %v221_v18 }
 0x139   : > { %v227_v20 = vadd.f32 1e-12, %v225_v19 }
 0x13a   : > { %v224_v21 = vpop.xlane.xlu1 %223 }
 0x13b   : > { %436 = vrsqrt.f32 %v227_v20  ;;  %v226_v22 = vmul.f32 0.03125, %v224_v21 }
 0x13d   : > { %v228_v23 = vadd.f32 1e-12, %v226_v22 }
 0x13f   : > { %438 = vrsqrt.f32 %v228_v23 }
 0x145   : > { %v437_v24 = vpop.eup %436 }
 0x146   : > { %v231_v25 = vmul.f32 %v437_v24, %v215_v7 }
 0x148   : > { %v237_v29 = vmul.f32 %v399_v26, %v231_v25 }
 0x149   : > { %v439_v27 = vpop.eup %438 }
 0x14a   : > { %v232_v28 = vmul.f32 %v439_v27, %v216_v11  ;;  %v243_v32 = vadd.f32 %v400_v30, %v237_v29 }
 0x14c   : > { %v238_v31 = vmul.f32 %v399_v26, %v232_v28 }
 0x14e   : > { %v244_v33 = vadd.f32 %v400_v30, %v238_v31 }
 0x150   : > { %v249_v34 = vpack.c.bf16 %v244_v33, %v243_v32 }
 0x152   : > { %421 = vmatmul.mubr.msk.bf16.vlgmr.msra.gmra.mrb[0].mxu0 %vm205_vm0, %v249_v34 }
 0x225   : > { %v306_v36 = vpop.f32.mrb[0].mxu0 }
 0x226   : > { %v307_v37 = vadd.f32 %v401_v35, %v306_v36  ;;  %v422_v38 = vpop.f32.mrb[1].mxu0 }
 0x227   : > { %v309_v39 = vpop.f32.mrb[2].mxu0 }
 0x228   : > { %v310_v40 = vadd.f32 %v401_v35, %v309_v39  ;;  %313 = vmax.xlane.f32.xlu0 %v307_v37  ;;  %v423_v41 = vpop.f32.mrb[3].mxu0 }
 0x22a   : > { %315 = vmax.xlane.f32.xlu1 %v310_v40 }
 0x2b5   : > { %v314_v42 = vpop.xlane.xlu0 %313 }
 0x2b6   : > { %v317_v43 = vsub.f32 %v307_v37, %v314_v42 }
 0x2b7   : > { %v316_v44 = vpop.xlane.xlu1 %315 }
 0x2b8   : > { %v319_v45 = vmul.f32 1.442695, %v317_v43  ;;  %v318_v46 = vsub.f32 %v310_v40, %v316_v44 }
 0x2ba   : > { %440 = vpow2.f32 %v319_v45  ;;  %v321_v47 = vmul.f32 1.442695, %v318_v46 }
 0x2bc   : > { %442 = vpow2.f32 %v321_v47 }
 0x2c4   : > { %v441_v48 = vpop.eup %440 }
 0x2c5   : > { %323 = vadd.xlane.f32.xlu0 %v441_v48 }
 0x2c6   : > { %v443_v49 = vpop.eup %442 }
 0x2c7   : > { %325 = vadd.xlane.f32.xlu1 %v443_v49 }
 0x352   : > { %v324_v50 = vpop.xlane.xlu0 %323 }
 0x353   : > { %444 = vlog2.f32 %v324_v50 }
 0x354   : > { %v326_v51 = vpop.xlane.xlu1 %325 }
 0x355   : > { %446 = vlog2.f32 %v326_v51 }
 0x35d   : > { %v445_v52 = vpop.eup %444 }
 0x35e   : > { %v328_v53 = vmul.f32 0.6931472, %v445_v52 }
 0x35f   : > { %v447_v54 = vpop.eup %446 }
 0x360   : > { %v331_v55 = vsub.f32 %v317_v43, %v328_v53  ;;  %v330_v56 = vmul.f32 0.6931472, %v447_v54 }
 0x362   : > { %333 = vst [vmem:[%s197_s8] sm:$0xff] %v331_v55  ;;  %v332_v57 = vsub.f32 %v318_v46, %v330_v56 }
 0x364   : > { %334 = vst [vmem:[%s197_s8 + $0x8] sm:$0xff] %v332_v57 }
 0x365 PF: > { %s14_s15 = sadd.s32 1, %s454_s15  }
 0x366   : > { %p11_p4 = scmp.ge.s32.totalorder %s14_s15, 4  }
 0x368   :  { %13 = sbr.rel (!%p11_p4) target bundleno = 1 (0x1), region = 66 }

// kernel: _device_forward.15
= control target key start
LH: loop header
LB: loop body
LE: loop exit
PB: predicated region body
PF: predicated region fallthrough
CT: control target
= control target key end

     0   :  { %s3894_s0 = inlined_call_operand.vmem [shape: s32[2], index: 0, kind: input, shape index: {}]   ;;  %s3895_s1 = inlined_call_operand.vmem [shape: bf16[2,16,32], index: 1, kind: input, shape index: {}]   ;;  %s3896_s2 = inlined_call_operand.vmem [shape: bf16[2,2,16,32], index: 2, kind: input, shape index: {}]   ;;  %s3897_s3 = inlined_call_operand.vmem [shape: f32[1,2,32], index: 3, kind: input, shape index: {}]   ;;  %s3898_s4 = inlined_call_operand.vmem [shape: bf16[1,32,96], index: 4, kind: input, shape index: {}]   ;;  %s3899_s5 = inlined_call_operand.vmem [shape: f32[1,1,96], index: 5, kind: input, shape index: {}]   ;;  %s3900_s6 = inlined_call_operand.vmem [shape: bf16[1,32,32], index: 6, kind: input, shape index: {}]   ;;  %s3901_s7 = inlined_call_operand.vmem [shape: f32[1,1,32], index: 7, kind: input, shape index: {}]   ;;  %s3902_s8 = inlined_call_operand.vmem [shape: f32[1,2,32], index: 8, kind: input, shape index: {}]   ;;  %s3903_s9 = inlined_call_operand.vmem [shape: bf16[1,32,32], index: 9, kind: input, shape index: {}]   ;;  %s3904_s10 = inlined_call_operand.vmem [shape: f32[1,1,32], index: 10, kind: input, shape index: {}]   ;;  %s3905_s11 = inlined_call_operand.vmem [shape: bf16[1,32,32], index: 11, kind: input, shape index: {}]   ;;  %s3906_s12 = inlined_call_operand.vmem [shape: f32[1,1,32], index: 12, kind: input, shape index: {}]   ;;  %s3907_s13 = inlined_call_operand.vmem [shape: f32[1,2,32], index: 13, kind: input, shape index: {}]   ;;  %s3908_s14 = inlined_call_operand.vmem [shape: bf16[1,32,64], index: 14, kind: input, shape index: {}]   ;;  %s3909_s15 = inlined_call_operand.vmem [shape: f32[1,1,64], index: 15, kind: input, shape index: {}]   ;;  %s3910_s16 = inlined_call_operand.vmem [shape: bf16[1,64,32], index: 16, kind: input, shape index: {}]   ;;  %s3911_s17 = inlined_call_operand.vmem [shape: f32[1,1,32], index: 17, kind: input, shape index: {}]   ;;  %s3912_s18 = inlined_call_operand.vmem [shape: bf16[2,16,32], index: 18, kind: output, shape index: {}]  }
   0x1   :  { %3913 = sst [smem:[#allocation6_spill]] %s3894_s0 }
   0x2   :  { %3914 = sst [smem:[#allocation7_spill]] %s3895_s1  ;;  %s3917_s29 = sld [smem:[#allocation6_spill]] }
   0x3   :  { %3915 = sst [smem:[#allocation8_spill]] %s3896_s2 }
   0x4   :  { %3916 = sst [smem:[#allocation9_spill]] %s3906_s12 }
   0x8   :  { %s23_s12 = sshll.u32 %s3917_s29, 4  ;;  %s24_s12 = int_to_ptr.vmem [resolvable:$true] %s23_s12 }
   0x9   :  { %s3244_s30 = scalar_lea.vmem %s24_s12, 16  ;;  %p3249_p1 = scmp.lt.s32.totalorder %s24_s12, %s24_s12 }
   0xa   :  { %p3245_p0 = scmp.ne.s32.totalorder %s24_s12, %s3244_s30  ;;  %p3250_p2 = scmp.lt.s32.totalorder %s3244_s30, %s3244_s30 }
   0xc   :  { %p3251_p3 = por %p3250_p2, %p3249_p1 }
   0xe   :  { %p3252_p4 = pnand %p3251_p3, %p3245_p0 }
  0x10   :  { %3255 = shalt.err (!%p3252_p4)  }
  0x11   :  { %s3282_s0 = smov [#allocation4]  }
  0x12   :  { %26 = dma.vmem_to_smem %s24_s12, 16, %s3282_s0, [#allocation3] }
  0x13   :  { %3268 = dma.done.wait [#allocation3], 16 }
  0x14   :  { %3269 = vsyncadd [#allocation3], 4294967280 }
  0x15   :  { %28 = sfence }
  0x16   :  { %s3385_s19 = smov 0   ;;  %s3387_s1 = smov 0  }
  0x17   :  { %s3389_s20 = smov 0  }
  0x18 LB: > { %s46_s12 = sadd.s32 1, %s3276_s1  ;;  %p2814_p5 = scmp.ge.s32.totalorder %s3280_s20, 1  ;;  %s3280_s20 = sphi %s3389_s20, %s34_s20   ;;  %s3276_s1 = sphi %s3387_s1, %s3938_s1   ;;  %s3272_s19 = sphi %s3385_s19, %s3937_s19  }
  0x19   : > { %p48_p6 = scmp.ge.s32.totalorder %s46_s12, 2  ;;  %p659_p7 = scmp.lt.s32.totalorder %s3280_s20, 3 }
  0x1b   : > { %s3940_s12 = smov (%p48_p6, %s46_s12), 0  ;;  %p660_p8 = pnand %p2814_p5, %p659_p7 }
  0x1c   : > { %p781_p9 = scmp.lt.s32.totalorder (!%p660_p8), %s3272_s19, 1  ;;  %s3918_s24 = sld [smem:[#allocation7_spill]] (!%p660_p8)  ;;  %vm876_vm0 = vcmask (!%p660_p8), 261120   ;;  %v3153_v17 = vld [vmem:[%s3898_s4] sm:$0xff] (!%p660_p8)   ;;  %v3283_v18 = vmov (!%p660_p8), 0.0   ;;  %v3154_v19 = vld [vmem:[%s3898_s4 + $0x8] sm:$0xff] (!%p660_p8)   ;;  %v864_v24 = vlaneseq (!%p660_p8) }
  0x1d   : > { %663 = sbr.rel (%p660_p8) target bundleno = 4042 (0xfca), region = 88  ;;  %2947 = vmatprep.subr.bf16.mxu0 (!%p660_p8), %v3283_v18  ;;  %2955 = vmatprep.subr.bf16.mxu1 (!%p660_p8), %v3283_v18  ;;  %vm3284_vm1 = vmmov (!%p660_p8), 0   ;;  %v881_v29 = vld [vmem:[%s3897_s3] sm:$0x3] (!%p660_p8)  ;;  %vm1055_vm13 = vcmask (!%p660_p8), 130048   ;;  %s3927_s29 = sld [smem:[#allocation8_spill]] (!%p660_p8) }
  0x1e   : > { %2948 = vmatpush3.bf16.msra.mxu0 (!%p660_p8), %v3153_v17  ;;  %2951 = vmatprep.mubr.msk.bf16.mxu0 (!%p660_p8), %vm3284_vm1, %v3283_v18  ;;  %v911_v27 = vshrl.u32 (!%p660_p8), %v864_v24, 7  ;;  %v3455_v42 = vand.u32 (!%p660_p8), 127, %v864_v24  ;;  %v2821_v43 = vld [vmem:[%s3899_s5] ss:$0 sm:$0xff] (!%p660_p8) }
  0x1f   : > { %2949 = vmatprep.subr.bf16.mxu0 (!%p660_p8), %v3283_v18  ;;  %2957 = vmatprep.mubr.msk.bf16.mxu1 (!%p660_p8), %vm3284_vm1, %v3283_v18 }
  0x20   : > { %v3443_v28 = vsub.s32 (!%p660_p8), 0, %v911_v27  ;;  %v3449_v33 = vsub.s32 (!%p660_p8), 1, %v911_v27  ;;  %vm1090_vm2 = vcmp.ge.s32.totalorder (!%p660_p8), %v3455_v42, 8  ;;  %vm1091_vm3 = vcmp.lt.s32.totalorder (!%p660_p8), %v3455_v42, 16 }
  0x21   : > { %vm1260_vm4 = vcmp.ge.s32.totalorder (!%p660_p8), %v3455_v42, 16  ;;  %vm1261_vm5 = vcmp.lt.s32.totalorder (!%p660_p8), %v3455_v42, 24  ;;  %vm1388_vm6 = vcmp.ge.s32.totalorder (!%p660_p8), %v3455_v42, 24  ;;  %vm1389_vm7 = vcmp.lt.s32.totalorder (!%p660_p8), %v3455_v42, 32  ;;  %vm3466_vm8 = vmand (!%p660_p8), %vm1090_vm2, %vm1091_vm3 }
  0x22   : > { %2950 = vmatpush3.bf16.msra.mxu0 (!%p660_p8), %v3154_v19  ;;  %v913_v32 = vrot.slane (!%p660_p8), %v881_v29, %v3443_v28  ;;  %v919_v37 = vrot.slane (!%p660_p8), %v881_v29, %v3449_v33  ;;  %vm3470_vm9 = vmand (!%p660_p8), %vm1260_vm4, %vm1261_vm5  ;;  %vm992_vm10 = vcmp.lt.s32.totalorder (!%p660_p8), %v3455_v42, 8  ;;  %vm2500_vm4 = vcmask (!%p660_p8), 257024  }
  0x23   : > { %2961 = vmatprep.subr.bf16.mxu0 (!%p660_p8), %v3283_v18  ;;  %vm3477_vm11 = vmand (!%p660_p8), %vm1388_vm6, %vm1389_vm7 }
  0x24   : > { %s3407_s21 = scalar_select %p781_p9, %s3272_s19, 1  ;;  %vm3594_vm14 = vmpackc.low %vm3466_vm8, %vm3466_vm8 }
  0x25   : > { %vm3605_vm15 = vmpackc.low %vm992_vm10, %vm992_vm10 }
  0x26   : > { %s2886_s22 = sshll.u32 %s3407_s21, 3  ;;  %s2887_s26 = sshll.u32 %s3407_s21, 4  ;;  %vm3619_vm2 = vmpackc.low %vm3470_vm9, %vm3470_vm9 }
  0x27   : > { %s785_s25 = scalar_lea.vmem %s3918_s24, %s2886_s22  ;;  %s3285_s24 = smov 96   ;;  %vm3633_vm3 = vmpackc.low %vm3477_vm11, %vm3477_vm11 }
  0x28   : > { %v2892_v0 = vld [vmem:[%s785_s25] sm:$0xff]   ;;  %s863_s25 = sld [smem:[#allocation4 + %s3272_s19]]  ;;  %s3286_s19 = smov 64  }
  0x29   : > { %v2893_v1 = vunpack.c.l.bf16 %v2892_v0  ;;  %v2894_v2 = vunpack.c.h.bf16 %v2892_v0  ;;  %s3584_s30 = scalar_lea.vmem %s3927_s29, %s2887_s26  ;;  %s3936_s29 = sld [smem:[#allocation9_spill]] }
  0x2a   : > { %s861_s28 = scalar_lea.vmem %s3912_s18, %s2886_s22 }
  0x2b   : > { %877 = vst.msk [vmem:[#allocation2] sm:$0xff] %vm876_vm0, %v2893_v1  ;;  %878 = vst.msk [vmem:[#allocation2 + $0x8] sm:$0xff] %vm876_vm0, %v2894_v2 }
  0x32   : > { %v3417_v3 = vld [vmem:[#allocation2] sm:$0xff]  ;;  %v3419_v4 = vld [vmem:[#allocation2 + $0x8] sm:$0xff] }
  0x33   : > { %v883_v5 = vsel %vm876_vm0, %v3417_v3, 0.0  ;;  %v886_v6 = vsel %vm876_vm0, %v3419_v4, 0.0 }
  0x34   : > { %884 = vadd.xlane.f32.xlu0 %v883_v5 }
  0x38   : > { %887 = vadd.xlane.f32.xlu0 %v886_v6 }
  0xc1   : > { %v885_v7 = vpop.xlane.xlu0 %884 }
  0xc2   : > { %v890_v8 = vmul.f32 0.03125, %v885_v7  ;;  %v866_v7 = vstv %s863_s25 }
  0xc3   : > { %vm3530_vm12 = vcmp.lt.s32.totalorder %v3455_v42, %v866_v7 }
  0xc4   : > { %v892_v9 = vsub.f32 %v3417_v3, %v890_v8 }
  0xc5   : > { %v888_v10 = vpop.xlane.xlu0 %887 }
  0xc6   : > { %v891_v11 = vmul.f32 0.03125, %v888_v10  ;;  %v894_v12 = vmul.f32 %v892_v9, %v892_v9 }
  0xc8   : > { %v893_v13 = vsub.f32 %v3419_v4, %v891_v11  ;;  %v896_v14 = vsel %vm876_vm0, %v894_v12, 0.0 }
  0xc9   : > { %897 = vadd.xlane.f32.xlu1 %v896_v14 }
  0xca   : > { %v895_v15 = vmul.f32 %v893_v13, %v893_v13 }
  0xcc   : > { %v899_v16 = vsel %vm876_vm0, %v895_v15, 0.0 }
  0xcd   : > { %900 = vadd.xlane.f32.xlu1 %v899_v16 }
 0x156   : > { %v898_v20 = vpop.xlane.xlu1 %897 }
 0x157   : > { %v902_v21 = vmul.f32 0.03125, %v898_v20 }
 0x159   : > { %v904_v22 = vadd.f32 1e-12, %v902_v21 }
 0x15a   : > { %v901_v23 = vpop.xlane.xlu1 %900 }
 0x15b   : > { %3168 = vrsqrt.f32 %v904_v22  ;;  %v903_v25 = vmul.f32 0.03125, %v901_v23 }
 0x15d   : > { %v905_v26 = vadd.f32 1e-12, %v903_v25 }
 0x15f   : > { %3170 = vrsqrt.f32 %v905_v26 }
 0x165   : > { %v3169_v30 = vpop.eup %3168 }
 0x166   : > { %v908_v31 = vmul.f32 %v3169_v30, %v892_v9 }
 0x168   : > { %v914_v36 = vmul.f32 %v913_v32, %v908_v31 }
 0x169   : > { %v3171_v34 = vpop.eup %3170 }
 0x16a   : > { %v909_v35 = vmul.f32 %v3171_v34, %v893_v13  ;;  %v920_v39 = vadd.f32 %v919_v37, %v914_v36 }
 0x16c   : > { %v915_v38 = vmul.f32 %v913_v32, %v909_v35 }
 0x16e   : > { %v921_v40 = vadd.f32 %v919_v37, %v915_v38 }
 0x170   : > { %v926_v41 = vpack.c.bf16 %v921_v40, %v920_v39 }
 0x172   : > { %2952 = vmatmul.mubr.msk.bf16.vlgmr.msra.gmra.mrb[0].mxu0 %vm876_vm0, %v926_v41 }
 0x173   : > { %2963 = vmatprep.mubr.msk.bf16.mxu0 %vm3284_vm1, %v3283_v18 }
 0x245   : > { %v983_v45 = vpop.f32.mrb[0].mxu0 }
 0x246   : > { %v3474_v47 = vadd.f32 %v2821_v43, %v983_v45  ;;  %v2953_v48 = vpop.f32.mrb[1].mxu0 }
 0x247   : > { %v986_v50 = vpop.f32.mrb[2].mxu0 }
 0x248   : > { %v3481_v51 = vadd.f32 %v2821_v43, %v986_v50  ;;  %v2954_v52 = vpop.f32.mrb[3].mxu0  ;;  %v996_v53 = vsel %vm992_vm10, %v3474_v47, 0.0  ;;  %v1095_v54 = vsel %vm3466_vm8, %v3474_v47, 0.0  ;;  %v1265_v55 = vsel %vm3470_vm9, %v3474_v47, 0.0 }
 0x249   : > { %v1393_v56 = vsel %vm3477_vm11, %v3474_v47, 0.0 }
 0x24a   : > { %v990_v57 = vpack.c.bf16 %v3481_v51, %v3474_v47  ;;  %v997_v58 = vsel %vm992_vm10, %v3481_v51, 0.0  ;;  %v1096_v59 = vsel %vm3466_vm8, %v3481_v51, 0.0  ;;  %v1266_v60 = vsel %vm3470_vm9, %v3481_v51, 0.0 }
 0x24b   : > { %v998_v61 = vpack.c.bf16 %v997_v58, %v996_v53  ;;  %v1097_v62 = vpack.c.bf16 %v1096_v59, %v1095_v54  ;;  %v1267_v63 = vpack.c.bf16 %v1266_v60, %v1265_v55  ;;  %v1394_v0 = vsel %vm3477_vm11, %v3481_v51, 0.0 }
 0x24c   : > { %1000 = vrot.lane.b32.xlu0 %v990_v57, %s3285_s24  ;;  %v1395_v1 = vpack.c.bf16 %v1394_v0, %v1393_v56  ;;  %v3148_v2 = vpack.i.bf16 %v3481_v51, %v3474_v47 }
 0x2be   : > { %v1001_v5 = vpop.permute.xlu0 %1000 }
 0x2bf   : > { %v1006_v6 = vsel %vm876_vm0, %v1001_v5, 0 }
 0x2c0   : > { %2956 = vmatpush3.bf16.xpose.msra.mxu1 %v1006_v6  ;;  %2962 = vmatpush3.bf16.xpose.msra.mxu0 %v1006_v6 }
 0x2c1   : > { %2979 = vmatprep.subr.bf16.mxu0 %v3283_v18  ;;  %2967 = vmatprep.subr.bf16.mxu1 %v3283_v18 }
 0x2c7   : > { %2958 = vmatmul.mubr.msk.bf16.vlgmr.msra.gmra.mrb[0].mxu1 %vm876_vm0, %v998_v61  ;;  %2964 = vmatmul.mubr.msk.bf16.vlgmr.msra.gmra.mrb[4].mxu0 %vm876_vm0, %v1097_v62 }
 0x2c8   : > { %2980 = vmatpush3.bf16.xpose.msra.mxu0 %v1006_v6  ;;  %2981 = vmatprep.mubr.msk.bf16.mxu0 %vm3284_vm1, %v3283_v18 }
 0x2c9   : > { %2991 = vmatprep.subr.bf16.mxu0 %v3283_v18  ;;  %2969 = vmatprep.mubr.msk.bf16.mxu1 %vm3284_vm1, %v3283_v18 }
 0x2cf   : > { %2982 = vmatmul.mubr.msk.bf16.vlgmr.msra.gmra.mrb[8].mxu0 %vm876_vm0, %v1267_v63 }
 0x2d0   : > { %2992 = vmatpush3.bf16.xpose.msra.mxu0 %v1006_v6  ;;  %2993 = vmatprep.mubr.msk.bf16.mxu0 %vm3284_vm1, %v3283_v18 }
 0x2d1   : > { %3003 = vmatprep.subr.bf16.mxu0 %v3283_v18 }
 0x2d7   : > { %2994 = vmatmul.mubr.msk.bf16.vlgmr.msra.gmra.mrb[12].mxu0 %vm876_vm0, %v1395_v1 }
 0x2d8   : > { %3007 = vmatprep.mubr.msk.bf16.mxu0 %vm3284_vm1, %v3283_v18 }
 0x39a   : > { %v1042_v8 = vpop.f32.mrb[0].mxu1  ;;  %v1135_v9 = vpop.f32.mrb[4].mxu0 }
 0x39b   : > { %v1142_v11 = vmul.f32 0.35355338, %v1135_v9  ;;  %v2959_v12 = vpop.f32.mrb[1].mxu1  ;;  %v2965_v13 = vpop.f32.mrb[5].mxu0  ;;  %v1049_v22 = vmul.f32 0.35355338, %v1042_v8 }
 0x39c   : > { %v1045_v14 = vpop.f32.mrb[2].mxu1  ;;  %v1138_v15 = vpop.f32.mrb[6].mxu0 }
 0x39d   : > { %v1143_v16 = vmul.f32 0.35355338, %v1138_v15  ;;  %v2960_v17 = vpop.f32.mrb[3].mxu1  ;;  %v2966_v19 = vpop.f32.mrb[7].mxu0  ;;  %v1144_v20 = vsel %vm3530_vm12, %v1142_v11, -1e+30 }
 0x39e   : > { %v1146_v21 = vsel %vm1055_vm13, %v1144_v20, -inf  ;;  %v1050_v27 = vmul.f32 0.35355338, %v1045_v14  ;;  %v1053_v30 = vsel %vm3530_vm12, %v1049_v22, -1e+30 }
 0x39f   : > { %1147 = vmax.xlane.f32.xlu1 %v1146_v21  ;;  %v1145_v23 = vsel %vm3530_vm12, %v1143_v16, -1e+30  ;;  %v1056_v32 = vsel %vm1055_vm13, %v1053_v30, -inf }
 0x3a0   : > { %v1149_v25 = vsel %vm1055_vm13, %v1145_v23, -inf  ;;  %v1054_v35 = vsel %vm3530_vm12, %v1050_v27, -1e+30 }
 0x3a1   : > { %v1059_v38 = vsel %vm1055_vm13, %v1054_v35, -inf }
 0x3a2   : > { %v1305_v24 = vpop.f32.mrb[8].mxu0 }
 0x3a3   : > { %v2983_v26 = vpop.f32.mrb[9].mxu0  ;;  %1150 = vmax.xlane.f32.xlu1 %v1149_v25  ;;  %v1312_v34 = vmul.f32 0.35355338, %v1305_v24 }
 0x3a4   : > { %v1308_v29 = vpop.f32.mrb[10].mxu0 }
 0x3a5   : > { %v2984_v31 = vpop.f32.mrb[11].mxu0  ;;  %v1313_v40 = vmul.f32 0.35355338, %v1308_v29  ;;  %v1314_v43 = vsel %vm3530_vm12, %v1312_v34, -1e+30 }
 0x3a6   : > { %v1316_v52 = vsel %vm1055_vm13, %v1314_v43, -inf }
 0x3a7   : > { %1057 = vmax.xlane.f32.xlu1 %v1056_v32  ;;  %v1315_v54 = vsel %vm3530_vm12, %v1313_v40, -1e+30 }
 0x3a8   : > { %v1319_v55 = vsel %vm1055_vm13, %v1315_v54, -inf }
 0x3aa   : > { %v1433_v36 = vpop.f32.mrb[12].mxu0 }
 0x3ab   : > { %v1440_v37 = vmul.f32 0.35355338, %v1433_v36  ;;  %v2995_v39 = vpop.f32.mrb[13].mxu0  ;;  %1060 = vmax.xlane.f32.xlu1 %v1059_v38 }
 0x3ac   : > { %v1436_v41 = vpop.f32.mrb[14].mxu0 }
 0x3ad   : > { %v2996_v45 = vpop.f32.mrb[15].mxu0  ;;  %v1442_v48 = vsel %vm3530_vm12, %v1440_v37, -1e+30  ;;  %v1441_v53 = vmul.f32 0.35355338, %v1436_v41  ;;  %v3155_v41 = vld [vmem:[%s3900_s6] sm:$0xff]  }
 0x3ae   : > { %v1444_v50 = vsel %vm1055_vm13, %v1442_v48, -inf  ;;  %3004 = vmatpush3.bf16.msra.mxu0 %v3155_v41 }
 0x3af   : > { %1445 = vmax.xlane.f32.xlu0 %v1444_v50  ;;  %1317 = vmax.xlane.f32.xlu1 %v1316_v52  ;;  %v1443_v56 = vsel %vm3530_vm12, %v1441_v53, -1e+30 }
 0x3b0   : > { %v1447_v57 = vsel %vm1055_vm13, %v1443_v56, -inf  ;;  %3005 = vmatprep.subr.bf16.mxu0 %v3283_v18 }
 0x3b3   : > { %1320 = vmax.xlane.f32.xlu1 %v1319_v55 }
 0x3b7   : > { %1448 = vmax.xlane.f32.xlu1 %v1447_v57 }
 0x42c   : > { %v1148_v58 = vpop.xlane.xlu1 %1147 }
 0x42d   : > { %v1152_v59 = vsub.f32 %v1144_v20, %v1148_v58 }
 0x42f   : > { %v1154_v60 = vmul.f32 1.442695, %v1152_v59 }
 0x430   : > { %v1151_v61 = vpop.xlane.xlu1 %1150 }
 0x431   : > { %3172 = vpow2.f32 %v1154_v60  ;;  %v1153_v62 = vsub.f32 %v1145_v23, %v1151_v61  ;;  %v3160_v60 = vld [vmem:[%s3905_s11] sm:$0xff]  }
 0x433   : > { %v1156_v1 = vmul.f32 1.442695, %v1153_v62 }
 0x434   : > { %v1058_v63 = vpop.xlane.xlu1 %1057 }
 0x435   : > { %v1062_v0 = vsub.f32 %v1053_v30, %v1058_v63 }
 0x437   : > { %v1064_v5 = vmul.f32 1.442695, %v1062_v0 }
 0x438   : > { %v1061_v6 = vpop.xlane.xlu1 %1060 }
 0x439   : > { %3174 = vpow2.f32 %v1064_v5  ;;  %v1063_v7 = vsub.f32 %v1054_v35, %v1061_v6 }
 0x43a   : > { %3176 = vpow2.f32 %v1156_v1 }
 0x43b   : > { %v3558_v8 = vpop.eup %3172  ;;  %v1066_v9 = vmul.f32 1.442695, %v1063_v7 }
 0x43c   : > { %v1318_v11 = vpop.xlane.xlu1 %1317  ;;  %v1446_v12 = vpop.xlane.xlu0 %1445  ;;  %v1158_v13 = vsel %vm1055_vm13, %v3558_v8, 0.0 }
 0x43d   : > { %v1322_v14 = vsub.f32 %v1314_v43, %v1318_v11  ;;  %1159 = vadd.xlane.f32.xlu1 %v1158_v13  ;;  %3178 = vpow2.f32 %v1066_v9  ;;  %v1450_v16 = vsub.f32 %v1442_v48, %v1446_v12 }
 0x43f   : > { %v1324_v15 = vmul.f32 1.442695, %v1322_v14  ;;  %v1452_v21 = vmul.f32 1.442695, %v1450_v16 }
 0x440   : > { %v1321_v17 = vpop.xlane.xlu1 %1320 }
 0x441   : > { %3180 = vpow2.f32 %v1324_v15  ;;  %v1323_v19 = vsub.f32 %v1315_v54, %v1321_v17 }
 0x443   : > { %v3562_v20 = vpop.eup %3174  ;;  %v1326_v22 = vmul.f32 1.442695, %v1323_v19 }
 0x444   : > { %v1068_v23 = vsel %vm1055_vm13, %v3562_v20, 0.0  ;;  %v3177_v24 = vpop.eup %3176  ;;  %v1449_v36 = vpop.xlane.xlu1 %1448 }
 0x445   : > { %3182 = vpow2.f32 %v1326_v22  ;;  %1069 = vadd.xlane.f32.xlu1 %v1068_v23  ;;  %v1161_v25 = vsel %vm1055_vm13, %v3177_v24, 0.0  ;;  %v1451_v37 = vsub.f32 %v1443_v56, %v1449_v36  ;;  %v3156_v22 = vld [vmem:[%s3900_s6 + $0x8] sm:$0xff]  }
 0x446   : > { %3184 = vpow2.f32 %v1452_v21  ;;  %3006 = vmatpush3.bf16.msra.mxu0 %v3156_v22 }
 0x447   : > { %v3179_v26 = vpop.eup %3178  ;;  %v1454_v38 = vmul.f32 1.442695, %v1451_v37  ;;  %3011 = vmatprep.subr.bf16.mxu0 %v3283_v18 }
 0x448   : > { %v1071_v30 = vsel %vm1055_vm13, %v3179_v26, 0.0 }
 0x449   : > { %1162 = vadd.xlane.f32.xlu1 %v1161_v25  ;;  %3186 = vpow2.f32 %v1454_v38 }
 0x44b   : > { %v3567_v27 = vpop.eup %3180 }
 0x44c   : > { %v1328_v29 = vsel %vm1055_vm13, %v3567_v27, 0.0 }
 0x44d   : > { %1329 = vadd.xlane.f32.xlu0 %v1328_v29  ;;  %1072 = vadd.xlane.f32.xlu1 %v1071_v30  ;;  %v2848_v30 = vld [vmem:[%s3901_s7] ss:$0 sm:$0xff] }
 0x44f   : > { %v3183_v31 = vpop.eup %3182 }
 0x450   : > { %v1331_v32 = vsel %vm1055_vm13, %v3183_v31, 0.0  ;;  %v3573_v34 = vpop.eup %3184 }
 0x451   : > { %1332 = vadd.xlane.f32.xlu0 %v1331_v32  ;;  %v1456_v35 = vsel %vm1055_vm13, %v3573_v34, 0.0 }
 0x453   : > { %v3187_v39 = vpop.eup %3186 }
 0x454   : > { %v1459_v40 = vsel %vm1055_vm13, %v3187_v39, 0.0 }
 0x455   : > { %1457 = vadd.xlane.f32.xlu0 %v1456_v35 }
 0x45e   : > { %3149 = vrot.lane.b32.xlu1 %v3148_v2, %s3286_s19 }
 0x482   : > { %1460 = vadd.xlane.f32.xlu1 %v1459_v40 }
 0x4ca   : > { %v1160_v47 = vpop.xlane.xlu1 %1159 }
 0x4cb   : > { %3188 = vrcp.f32 %v1160_v47 }
 0x4d2   : > { %v1070_v51 = vpop.xlane.xlu1 %1069 }
 0x4d5   : > { %v3189_v48 = vpop.eup %3188 }
 0x4d6   : > { %v1163_v2 = vpop.xlane.xlu1 %1162  ;;  %v1166_v56 = vmul.f32 %v3189_v48, %v3558_v8 }
 0x4d7   : > { %3190 = vrcp.f32 %v1163_v2 }
 0x4da   : > { %v1073_v43 = vpop.xlane.xlu1 %1072  ;;  %v1330_v58 = vpop.xlane.xlu0 %1329 }
 0x4db   : > { %3192 = vrcp.f32 %v1073_v43 }
 0x4dc   : > { %3194 = vrcp.f32 %v1070_v51 }
 0x4de   : > { %v3150_v45 = vpop.permute.xlu1 %3149  ;;  %v1333_v61 = vpop.xlane.xlu0 %1332 }
 0x4df   : > { %v3152_v50 = vunpack.i.h.bf16 %v3150_v45  ;;  %v3151_v52 = vunpack.i.l.bf16 %v3150_v45  ;;  %3196 = vrcp.f32 %v1333_v61 }
 0x4e0   : > { %3198 = vrcp.f32 %v1330_v58 }
 0x4e1   : > { %v3191_v54 = vpop.eup %3190  ;;  %v2828_v55 = vpack.c.bf16 %v3152_v50, %v3151_v52  ;;  %v3157_v52 = vld [vmem:[%s3903_s9] sm:$0xff]  }
 0x4e2   : > { %v1167_v57 = vmul.f32 %v3191_v54, %v3177_v24  ;;  %v1458_v14 = vpop.xlane.xlu0 %1457  ;;  %v3158_v54 = vld [vmem:[%s3903_s9 + $0x8] sm:$0xff]  }
 0x4e3   : > { %2968 = vmatpush3.bf16.msk.msra.mxu1 %vm3594_vm14, %v2828_v55  ;;  %3200 = vrcp.f32 %v1458_v14 }
 0x4e4   : > { %v1168_v59 = vpack.c.bf16 %v1167_v57, %v1166_v56  ;;  %2973 = vmatprep.subr.bf16.mxu1 %v3283_v18 }
 0x4e5   : > { %v3193_v62 = vpop.eup %3192 }
 0x4e6   : > { %2970 = vmatmul.mubr.msk.bf16.vlgmr.msra.gmra.mrb[4].mxu1 %vm1055_vm13, %v1168_v59  ;;  %v3195_v63 = vpop.eup %3194  ;;  %v1077_v0 = vmul.f32 %v3193_v62, %v3179_v26  ;;  %v1588_v62 = vld [vmem:[%s3902_s8] sm:$0x3] }
 0x4e7   : > { %2974 = vmatpush3.bf16.msk.msra.mxu1 %vm3605_vm15, %v2828_v55  ;;  %2975 = vmatprep.mubr.msk.bf16.mxu1 %vm3284_vm1, %v3283_v18  ;;  %v1076_v1 = vmul.f32 %v3195_v63, %v3562_v20 }
 0x4e8   : > { %2985 = vmatprep.subr.bf16.mxu1 %v3283_v18 }
 0x4e9   : > { %v1078_v5 = vpack.c.bf16 %v1077_v0, %v1076_v1  ;;  %v3197_v7 = vpop.eup %3196  ;;  %v1618_v0 = vrot.slane %v1588_v62, %v3443_v28 }
 0x4ea   : > { %v3199_v8 = vpop.eup %3198  ;;  %v1337_v9 = vmul.f32 %v3197_v7, %v3183_v31 }
 0x4eb   : > { %v1336_v11 = vmul.f32 %v3199_v8, %v3567_v27 }
 0x4ed   : > { %v1338_v12 = vpack.c.bf16 %v1337_v9, %v1336_v11  ;;  %v3201_v16 = vpop.eup %3200  ;;  %v1624_v9 = vrot.slane %v1588_v62, %v3449_v33 }
 0x4ee   : > { %v1464_v19 = vmul.f32 %v3201_v16, %v3573_v34  ;;  %v3159_v16 = vld [vmem:[%s3584_s30] sm:$0xff]  }
 0x4f2   : > { %2976 = vmatmul.mubr.msk.bf16.vlgmr.msra.gmra.mrb[4].mxu1 %vm1055_vm13, %v1078_v5 }
 0x4f3   : > { %2986 = vmatpush3.bf16.msk.msra.mxu1 %vm3619_vm2, %v2828_v55  ;;  %2987 = vmatprep.mubr.msk.bf16.mxu1 %vm3284_vm1, %v3283_v18 }
 0x4f4   : > { %2997 = vmatprep.subr.bf16.mxu1 %v3283_v18 }
 0x4fe   : > { %2988 = vmatmul.mubr.msk.bf16.vlgmr.msra.gmra.mrb[4].mxu1 %vm1055_vm13, %v1338_v12 }
 0x4ff   : > { %2998 = vmatpush3.bf16.msk.msra.mxu1 %vm3633_vm3, %v2828_v55  ;;  %2999 = vmatprep.mubr.msk.bf16.mxu1 %vm3284_vm1, %v3283_v18 }
 0x500   : > { %3019 = vmatprep.subr.bf16.mxu1 %v3283_v18 }
 0x50f   : > { %v1461_v15 = vpop.xlane.xlu1 %1460 }
 0x510   : > { %3202 = vrcp.f32 %v1461_v15 }
 0x51a   : > { %v3203_v17 = vpop.eup %3202 }
 0x51b   : > { %v1465_v20 = vmul.f32 %v3203_v17, %v3187_v39  ;;  %v1712_v17 = vsel %vm876_vm0, %v3159_v16, 0 }
 0x51d   : > { %v1466_v21 = vpack.c.bf16 %v1465_v20, %v1464_v19  ;;  %v2849_v19 = vld [vmem:[%s3904_s10] ss:$0 sm:$0xff] }
 0x51f   : > { %3000 = vmatmul.mubr.msk.bf16.vlgmr.msra.gmra.mrb[4].mxu1 %vm1055_vm13, %v1466_v21 }
 0x520   : > { %3021 = vmatprep.mubr.msk.bf16.mxu1 %vm3284_vm1, %v3283_v18  ;;  %3020 = vmatpush3.bf16.xpose.msra.mxu1 %v1712_v17 }
 0x521   : > { %3031 = vmatprep.subr.bf16.mxu1 %v3283_v18 }
 0x5f2   : > { %v1507_v23 = vpop.f32.mrb[4].mxu1 }
 0x5f3   : > { %v3001_v24 = vpop.f32.mrb[5].mxu1 }
 0x5f4   : > { %v1510_v25 = vpop.f32.mrb[6].mxu1 }
 0x5f5   : > { %v1520_v26 = vpack.c.bf16 %v1510_v25, %v1507_v23  ;;  %v3002_v27 = vpop.f32.mrb[7].mxu1 }
 0x5f7   : > { %3008 = vmatmul.mubr.msk.bf16.vlgmr.msra.gmra.mrb[16].mxu0 %vm876_vm0, %v1520_v26 }
 0x5f8   : > { %3015 = vmatprep.mubr.msk.bf16.mxu0 %vm3284_vm1, %v3283_v18  ;;  %3012 = vmatpush3.bf16.msra.mxu0 %v3157_v52 }
 0x5f9   : > { %3013 = vmatprep.subr.bf16.mxu0 %v3283_v18 }
 0x5fc   : > { %3014 = vmatpush3.bf16.msra.mxu0 %v3158_v54 }
 0x5fd   : > { %3025 = vmatprep.subr.bf16.mxu0 %v3283_v18 }
 0x6ca   : > { %v1570_v29 = vpop.f32.mrb[16].mxu0 }
 0x6cb   : > { %v1577_v31 = vadd.f32 %v1570_v29, %v3417_v3  ;;  %v3009_v32 = vpop.f32.mrb[17].mxu0 }
 0x6cc   : > { %v1573_v34 = vpop.f32.mrb[18].mxu0 }
 0x6cd   : > { %v3658_v35 = vadd.f32 %v2848_v30, %v1577_v31  ;;  %v1578_v36 = vadd.f32 %v1573_v34, %v3419_v4  ;;  %v3010_v37 = vpop.f32.mrb[19].mxu0 }
 0x6cf   : > { %v3661_v38 = vadd.f32 %v2848_v30, %v1578_v36  ;;  %v1589_v39 = vsel %vm876_vm0, %v3658_v35, 0.0 }
 0x6d0   : > { %1590 = vadd.xlane.f32.xlu0 %v1589_v39 }
 0x6d1   : > { %v1592_v40 = vsel %vm876_vm0, %v3661_v38, 0.0 }
 0x6d4   : > { %1593 = vadd.xlane.f32.xlu0 %v1592_v40 }
 0x75d   : > { %v1591_v41 = vpop.xlane.xlu0 %1590 }
 0x75e   : > { %v1595_v47 = vmul.f32 0.03125, %v1591_v41 }
 0x760   : > { %v1597_v3 = vsub.f32 %v3658_v35, %v1595_v47 }
 0x761   : > { %v1594_v51 = vpop.xlane.xlu0 %1593 }
 0x762   : > { %v1596_v2 = vmul.f32 0.03125, %v1594_v51  ;;  %v1599_v43 = vmul.f32 %v1597_v3, %v1597_v3 }
 0x764   : > { %v1598_v4 = vsub.f32 %v3661_v38, %v1596_v2  ;;  %v1601_v45 = vsel %vm876_vm0, %v1599_v43, 0.0 }
 0x765   : > { %1602 = vadd.xlane.f32.xlu0 %v1601_v45 }
 0x766   : > { %v1600_v48 = vmul.f32 %v1598_v4, %v1598_v4 }
 0x768   : > { %v1604_v50 = vsel %vm876_vm0, %v1600_v48, 0.0 }
 0x769   : > { %1605 = vadd.xlane.f32.xlu0 %v1604_v50 }
 0x7f2   : > { %v1603_v55 = vpop.xlane.xlu0 %1602 }
 0x7f3   : > { %v1607_v56 = vmul.f32 0.03125, %v1603_v55 }
 0x7f5   : > { %v1609_v57 = vadd.f32 1e-12, %v1607_v56 }
 0x7f6   : > { %v1606_v58 = vpop.xlane.xlu0 %1605 }
 0x7f7   : > { %3204 = vrsqrt.f32 %v1609_v57  ;;  %v1608_v59 = vmul.f32 0.03125, %v1606_v58 }
 0x7f9   : > { %v1610_v61 = vadd.f32 1e-12, %v1608_v59 }
 0x7fb   : > { %3206 = vrsqrt.f32 %v1610_v61 }
 0x801   : > { %v3205_v63 = vpop.eup %3204 }
 0x802   : > { %v1613_v1 = vmul.f32 %v3205_v63, %v1597_v3 }
 0x804   : > { %v1619_v7 = vmul.f32 %v1618_v0, %v1613_v1 }
 0x805   : > { %v3207_v5 = vpop.eup %3206 }
 0x806   : > { %v1614_v8 = vmul.f32 %v3207_v5, %v1598_v4  ;;  %v1625_v12 = vadd.f32 %v1624_v9, %v1619_v7 }
 0x808   : > { %v1620_v11 = vmul.f32 %v1618_v0, %v1614_v8 }
 0x80a   : > { %v1626_v14 = vadd.f32 %v1624_v9, %v1620_v11 }
 0x80c   : > { %v1631_v15 = vpack.c.bf16 %v1626_v14, %v1625_v12 }
 0x80e   : > { %3016 = vmatmul.mubr.msk.bf16.vlgmr.msra.gmra.mrb[20].mxu0 %vm876_vm0, %v1631_v15 }
 0x80f   : > { %3027 = vmatprep.mubr.msk.bf16.mxu0 %vm3284_vm1, %v3283_v18  ;;  %3026 = vmatpush3.bf16.xpose.msra.mxu0 %v1712_v17 }
 0x810   : > { %3043 = vmatprep.subr.bf16.mxu0 %v3283_v18 }
 0x8e1   : > { %v1688_v20 = vpop.f32.mrb[20].mxu0 }
 0x8e2   : > { %v1689_v21 = vadd.f32 %v2849_v19, %v1688_v20  ;;  %v3017_v22 = vpop.f32.mrb[21].mxu0 }
 0x8e3   : > { %v1691_v23 = vpop.f32.mrb[22].mxu0 }
 0x8e4   : > { %v3018_v24 = vpop.f32.mrb[23].mxu0  ;;  %v1692_v25 = vadd.f32 %v2849_v19, %v1691_v23  ;;  %v1700_v26 = vsel %vm992_vm10, %v1689_v21, 0.0  ;;  %v1785_v27 = vsel %vm3466_vm8, %v1689_v21, 0.0  ;;  %v1962_v29 = vsel %vm3470_vm9, %v1689_v21, 0.0 }
 0x8e5   : > { %v2091_v30 = vsel %vm3477_vm11, %v1689_v21, 0.0 }
 0x8e6   : > { %v1701_v31 = vsel %vm992_vm10, %v1692_v25, 0.0  ;;  %v1786_v32 = vsel %vm3466_vm8, %v1692_v25, 0.0  ;;  %v1963_v34 = vsel %vm3470_vm9, %v1692_v25, 0.0  ;;  %v2092_v36 = vsel %vm3477_vm11, %v1692_v25, 0.0 }
 0x8e7   : > { %v1702_v37 = vpack.c.bf16 %v1701_v31, %v1700_v26  ;;  %v1787_v39 = vpack.c.bf16 %v1786_v32, %v1785_v27  ;;  %v1964_v40 = vpack.c.bf16 %v1963_v34, %v1962_v29  ;;  %v2093_v41 = vpack.c.bf16 %v2092_v36, %v2091_v30 }
 0x8e9   : > { %3022 = vmatmul.mubr.msk.bf16.vlgmr.msra.gmra.mrb[8].mxu1 %vm876_vm0, %v1702_v37  ;;  %3028 = vmatmul.mubr.msk.bf16.vlgmr.msra.gmra.mrb[24].mxu0 %vm876_vm0, %v1787_v39 }
 0x8ea   : > { %3044 = vmatpush3.bf16.xpose.msra.mxu0 %v1712_v17  ;;  %3045 = vmatprep.mubr.msk.bf16.mxu0 %vm3284_vm1, %v3283_v18 }
 0x8eb   : > { %3055 = vmatprep.subr.bf16.mxu0 %v3283_v18  ;;  %3033 = vmatprep.mubr.msk.bf16.mxu1 %vm3284_vm1, %v3283_v18 }
 0x8f1   : > { %3046 = vmatmul.mubr.msk.bf16.vlgmr.msra.gmra.mrb[28].mxu0 %vm876_vm0, %v1964_v40 }
 0x8f2   : > { %3056 = vmatpush3.bf16.xpose.msra.mxu0 %v1712_v17  ;;  %3057 = vmatprep.mubr.msk.bf16.mxu0 %vm3284_vm1, %v3283_v18 }
 0x8f3   : > { %3067 = vmatprep.subr.bf16.mxu0 %v3283_v18 }
 0x8f9   : > { %3058 = vmatmul.mubr.msk.bf16.vlgmr.msra.gmra.mrb[32].mxu0 %vm876_vm0, %v2093_v41 }
 0x8fa   : > { %3071 = vmatprep.mubr.msk.bf16.mxu0 %vm3284_vm1, %v3283_v18  ;;  %3068 = vmatpush3.bf16.msra.mxu0 %v3160_v60 }
 0x8fb   : > { %3069 = vmatprep.subr.bf16.mxu0 %v3283_v18 }
 0x9bc   : > { %v1748_v42 = vpop.f32.mrb[8].mxu1  ;;  %v1825_v44 = vpop.f32.mrb[24].mxu0 }
 0x9bd   : > { %v1832_v46 = vmul.f32 0.35355338, %v1825_v44  ;;  %v3023_v49 = vpop.f32.mrb[9].mxu1  ;;  %v3029_v47 = vpop.f32.mrb[25].mxu0  ;;  %v1755_v50 = vmul.f32 0.35355338, %v1748_v42 }
 0x9be   : > { %v1751_v3 = vpop.f32.mrb[10].mxu1  ;;  %v1828_v51 = vpop.f32.mrb[26].mxu0 }
 0x9bf   : > { %v1833_v2 = vmul.f32 0.35355338, %v1828_v51  ;;  %v3024_v43 = vpop.f32.mrb[11].mxu1  ;;  %v3030_v4 = vpop.f32.mrb[27].mxu0  ;;  %v1834_v45 = vsel %vm3530_vm12, %v1832_v46, -1e+30 }
 0x9c0   : > { %v1836_v48 = vsel %vm1055_vm13, %v1834_v45, -inf  ;;  %v1756_v57 = vmul.f32 0.35355338, %v1751_v3  ;;  %v1757_v59 = vsel %vm3530_vm12, %v1755_v50, -1e+30 }
 0x9c1   : > { %1837 = vmax.xlane.f32.xlu0 %v1836_v48  ;;  %v1835_v52 = vsel %vm3530_vm12, %v1833_v2, -1e+30  ;;  %v1759_v63 = vsel %vm1055_vm13, %v1757_v59, -inf }
 0x9c2   : > { %v1839_v55 = vsel %vm1055_vm13, %v1835_v52, -inf  ;;  %v1758_v7 = vsel %vm3530_vm12, %v1756_v57, -1e+30 }
 0x9c3   : > { %v1762_v9 = vsel %vm1055_vm13, %v1758_v7, -inf }
 0x9c4   : > { %v2002_v54 = vpop.f32.mrb[28].mxu0 }
 0x9c5   : > { %v3047_v56 = vpop.f32.mrb[29].mxu0  ;;  %1840 = vmax.xlane.f32.xlu0 %v1839_v55  ;;  %v2009_v1 = vmul.f32 0.35355338, %v2002_v54 }
 0x9c6   : > { %v2005_v58 = vpop.f32.mrb[30].mxu0 }
 0x9c7   : > { %v2010_v61 = vmul.f32 0.35355338, %v2005_v58  ;;  %v3048_v62 = vpop.f32.mrb[31].mxu0  ;;  %v2011_v15 = vsel %vm3530_vm12, %v2009_v1, -1e+30 }
 0x9c8   : > { %v2013_v19 = vsel %vm1055_vm13, %v2011_v15, -inf }
 0x9c9   : > { %v2012_v0 = vsel %vm3530_vm12, %v2010_v61, -1e+30  ;;  %1760 = vmax.xlane.f32.xlu0 %v1759_v63 }
 0x9ca   : > { %v2016_v5 = vsel %vm1055_vm13, %v2012_v0, -inf }
 0x9cb   : > { %2017 = vmax.xlane.f32.xlu1 %v2016_v5  ;;  %v2853_v5 = vld [vmem:[%s3584_s30 + $0x8] sm:$0xf] }
 0x9cc   : > { %v2131_v8 = vpop.f32.mrb[32].mxu0  ;;  %v2166_v53 = vsel %vm3633_vm3, %v2853_v5, 0 }
 0x9cd   : > { %v3059_v11 = vpop.f32.mrb[33].mxu0  ;;  %v2138_v12 = vmul.f32 0.35355338, %v2131_v8  ;;  %1763 = vmax.xlane.f32.xlu0 %v1762_v9  ;;  %v1860_v8 = vsel %vm3594_vm14, %v2853_v5, 0 }
 0x9ce   : > { %v2134_v14 = vpop.f32.mrb[34].mxu0 }
 0x9cf   : > { %v2139_v16 = vmul.f32 0.35355338, %v2134_v14  ;;  %v3060_v17 = vpop.f32.mrb[35].mxu0  ;;  %v2140_v22 = vsel %vm3530_vm12, %v2138_v12, -1e+30  ;;  %v1783_v12 = vsel %vm3605_vm15, %v2853_v5, 0 }
 0x9d0   : > { %v2142_v23 = vsel %vm1055_vm13, %v2140_v22, -inf }
 0x9d1   : > { %v2141_v20 = vsel %vm3530_vm12, %v2139_v16, -1e+30  ;;  %2014 = vmax.xlane.f32.xlu0 %v2013_v19  ;;  %v2037_v16 = vsel %vm3619_vm2, %v2853_v5, 0 }
 0x9d2   : > { %v2145_v21 = vsel %vm1055_vm13, %v2141_v20, -inf }
 0x9d3   : > { %2146 = vmax.xlane.f32.xlu1 %v2145_v21 }
 0x9d5   : > { %2143 = vmax.xlane.f32.xlu0 %v2142_v23 }
 0xa4e   : > { %v1838_v24 = vpop.xlane.xlu0 %1837 }
 0xa4f   : > { %v1842_v25 = vsub.f32 %v1834_v45, %v1838_v24 }
 0xa51   : > { %v1844_v26 = vmul.f32 1.442695, %v1842_v25 }
 0xa52   : > { %v1841_v27 = vpop.xlane.xlu0 %1840 }
 0xa53   : > { %3208 = vpow2.f32 %v1844_v26  ;;  %v1843_v29 = vsub.f32 %v1835_v52, %v1841_v27 }
 0xa55   : > { %v1846_v30 = vmul.f32 1.442695, %v1843_v29 }
 0xa56   : > { %v1761_v31 = vpop.xlane.xlu0 %1760 }
 0xa57   : > { %3210 = vpow2.f32 %v1846_v30  ;;  %v1765_v32 = vsub.f32 %v1757_v59, %v1761_v31 }
 0xa58   : > { %v2018_v34 = vpop.xlane.xlu1 %2017 }
 0xa59   : > { %v1767_v36 = vmul.f32 1.442695, %v1765_v32  ;;  %v2020_v37 = vsub.f32 %v2012_v0, %v2018_v34 }
 0xa5a   : > { %v1764_v39 = vpop.xlane.xlu0 %1763 }
 0xa5b   : > { %3212 = vpow2.f32 %v1767_v36  ;;  %v1766_v10 = vsub.f32 %v1758_v7, %v1764_v39  ;;  %v2023_v41 = vmul.f32 1.442695, %v2020_v37  ;;  %v2854_v7 = vld [vmem:[%s3584_s30 + $0xc] sm:$0xf] }
 0xa5c   : > { %v1861_v9 = vsel %vm3594_vm14, %v2854_v7, 0  ;;  %v1784_v14 = vsel %vm3605_vm15, %v2854_v7, 0  ;;  %v2038_v17 = vsel %vm3619_vm2, %v2854_v7, 0 }
 0xa5d   : > { %v3748_v40 = vpop.eup %3208  ;;  %v1769_v42 = vmul.f32 1.442695, %v1766_v10  ;;  %v2858_v11 = vcombine.low %v1860_v8, %v1861_v9  ;;  %v2863_v19 = vcombine.low %v2037_v16, %v2038_v17  ;;  %v3162_v17 = vld [vmem:[%s3908_s14] sm:$0xff]  }
 0xa5e   : > { %v2015_v44 = vpop.xlane.xlu0 %2014  ;;  %v1848_v46 = vsel %vm1055_vm13, %v3748_v40, 0.0 }
 0xa5f   : > { %3214 = vpow2.f32 %v1769_v42  ;;  %v2019_v49 = vsub.f32 %v2011_v15, %v2015_v44  ;;  %1849 = vadd.xlane.f32.xlu0 %v1848_v46  ;;  %3032 = vmatpush3.bf16.msra.mxu1 %v2858_v11  ;;  %v2860_v15 = vcombine.low %v1783_v12, %v1784_v14 }
 0xa60   : > { %v2147_v47 = vpop.xlane.xlu1 %2146  ;;  %3216 = vpow2.f32 %v2023_v41  ;;  %3037 = vmatprep.subr.bf16.mxu1 %v3283_v18 }
 0xa61   : > { %v2149_v3 = vsub.f32 %v2141_v20, %v2147_v47  ;;  %v3211_v51 = vpop.eup %3210  ;;  %v2021_v2 = vmul.f32 1.442695, %v2019_v49  ;;  %v2167_v20 = vsel %vm3633_vm3, %v2854_v7, 0 }
 0xa62   : > { %v2144_v4 = vpop.xlane.xlu0 %2143  ;;  %v1851_v45 = vsel %vm1055_vm13, %v3211_v51, 0.0  ;;  %v2866_v21 = vcombine.low %v2166_v53, %v2167_v20  ;;  %v3164_v53 = vld [vmem:[%s3910_s16] sm:$0xff]   ;;  %v3165_v20 = vld [vmem:[%s3910_s16 + $0x8] sm:$0xff]  }
 0xa63   : > { %v2152_v43 = vmul.f32 1.442695, %v2149_v3  ;;  %3218 = vpow2.f32 %v2021_v2  ;;  %v2148_v48 = vsub.f32 %v2140_v22, %v2144_v4  ;;  %1852 = vadd.xlane.f32.xlu1 %v1851_v45  ;;  %v3161_v4 = vld [vmem:[%s3905_s11 + $0x8] sm:$0xff]  }
 0xa64   : > { %3070 = vmatpush3.bf16.msra.mxu0 %v3161_v4 }
 0xa65   : > { %v3753_v50 = vpop.eup %3212  ;;  %3220 = vpow2.f32 %v2152_v43  ;;  %v2150_v52 = vmul.f32 1.442695, %v2148_v48  ;;  %3075 = vmatprep.subr.bf16.mxu0 %v3283_v18 }
 0xa66   : > { %v1771_v54 = vsel %vm1055_vm13, %v3753_v50, 0.0 }
 0xa67   : > { %3222 = vpow2.f32 %v2150_v52  ;;  %1772 = vadd.xlane.f32.xlu0 %v1771_v54 }
 0xa69   : > { %v3215_v55 = vpop.eup %3214 }
 0xa6a   : > { %v1774_v56 = vsel %vm1055_vm13, %v3215_v55, 0.0  ;;  %v3758_v57 = vpop.eup %3216 }
 0xa6b   : > { %1775 = vadd.xlane.f32.xlu1 %v1774_v56  ;;  %v2028_v61 = vsel %vm1055_vm13, %v3758_v57, 0.0  ;;  %v2871_v56 = vld [vmem:[%s3936_s29] ss:$0 sm:$0xff] }
 0xa6d   : > { %v3760_v58 = vpop.eup %3218 }
 0xa6e   : > { %v2025_v59 = vsel %vm1055_vm13, %v3760_v58, 0.0 }
 0xa6f   : > { %v3766_v62 = vpop.eup %3220  ;;  %2026 = vadd.xlane.f32.xlu0 %v2025_v59  ;;  %2029 = vadd.xlane.f32.xlu1 %v2028_v61 }
 0xa70   : > { %v2157_v1 = vsel %vm1055_vm13, %v3766_v62, 0.0 }
 0xa71   : > { %v3768_v63 = vpop.eup %3222 }
 0xa72   : > { %v2154_v0 = vsel %vm1055_vm13, %v3768_v63, 0.0 }
 0xa73   : > { %2155 = vadd.xlane.f32.xlu0 %v2154_v0  ;;  %2158 = vadd.xlane.f32.xlu1 %v2157_v1 }
 0xaec   : > { %v1850_v22 = vpop.xlane.xlu0 %1849 }
 0xaed   : > { %3224 = vrcp.f32 %v1850_v22 }
 0xaf0   : > { %v1853_v23 = vpop.xlane.xlu1 %1852 }
 0xaf1   : > { %3226 = vrcp.f32 %v1853_v23 }
 0xaf4   : > { %v1773_v6 = vpop.xlane.xlu0 %1772 }
 0xaf7   : > { %v3225_v25 = vpop.eup %3224 }
 0xaf8   : > { %v1776_v24 = vpop.xlane.xlu1 %1775  ;;  %v1856_v13 = vmul.f32 %v3225_v25, %v3748_v40  ;;  %v2292_v25 = vld [vmem:[%s3907_s13] sm:$0x3] }
 0xaf9   : > { %3228 = vrcp.f32 %v1776_v24 }
 0xafa   : > { %3230 = vrcp.f32 %v1773_v6 }
 0xafb   : > { %v3227_v26 = vpop.eup %3226 }
 0xafc   : > { %v1857_v27 = vmul.f32 %v3227_v26, %v3211_v51  ;;  %v2027_v30 = vpop.xlane.xlu0 %2026  ;;  %v2030_v31 = vpop.xlane.xlu1 %2029  ;;  %v2322_v26 = vrot.slane %v2292_v25, %v3443_v28  ;;  %v3167_v28 = vld [vmem:[%s3910_s16 + $0x18] sm:$0xff]  }
 0xafd   : > { %3232 = vrcp.f32 %v2027_v30 }
 0xafe   : > { %v1858_v29 = vpack.c.bf16 %v1857_v27, %v1856_v13  ;;  %3234 = vrcp.f32 %v2030_v31 }
 0xb00   : > { %3034 = vmatmul.mubr.msk.bf16.vlgmr.msra.gmra.mrb[12].mxu1 %vm1055_vm13, %v1858_v29  ;;  %v2156_v10 = vpop.xlane.xlu0 %2155  ;;  %v2159_v41 = vpop.xlane.xlu1 %2158 }
 0xb01   : > { %3038 = vmatpush3.bf16.msra.mxu1 %v2860_v15  ;;  %3039 = vmatprep.mubr.msk.bf16.mxu1 %vm3284_vm1, %v3283_v18  ;;  %3236 = vrcp.f32 %v2156_v10  ;;  %v3166_v10 = vld [vmem:[%s3910_s16 + $0x10] sm:$0xff]  }
 0xb02   : > { %3049 = vmatprep.subr.bf16.mxu1 %v3283_v18  ;;  %3238 = vrcp.f32 %v2159_v41 }
 0xb03   : > { %v3229_v32 = vpop.eup %3228 }
 0xb04   : > { %v3231_v34 = vpop.eup %3230  ;;  %v1780_v36 = vmul.f32 %v3229_v32, %v3215_v55  ;;  %v2328_v32 = vrot.slane %v2292_v25, %v3449_v33  ;;  %v2872_v33 = vld [vmem:[%s3909_s15] ss:$0 sm:$0xff] }
 0xb05   : > { %v1779_v37 = vmul.f32 %v3231_v34, %v3753_v50 }
 0xb07   : > { %v1781_v39 = vpack.c.bf16 %v1780_v36, %v1779_v37  ;;  %v3233_v40 = vpop.eup %3232 }
 0xb08   : > { %v3235_v42 = vpop.eup %3234  ;;  %v2033_v44 = vmul.f32 %v3233_v40, %v3760_v58 }
 0xb09   : > { %v2034_v46 = vmul.f32 %v3235_v42, %v3758_v57 }
 0xb0b   : > { %v2035_v49 = vpack.c.bf16 %v2034_v46, %v2033_v44  ;;  %v3237_v47 = vpop.eup %3236 }
 0xb0c   : > { %3040 = vmatmul.mubr.msk.bf16.vlgmr.msra.gmra.mrb[12].mxu1 %vm1055_vm13, %v1781_v39  ;;  %v3239_v3 = vpop.eup %3238  ;;  %v2162_v51 = vmul.f32 %v3237_v47, %v3768_v63 }
 0xb0d   : > { %3050 = vmatpush3.bf16.msra.mxu1 %v2863_v19  ;;  %3051 = vmatprep.mubr.msk.bf16.mxu1 %vm3284_vm1, %v3283_v18  ;;  %v2163_v2 = vmul.f32 %v3239_v3, %v3766_v62  ;;  %v3163_v19 = vld [vmem:[%s3908_s14 + $0x8] sm:$0xff]  }
 0xb0e   : > { %3061 = vmatprep.subr.bf16.mxu1 %v3283_v18 }
 0xb0f   : > { %v2164_v43 = vpack.c.bf16 %v2163_v2, %v2162_v51  ;;  %v2881_v2 = vld [vmem:[%s3911_s17] ss:$0 sm:$0xff] }
 0xb18   : > { %3052 = vmatmul.mubr.msk.bf16.vlgmr.msra.gmra.mrb[12].mxu1 %vm1055_vm13, %v2035_v49 }
 0xb19   : > { %3062 = vmatpush3.bf16.msra.mxu1 %v2866_v21  ;;  %3063 = vmatprep.mubr.msk.bf16.mxu1 %vm3284_vm1, %v3283_v18 }
 0xb1a   : > { %3083 = vmatprep.subr.bf16.mxu1 %v3283_v18 }
 0xb24   : > { %3064 = vmatmul.mubr.msk.bf16.vlgmr.msra.gmra.mrb[12].mxu1 %vm1055_vm13, %v2164_v43 }
 0xb25   : > { %3091 = vmatprep.mubr.msk.bf16.mxu1 %vm3284_vm1, %v3283_v18  ;;  %3084 = vmatpush3.bf16.msra.mxu1 %v3164_v53 }
 0xb26   : > { %3085 = vmatprep.subr.bf16.mxu1 %v3283_v18 }
 0xb29   : > { %3086 = vmatpush3.bf16.msra.mxu1 %v3165_v20 }
 0xb2a   : > { %3087 = vmatprep.subr.bf16.mxu1 %v3283_v18 }
 0xb2d   : > { %3088 = vmatpush3.bf16.msra.mxu1 %v3166_v10 }
 0xb2e   : > { %3089 = vmatprep.subr.bf16.mxu1 %v3283_v18 }
 0xb31   : > { %3090 = vmatpush3.bf16.msra.mxu1 %v3167_v28 }
 0xbf7   : > { %v2211_v45 = vpop.f32.mrb[12].mxu1 }
 0xbf8   : > { %v3065_v48 = vpop.f32.mrb[13].mxu1 }
 0xbf9   : > { %v2214_v50 = vpop.f32.mrb[14].mxu1 }
 0xbfa   : > { %v2224_v52 = vpack.c.bf16 %v2214_v50, %v2211_v45  ;;  %v3066_v54 = vpop.f32.mrb[15].mxu1 }
 0xbfc   : > { %3072 = vmatmul.mubr.msk.bf16.vlgmr.msra.gmra.mrb[36].mxu0 %vm876_vm0, %v2224_v52 }
 0xbfd   : > { %3079 = vmatprep.mubr.msk.bf16.mxu0 %vm3284_vm1, %v3283_v18  ;;  %3076 = vmatpush3.bf16.msra.mxu0 %v3162_v17  ;;  %vm2434_vm1 = vcmask 523264  }
 0xbfe   : > { %3077 = vmatprep.subr.bf16.mxu0 %v3283_v18 }
 0xc01   : > { %3078 = vmatpush3.bf16.msra.mxu0 %v3163_v19 }
 0xccf   : > { %v2274_v55 = vpop.f32.mrb[36].mxu0 }
 0xcd0   : > { %v2281_v57 = vadd.f32 %v2274_v55, %v3658_v35  ;;  %v3073_v58 = vpop.f32.mrb[37].mxu0 }
 0xcd1   : > { %v2277_v59 = vpop.f32.mrb[38].mxu0 }
 0xcd2   : > { %v3829_v61 = vadd.f32 %v2871_v56, %v2281_v57  ;;  %v2282_v62 = vadd.f32 %v2277_v59, %v3661_v38  ;;  %v3074_v63 = vpop.f32.mrb[39].mxu0 }
 0xcd4   : > { %v3832_v0 = vadd.f32 %v2871_v56, %v2282_v62  ;;  %v2293_v1 = vsel %vm876_vm0, %v3829_v61, 0.0 }
 0xcd5   : > { %2294 = vadd.xlane.f32.xlu0 %v2293_v1 }
 0xcd6   : > { %v2296_v5 = vsel %vm876_vm0, %v3832_v0, 0.0 }
 0xcd7   : > { %2297 = vadd.xlane.f32.xlu1 %v2296_v5 }
 0xd62   : > { %v2295_v7 = vpop.xlane.xlu0 %2294 }
 0xd63   : > { %v2299_v8 = vmul.f32 0.03125, %v2295_v7 }
 0xd64   : > { %v2298_v35 = vpop.xlane.xlu1 %2297 }
 0xd65   : > { %v2301_v9 = vsub.f32 %v3829_v61, %v2299_v8  ;;  %v2300_v11 = vmul.f32 0.03125, %v2298_v35 }
 0xd67   : > { %v2302_v12 = vsub.f32 %v3832_v0, %v2300_v11  ;;  %v2303_v38 = vmul.f32 %v2301_v9, %v2301_v9 }
 0xd69   : > { %v2305_v14 = vsel %vm876_vm0, %v2303_v38, 0.0  ;;  %v2304_v15 = vmul.f32 %v2302_v12, %v2302_v12 }
 0xd6a   : > { %2306 = vadd.xlane.f32.xlu0 %v2305_v14 }
 0xd6b   : > { %v2308_v16 = vsel %vm876_vm0, %v2304_v15, 0.0 }
 0xd6c   : > { %2309 = vadd.xlane.f32.xlu1 %v2308_v16 }
 0xdf7   : > { %v2307_v21 = vpop.xlane.xlu0 %2306 }
 0xdf8   : > { %v2311_v60 = vmul.f32 0.03125, %v2307_v21 }
 0xdf9   : > { %v2310_v22 = vpop.xlane.xlu1 %2309 }
 0xdfa   : > { %v2313_v23 = vadd.f32 1e-12, %v2311_v60  ;;  %v2312_v6 = vmul.f32 0.03125, %v2310_v22 }
 0xdfc   : > { %3240 = vrsqrt.f32 %v2313_v23  ;;  %v2314_v24 = vadd.f32 1e-12, %v2312_v6 }
 0xdfe   : > { %3242 = vrsqrt.f32 %v2314_v24 }
 0xe06   : > { %v3241_v13 = vpop.eup %3240 }
 0xe07   : > { %v2317_v27 = vmul.f32 %v3241_v13, %v2301_v9 }
 0xe08   : > { %v3243_v29 = vpop.eup %3242 }
 0xe09   : > { %v2323_v30 = vmul.f32 %v2322_v26, %v2317_v27  ;;  %v2318_v31 = vmul.f32 %v3243_v29, %v2302_v12 }
 0xe0b   : > { %v2324_v34 = vmul.f32 %v2322_v26, %v2318_v31  ;;  %v2329_v36 = vadd.f32 %v2328_v32, %v2323_v30 }
 0xe0d   : > { %v2330_v37 = vadd.f32 %v2328_v32, %v2324_v34 }
 0xe0f   : > { %v2335_v39 = vpack.c.bf16 %v2330_v37, %v2329_v36 }
 0xe11   : > { %3080 = vmatmul.mubr.msk.bf16.vlgmr.msra.gmra.mrb[40].mxu0 %vm876_vm0, %v2335_v39 }
 0xee4   : > { %v2392_v40 = vpop.f32.mrb[40].mxu0 }
 0xee5   : > { %v2393_v41 = vadd.f32 %v2872_v33, %v2392_v40  ;;  %v3081_v42 = vpop.f32.mrb[41].mxu0 }
 0xee6   : > { %v2395_v44 = vpop.f32.mrb[42].mxu0 }
 0xee7   : > { %v2396_v46 = vadd.f32 %v2872_v33, %v2395_v44  ;;  %v3082_v49 = vpop.f32.mrb[43].mxu0  ;;  %v2399_v47 = vmax.f32 %v2393_v41, 0.0 }
 0xee9   : > { %v2400_v3 = vmax.f32 %v2396_v46, 0.0 }
 0xeeb   : > { %v2409_v18 = vpack.c.bf16 %v2400_v3, %v2399_v47 }
 0xeed   : > { %3092 = vmatmul.mubr.msk.bf16.vlgmr.msra.gmra.mrb[16].mxu1 %vm2434_vm1, %v2409_v18 }
 0xfc0   : > { %v2472_v51 = vpop.f32.mrb[16].mxu1 }
 0xfc1   : > { %v2479_v43 = vadd.f32 %v2472_v51, %v3829_v61  ;;  %v3093_v4 = vpop.f32.mrb[17].mxu1 }
 0xfc2   : > { %v2475_v45 = vpop.f32.mrb[18].mxu1 }
 0xfc3   : > { %v2488_v48 = vadd.f32 %v2881_v2, %v2479_v43  ;;  %v2480_v50 = vadd.f32 %v2475_v45, %v3832_v0  ;;  %v3094_v52 = vpop.f32.mrb[19].mxu1 }
 0xfc5   : > { %2490 = vst.msk [vmem:[#allocation2] sm:$0xff] %vm876_vm0, %v2488_v48  ;;  %v2889_v54 = vpack.c.bf16 %v2488_v48, %v2488_v48  ;;  %v2489_v55 = vadd.f32 %v2881_v2, %v2480_v50 }
 0xfc7   : > { %2501 = vst.msk [vmem:[%s861_s28] sm:$0xf] %vm2500_vm4, %v2889_v54  ;;  %v2890_v56 = vpack.c.bf16 %v2489_v55, %v2489_v55 }
 0xfc8   : > { %2491 = vst.msk [vmem:[#allocation2 + $0x8] sm:$0xff] %vm876_vm0, %v2489_v55 }
 0xfc9   : > { %2502 = vst.msk [vmem:[%s861_s28 + $0x4] sm:$0xf] %vm2500_vm4, %v2890_v56 }
 0xfca PF: > { %s34_s20 = sadd.s32 1, %s3280_s20   ;;  %s3937_s19 = smov %s3276_s1 }
 0xfcb   : > { %p31_p10 = scmp.ge.s32.totalorder %s34_s20, 4   ;;  %s3938_s1 = smov %s3940_s12 }
 0xfcd   :  { %33 = sbr.rel (!%p31_p10) target bundleno = 24 (0x18), region = 171 }

</bundles_post_ra>
